<compile_context>
chip_gen: v7x
topology: tpu7x:2x2x1
jax: 0.10.0
libtpu: 0.0.40
codegen_flags: <defaults>
</compile_context>

<pallas_src>
import functools
import math

import jax
import jax.numpy as jnp
from jax import lax
from jax.experimental import pallas as pl
from jax.experimental.pallas import tpu as pltpu

EPS = 1e-6
NEG = -1e9


# ---------------------------------------------------------------------------
# in-kernel helpers
# ---------------------------------------------------------------------------
def _norm(x, alpha, beta):
    # layer-norm over the channel axis (axis 0); alpha/beta shaped (C, 1)
    mu = jnp.mean(x, axis=0, keepdims=True)
    var = jnp.mean((x - mu) ** 2, axis=0, keepdims=True)
    return alpha * (x - mu) * lax.rsqrt(var + EPS) + beta


# ---------------------------------------------------------------------------
# fused CatEncoder kernel: one grid step == one block of batch elements
# ---------------------------------------------------------------------------
def _cat_encoder_kernel(x_ref, xcat_ref, abias_ref, tmask_ref, vecs_ref,
                        wbr_ref, wqk_ref, wv_ref, w1_ref, w2_ref, fnorm_ref,
                        out_ref, *, k, n_layers, C):
    N = x_ref.shape[-1]                       # lane width of this block (mult of 128)
    x = x_ref[...]                            # (1, N)   continuous input, lane-dense
    abias = abias_ref[...]                    # (N, N)   block-diag causal bias (0/-1e9)
    scale = float(C) ** -0.5
    zpad = jnp.zeros((C, k - 1), jnp.float32)          # hoisted
    tmask = [tmask_ref[j] for j in range(k)]           # k x (1, N) boundary masks, hoisted

    h = None
    for li in range(n_layers):
        vec = vecs_ref[li]                    # (C, 13) packed per-layer vectors
        bb, n1a, n1b = vec[:, 0:1], vec[:, 1:2], vec[:, 2:3]
        n2a, n2b = vec[:, 3:4], vec[:, 4:5]
        n3a, n3b = vec[:, 5:6], vec[:, 6:7]
        bq, bk_, bv = vec[:, 7:8], vec[:, 8:9], vec[:, 9:10]
        b1, b2, wb0 = vec[:, 10:11], vec[:, 11:12], vec[:, 12:13]

        # --- broadcast: Conv1d(c_in, C, kernel_size=1) == channel matmul ---
        if li == 0:
            h = wb0 * x + bb                                   # (C,1)*(1,N) -> (C,N)
        else:
            h = jnp.dot(wbr_ref[li - 1], h,
                        preferred_element_type=jnp.float32) + bb
        h = _norm(h, n1a, n1b)                                 # norm1

        # --- conv self-attention ------------------------------------------
        # Causal taps on the FULL slab: pad-left once, k static lane slices,
        # per-segment boundary mask kills cross-segment leakage.  Q and K come
        # from ONE (2C, k*C) @ (k*C, N) matmul over the stacked taps.
        h_pad = jnp.concatenate([zpad, h], axis=1)             # (C, N + k - 1)
        stacked = jnp.concatenate(
            [h_pad[:, j:j + N] * tmask[j] for j in range(k)], axis=0)   # (k*C, N)
        qk = jnp.dot(wqk_ref[li], stacked,
                     preferred_element_type=jnp.float32)       # (2C, N)
        q = qk[:C] + bq
        kk = qk[C:] + bk_
        v = jnp.dot(wv_ref[li], h, preferred_element_type=jnp.float32) + bv

        # Batched attention: full-width scores with a block-diagonal causal
        # bias; cross-segment pairs are -1e9 so they contribute exactly 0.
        s = lax.dot_general(q, kk, (((0,), (0,)), ((), ())),
                            preferred_element_type=jnp.float32)         # (N, N)
        s = s * scale + abias
        s = s - jnp.max(s, axis=-1, keepdims=True)
        p = jnp.exp(s)
        denom = jnp.sum(p, axis=-1, keepdims=True)
        # approx=False keeps the 2e-4 reference parity; flip to approx=True
        # (EUP vrcp, free slot) when exact parity is not required.
        p = p * pl.reciprocal(denom, approx=False)
        h = h + lax.dot_general(v, p, (((1,), (1,)), ((), ())),
                                preferred_element_type=jnp.float32)     # dropout1 == id

        # --- feed-forward on the channel axis (the two transposes cancel) ---
        h2 = _norm(h, n2a, n2b)                                # norm2
        z = jnp.maximum(jnp.dot(w1_ref[li], h2,
                                preferred_element_type=jnp.float32) + b1, 0.0)
        h = h + jnp.dot(w2_ref[li], z,
                        preferred_element_type=jnp.float32) + b2        # dropout2 == id
        h = _norm(h, n3a, n3b)                                 # norm3
        if li == 0:
            h = h + xcat_ref[...]             # CatEncoder: layers[0](x_) + x_cat

    # final self.norm
    out_ref[...] = _norm(h, fnorm_ref[:, 0:1], fnorm_ref[:, 1:2])


# ---------------------------------------------------------------------------
# host-side packing / wrapper
# ---------------------------------------------------------------------------
def _pick_batch_block(B, L, C, k, vmem_budget=24 * 1024 * 1024):
    """Largest lane-dense (N % 128 == 0) batch block that fits a VMEM budget.

    Caps N at 512 (keeps the (N, N) attention scores small) and at the padded
    batch (no gratuitous over-padding of tiny inputs).
    """
    g = math.gcd(L, 128)
    unit = 128 // g                              # smallest b with (b*L) % 128 == 0
    max_b = -(-B // unit) * unit                 # batch rounded up to a unit multiple

    def fits(b):
        n = b * L
        act = (8 * C + k * C) * n * 4            # live f32 activation slabs
        attn = 2 * n * n * 4                     # scores + probs
        io = 2 * 2 * (C + 1) * n * 4             # double-buffered in/out tiles
        return act + attn + io <= vmem_budget

    b_blk = unit
    while (b_blk + unit) <= max_b and (b_blk + unit) * L <= 512 and fits(b_blk + unit):
        b_blk += unit
    return b_blk


def _pack_params(params, k):
    layers = params["layers"]
    n_layers = len(layers)
    C = layers[0]["wq"].shape[1]

    vec_list = []
    for li, p in enumerate(layers):
        wb_col = p["wb"] if li == 0 else jnp.zeros((C, 1), jnp.float32)
        cols = [p["bb"], p["n1a"], p["n1b"], p["n2a"], p["n2b"], p["n3a"],
                p["n3b"], p["bq"], p["bk"], p["bv"], p["b1"], p["b2"], wb_col]
        vec_list.append(jnp.concatenate(cols, axis=1))          # (C, 13)
    vecs = jnp.stack(vec_list)                                  # (n_layers, C, 13)

    if n_layers > 1:
        wb_rest = jnp.stack([layers[i]["wb"] for i in range(1, n_layers)])
    else:
        wb_rest = jnp.zeros((1, C, C), jnp.float32)             # dummy, never read

    def flat_qk(p):
        wq = jnp.transpose(p["wq"], (1, 0, 2)).reshape(C, k * C)
        wk = jnp.transpose(p["wk"], (1, 0, 2)).reshape(C, k * C)
        return jnp.concatenate([wq, wk], axis=0)                # (2C, k*C)

    wqk = jnp.stack([flat_qk(p) for p in layers])
    wv = jnp.stack([p["wv"] for p in layers])
    w1 = jnp.stack([p["w1"] for p in layers])
    w2 = jnp.stack([p["w2"] for p in layers])
    fnorm = jnp.concatenate([params["norm_a"], params["norm_b"]], axis=1)  # (C, 2)
    return vecs, wb_rest, wqk, wv, w1, w2, fnorm


def cat_encoder_forward(cat_, x_, mask, params, *, k):
    if x_.ndim == 2:                     # mirrors unsqueeze_(0).transpose_(0,1)
        x_ = x_[:, None, :]
    B, c_in0, L = x_.shape
    layers = params["layers"]
    n_layers = len(layers)
    C = layers[0]["wq"].shape[1]
    assert c_in0 == 1 and layers[0]["wb"].shape[1] == 1
    assert all(p["wq"].shape[1] == C for p in layers), "fused kernel assumes uniform channels"
    assert k - 1 < L, "kernel width must be < sequence length"

    # Lane-dense, VMEM-aware batch blocking; pad the batch to a block multiple.
    b_blk = _pick_batch_block(B, L, C, k)
    B_pad = -(-B // b_blk) * b_blk
    n_blk = B_pad // b_blk
    N = b_blk * L

    pad = B_pad - B
    if pad:
        x_ = jnp.concatenate([x_, jnp.zeros((pad, 1, L), x_.dtype)], axis=0)
        cat_ = jnp.concatenate([cat_, jnp.zeros((pad, L), cat_.dtype)], axis=0)

    # lane-dense activations / embedding (host-side glue; embedding gather has
    # no clean small-scale Pallas equivalent, done here)
    x_flat = jnp.transpose(x_, (1, 0, 2)).reshape(1, B_pad * L).astype(jnp.float32)
    x_cat = jnp.transpose(params["emb"][cat_], (2, 0, 1)).reshape(C, B_pad * L)
    x_cat = x_cat.astype(jnp.float32)

    # host-precomputed block-diagonal causal attention bias (N, N)
    mbias = jnp.where(mask > 0, 0.0, NEG).astype(jnp.float32)            # (L, L)
    seg = jnp.arange(N) // L
    same = seg[:, None] == seg[None, :]
    attn_bias = jnp.where(same, jnp.tile(mbias, (b_blk, b_blk)), NEG).astype(jnp.float32)

    # host-precomputed per-tap segment-boundary masks (k, 1, N):
    # tap j has delay d = k-1-j; positions with (t mod L) < d must read zero.
    t_in_seg = jnp.arange(N) % L
    delays = (k - 1) - jnp.arange(k)
    tap_mask = (t_in_seg[None, :] >= delays[:, None]).astype(jnp.float32)[:, None, :]

    vecs, wb_rest, wqk, wv, w1, w2, fnorm = _pack_params(params, k)

    def wspec(a):
        nd = a.ndim
        return pl.BlockSpec(a.shape, lambda i, _nd=nd: (0,) * _nd)

    kern = functools.partial(_cat_encoder_kernel, k=k, n_layers=n_layers, C=C)

    out_flat = pl.pallas_call(
        kern,
        grid=(n_blk,),
        in_specs=[pl.BlockSpec((1, N), lambda i: (0, i)),
                  pl.BlockSpec((C, N), lambda i: (0, i)),
                  wspec(attn_bias), wspec(tap_mask), wspec(vecs), wspec(wb_rest),
                  wspec(wqk), wspec(wv), wspec(w1), wspec(w2), wspec(fnorm)],
        out_specs=pl.BlockSpec((C, N), lambda i: (0, i)),
        out_shape=jax.ShapeDtypeStruct((C, B_pad * L), jnp.float32),
        compiler_params=pltpu.CompilerParams(
            dimension_semantics=("parallel",),       # shards blocks across TCs on v7x
            vmem_limit_bytes=32 * 1024 * 1024),
    )(x_flat, x_cat, attn_bias, tap_mask, vecs, wb_rest, wqk, wv, w1, w2, fnorm)

    out = jnp.transpose(out_flat.reshape(C, B_pad, L), (1, 0, 2))        # (B_pad, C, L)
    return out[:B]


# ---------------------------------------------------------------------------
# deterministic parameter init
# ---------------------------------------------------------------------------
def init_layer_params(key, c_in, c_out, k):
    ks = jax.random.split(key, 12)
    s = 0.2

    def nrm(kk, shape):
        return s * jax.random.normal(kk, shape, jnp.float32)

    return {
        "wb": nrm(ks[0], (c_out, c_in)), "bb": nrm(ks[1], (c_out, 1)),
        "n1a": 1.0 + nrm(ks[2], (c_out, 1)), "n1b": nrm(ks[3], (c_out, 1)),
        "n2a": 1.0 + nrm(ks[4], (c_out, 1)), "n2b": nrm(ks[5], (c_out, 1)),
        "n3a": 1.0 + nrm(ks[6], (c_out, 1)), "n3b": nrm(ks[7], (c_out, 1)),
        "wq": nrm(ks[8], (k, c_out, c_out)), "bq": jnp.zeros((c_out, 1), jnp.float32),
        "wk": nrm(ks[9], (k, c_out, c_out)), "bk": jnp.zeros((c_out, 1), jnp.float32),
        "wv": nrm(ks[10], (c_out, c_out)), "bv": jnp.zeros((c_out, 1), jnp.float32),
        "w1": nrm(ks[11], (c_out, c_out)), "b1": jnp.zeros((c_out, 1), jnp.float32),
        "w2": nrm(ks[0], (c_out, c_out)), "b2": jnp.zeros((c_out, 1), jnp.float32),
    }


# ---------------------------------------------------------------------------
# pure-JAX reference (for correctness check)
# ---------------------------------------------------------------------------
def _ref_norm(x, a, b):
    mu = x.mean(axis=1, keepdims=True)
    var = ((x - mu) ** 2).mean(axis=1, keepdims=True)
    return a[None] * (x - mu) / jnp.sqrt(var + EPS) + b[None]


def _ref_causal_conv(x, w, b):
    k = w.shape[0]
    L = x.shape[-1]
    xp = jnp.pad(x, ((0, 0), (0, 0), (k - 1, 0)))
    out = sum(jnp.einsum('oc,bcl->bol', w[j], xp[:, :, j:j + L]) for j in range(k))
    return out + b[None]


def _ref_layer(x, mask, p):
    if p["wb"].shape[1] == 1:
        h = p["wb"][None] * x + p["bb"][None]
    else:
        h = jnp.einsum('oc,bcl->bol', p["wb"], x) + p["bb"][None]
    h = _ref_norm(h, p["n1a"], p["n1b"])
    q = _ref_causal_conv(h, p["wq"], p["bq"])
    kk = _ref_causal_conv(h, p["wk"], p["bk"])
    v = jnp.einsum('oc,bcl->bol', p["wv"], h) + p["bv"][None]
    scores = jnp.einsum('bct,bcs->bts', q, kk) / jnp.sqrt(float(q.shape[1]))
    scores = jnp.where(mask[None] > 0, scores, -1e9)
    a = jax.nn.softmax(scores, axis=-1)
    h = h + jnp.einsum('bcs,bts->bct', v, a)
    h2 = _ref_norm(h, p["n2a"], p["n2b"])
    z = jnp.maximum(jnp.einsum('oc,bcl->bol', p["w1"], h2) + p["b1"][None], 0.0)
    h = h + jnp.einsum('oc,bcl->bol', p["w2"], z) + p["b2"][None]
    return _ref_norm(h, p["n3a"], p["n3b"])


def _ref_forward(cat_, x_, mask, params):
    x_cat = jnp.transpose(params["emb"][cat_], (0, 2, 1))
    x = _ref_layer(x_, mask, params["layers"][0]) + x_cat
    for lp in params["layers"][1:]:
        x = _ref_layer(x, mask, lp)
    return _ref_norm(x, params["norm_a"], params["norm_b"])


# ---------------------------------------------------------------------------
if __name__ == "__main__":
    B, L, K = 2, 16, 5
    channels = [8, 8, 8]          # CatEncoder(seq_len=16, channels=[8,8,8], k=5)
    num_cats = 12

    key = jax.random.PRNGKey(0)
    keys = jax.random.split(key, 8)
    chans = [1] + channels
    layer_params = [init_layer_params(keys[i], chans[i], chans[i + 1], K)
                    for i in range(len(channels))]
    params = {
        "layers": layer_params,
        "norm_a": 1.0 + 0.1 * jax.random.normal(keys[3], (channels[-1], 1), jnp.float32),
        "norm_b": 0.1 * jax.random.normal(keys[4], (channels[-1], 1), jnp.float32),
        "emb": 0.2 * jax.random.normal(keys[5], (num_cats, channels[0]), jnp.float32),
    }

    cat_ = jax.random.randint(keys[6], (B, L), 0, num_cats)        # categorical input
    x_ = jax.random.normal(keys[7], (B, 1, L), jnp.float32)        # continuous input (NCL)
    mask = jnp.tril(jnp.ones((L, L), jnp.float32))                 # causal attention mask

    out = cat_encoder_forward(cat_, x_, mask, params, k=K)
    out = jax.block_until_ready(out)

    ref = _ref_forward(cat_, x_, mask, params)
    assert out.shape == (B, channels[-1], L)
    assert jnp.allclose(out, ref, atol=2e-4, rtol=2e-4), float(jnp.max(jnp.abs(out - ref)))
    print("KERNEL_OK")
</pallas_src>

<mosaic_0001>
module attributes {stable_mosaic.version = 11 : i64} {
  func.func @_cat_encoder_kernel(%arg0: i32, %arg1: memref<1x128xf32, #tpu.memory_space<vmem>>, %arg2: memref<8x128xf32, #tpu.memory_space<vmem>>, %arg3: memref<128x128xf32, #tpu.memory_space<vmem>>, %arg4: memref<5x1x128xf32, #tpu.memory_space<vmem>>, %arg5: memref<3x8x13xf32, #tpu.memory_space<vmem>>, %arg6: memref<2x8x8xf32, #tpu.memory_space<vmem>>, %arg7: memref<3x16x40xf32, #tpu.memory_space<vmem>>, %arg8: memref<3x8x8xf32, #tpu.memory_space<vmem>>, %arg9: memref<3x8x8xf32, #tpu.memory_space<vmem>>, %arg10: memref<3x8x8xf32, #tpu.memory_space<vmem>>, %arg11: memref<8x2xf32, #tpu.memory_space<vmem>>, %arg12: memref<8x128xf32, #tpu.memory_space<vmem>>) attributes {dimension_semantics = [#tpu.dimension_semantics<parallel>], iteration_bounds = array<i64: 1>, scalar_prefetch = 0 : i64, scratch_operands = 0 : i64, tpu.core_type = #tpu.core_type<tc>, window_params = [{transform_indices = @transform_0, window_bounds = array<i64: 1, 128>}, {transform_indices = @transform_1, window_bounds = array<i64: 8, 128>}, {pipeline_mode = #tpu.pipeline_mode<synchronous>, transform_indices = @transform_2, window_bounds = array<i64: 128, 128>}, {pipeline_mode = #tpu.pipeline_mode<synchronous>, transform_indices = @transform_3, window_bounds = array<i64: 5, 1, 128>}, {pipeline_mode = #tpu.pipeline_mode<synchronous>, transform_indices = @transform_4, window_bounds = array<i64: 3, 8, 13>}, {pipeline_mode = #tpu.pipeline_mode<synchronous>, transform_indices = @transform_5, window_bounds = array<i64: 2, 8, 8>}, {pipeline_mode = #tpu.pipeline_mode<synchronous>, transform_indices = @transform_6, window_bounds = array<i64: 3, 16, 40>}, {pipeline_mode = #tpu.pipeline_mode<synchronous>, transform_indices = @transform_7, window_bounds = array<i64: 3, 8, 8>}, {pipeline_mode = #tpu.pipeline_mode<synchronous>, transform_indices = @transform_8, window_bounds = array<i64: 3, 8, 8>}, {pipeline_mode = #tpu.pipeline_mode<synchronous>, transform_indices = @transform_9, window_bounds = array<i64: 3, 8, 8>}, {pipeline_mode = #tpu.pipeline_mode<synchronous>, transform_indices = @transform_10, window_bounds = array<i64: 8, 2>}, {transform_indices = @transform_11, window_bounds = array<i64: 8, 128>}]} {
    %c0 = arith.constant 0 : index
    %c0_0 = arith.constant 0 : index
    %0 = vector.load %arg1[%c0, %c0_0] : memref<1x128xf32, #tpu.memory_space<vmem>>, vector<1x128xf32>
    %c0_1 = arith.constant 0 : index
    %c0_2 = arith.constant 0 : index
    %1 = vector.load %arg3[%c0_1, %c0_2] : memref<128x128xf32, #tpu.memory_space<vmem>>, vector<128x128xf32>
    %cst = arith.constant 0.000000e+00 : f32
    %2 = vector.broadcast %cst : f32 to vector<8x4xf32>
    %c0_3 = arith.constant 0 : index
    %c0_4 = arith.constant 0 : index
    %c0_5 = arith.constant 0 : index
    %3 = vector.load %arg4[%c0_3, %c0_4, %c0_5] : memref<5x1x128xf32, #tpu.memory_space<vmem>>, vector<1x1x128xf32>
    %4 = vector.shape_cast %3 : vector<1x1x128xf32> to vector<1x128xf32>
    %c1 = arith.constant 1 : index
    %c0_6 = arith.constant 0 : index
    %c0_7 = arith.constant 0 : index
    %5 = vector.load %arg4[%c1, %c0_6, %c0_7] : memref<5x1x128xf32, #tpu.memory_space<vmem>>, vector<1x1x128xf32>
    %6 = vector.shape_cast %5 : vector<1x1x128xf32> to vector<1x128xf32>
    %c2 = arith.constant 2 : index
    %c0_8 = arith.constant 0 : index
    %c0_9 = arith.constant 0 : index
    %7 = vector.load %arg4[%c2, %c0_8, %c0_9] : memref<5x1x128xf32, #tpu.memory_space<vmem>>, vector<1x1x128xf32>
    %8 = vector.shape_cast %7 : vector<1x1x128xf32> to vector<1x128xf32>
    %c3 = arith.constant 3 : index
    %c0_10 = arith.constant 0 : index
    %c0_11 = arith.constant 0 : index
    %9 = vector.load %arg4[%c3, %c0_10, %c0_11] : memref<5x1x128xf32, #tpu.memory_space<vmem>>, vector<1x1x128xf32>
    %10 = vector.shape_cast %9 : vector<1x1x128xf32> to vector<1x128xf32>
    %c4 = arith.constant 4 : index
    %c0_12 = arith.constant 0 : index
    %c0_13 = arith.constant 0 : index
    %11 = vector.load %arg4[%c4, %c0_12, %c0_13] : memref<5x1x128xf32, #tpu.memory_space<vmem>>, vector<1x1x128xf32>
    %12 = vector.shape_cast %11 : vector<1x1x128xf32> to vector<1x128xf32>
    %c0_14 = arith.constant 0 : index
    %c0_15 = arith.constant 0 : index
    %c0_16 = arith.constant 0 : index
    %13 = vector.load %arg5[%c0_14, %c0_15, %c0_16] : memref<3x8x13xf32, #tpu.memory_space<vmem>>, vector<1x8x13xf32>
    %14 = vector.shape_cast %13 : vector<1x8x13xf32> to vector<8x13xf32>
    %15 = vector.extract_strided_slice %14 {offsets = [0, 0], sizes = [8, 1], strides = [1, 1]} : vector<8x13xf32> to vector<8x1xf32>
    %16 = vector.extract_strided_slice %14 {offsets = [0, 1], sizes = [8, 1], strides = [1, 1]} : vector<8x13xf32> to vector<8x1xf32>
    %17 = vector.extract_strided_slice %14 {offsets = [0, 2], sizes = [8, 1], strides = [1, 1]} : vector<8x13xf32> to vector<8x1xf32>
    %18 = vector.extract_strided_slice %14 {offsets = [0, 3], sizes = [8, 1], strides = [1, 1]} : vector<8x13xf32> to vector<8x1xf32>
    %19 = vector.extract_strided_slice %14 {offsets = [0, 4], sizes = [8, 1], strides = [1, 1]} : vector<8x13xf32> to vector<8x1xf32>
    %20 = vector.extract_strided_slice %14 {offsets = [0, 5], sizes = [8, 1], strides = [1, 1]} : vector<8x13xf32> to vector<8x1xf32>
    %21 = vector.extract_strided_slice %14 {offsets = [0, 6], sizes = [8, 1], strides = [1, 1]} : vector<8x13xf32> to vector<8x1xf32>
    %22 = vector.extract_strided_slice %14 {offsets = [0, 7], sizes = [8, 1], strides = [1, 1]} : vector<8x13xf32> to vector<8x1xf32>
    %23 = vector.extract_strided_slice %14 {offsets = [0, 8], sizes = [8, 1], strides = [1, 1]} : vector<8x13xf32> to vector<8x1xf32>
    %24 = vector.extract_strided_slice %14 {offsets = [0, 9], sizes = [8, 1], strides = [1, 1]} : vector<8x13xf32> to vector<8x1xf32>
    %25 = vector.extract_strided_slice %14 {offsets = [0, 10], sizes = [8, 1], strides = [1, 1]} : vector<8x13xf32> to vector<8x1xf32>
    %26 = vector.extract_strided_slice %14 {offsets = [0, 11], sizes = [8, 1], strides = [1, 1]} : vector<8x13xf32> to vector<8x1xf32>
    %27 = vector.extract_strided_slice %14 {offsets = [0, 12], sizes = [8, 1], strides = [1, 1]} : vector<8x13xf32> to vector<8x1xf32>
    %28 = vector.broadcast %27 : vector<8x1xf32> to vector<8x128xf32>
    %29 = vector.broadcast %0 : vector<1x128xf32> to vector<8x128xf32>
    %30 = arith.mulf %28, %29 : vector<8x128xf32>
    %31 = vector.broadcast %15 : vector<8x1xf32> to vector<8x128xf32>
    %32 = arith.addf %30, %31 : vector<8x128xf32>
    %cst_17 = arith.constant dense<0.000000e+00> : vector<128xf32>
    %33 = vector.multi_reduction <add>, %32, %cst_17 [0] : vector<8x128xf32> to vector<128xf32>
    %34 = vector.shape_cast %33 : vector<128xf32> to vector<1x128xf32>
    %cst_18 = arith.constant 8.000000e+00 : f32
    %35 = vector.broadcast %cst_18 : f32 to vector<1x128xf32>
    %36 = arith.divf %34, %35 : vector<1x128xf32>
    %37 = vector.broadcast %36 : vector<1x128xf32> to vector<8x128xf32>
    %38 = arith.subf %32, %37 : vector<8x128xf32>
    %39 = arith.mulf %38, %38 : vector<8x128xf32>
    %cst_19 = arith.constant dense<0.000000e+00> : vector<128xf32>
    %40 = vector.multi_reduction <add>, %39, %cst_19 [0] : vector<8x128xf32> to vector<128xf32>
    %41 = vector.shape_cast %40 : vector<128xf32> to vector<1x128xf32>
    %cst_20 = arith.constant 8.000000e+00 : f32
    %42 = vector.broadcast %cst_20 : f32 to vector<1x128xf32>
    %43 = arith.divf %41, %42 : vector<1x128xf32>
    %44 = vector.broadcast %36 : vector<1x128xf32> to vector<8x128xf32>
    %45 = arith.subf %32, %44 : vector<8x128xf32>
    %46 = vector.broadcast %16 : vector<8x1xf32> to vector<8x128xf32>
    %47 = arith.mulf %46, %45 : vector<8x128xf32>
    %cst_21 = arith.constant 9.99999997E-7 : f32
    %48 = vector.broadcast %cst_21 : f32 to vector<1x128xf32>
    %49 = arith.addf %43, %48 : vector<1x128xf32>
    %50 = math.rsqrt %49 : vector<1x128xf32>
    %51 = vector.broadcast %50 : vector<1x128xf32> to vector<8x128xf32>
    %52 = arith.mulf %47, %51 : vector<8x128xf32>
    %53 = vector.broadcast %17 : vector<8x1xf32> to vector<8x128xf32>
    %54 = arith.addf %52, %53 : vector<8x128xf32>
    %55 = tpu.concatenate %2, %54 in 1 : vector<8x4xf32>, vector<8x128xf32> -> vector<8x132xf32>
    %56 = vector.extract_strided_slice %55 {offsets = [0, 0], sizes = [8, 128], strides = [1, 1]} : vector<8x132xf32> to vector<8x128xf32>
    %57 = vector.broadcast %4 : vector<1x128xf32> to vector<8x128xf32>
    %58 = arith.mulf %56, %57 : vector<8x128xf32>
    %59 = vector.extract_strided_slice %55 {offsets = [0, 1], sizes = [8, 128], strides = [1, 1]} : vector<8x132xf32> to vector<8x128xf32>
    %60 = vector.broadcast %6 : vector<1x128xf32> to vector<8x128xf32>
    %61 = arith.mulf %59, %60 : vector<8x128xf32>
    %62 = vector.extract_strided_slice %55 {offsets = [0, 2], sizes = [8, 128], strides = [1, 1]} : vector<8x132xf32> to vector<8x128xf32>
    %63 = vector.broadcast %8 : vector<1x128xf32> to vector<8x128xf32>
    %64 = arith.mulf %62, %63 : vector<8x128xf32>
    %65 = vector.extract_strided_slice %55 {offsets = [0, 3], sizes = [8, 128], strides = [1, 1]} : vector<8x132xf32> to vector<8x128xf32>
    %66 = vector.broadcast %10 : vector<1x128xf32> to vector<8x128xf32>
    %67 = arith.mulf %65, %66 : vector<8x128xf32>
    %68 = vector.extract_strided_slice %55 {offsets = [0, 4], sizes = [8, 128], strides = [1, 1]} : vector<8x132xf32> to vector<8x128xf32>
    %69 = vector.broadcast %12 : vector<1x128xf32> to vector<8x128xf32>
    %70 = arith.mulf %68, %69 : vector<8x128xf32>
    %71 = tpu.concatenate %58, %61, %64, %67, %70 in 0 : vector<8x128xf32>, vector<8x128xf32>, vector<8x128xf32>, vector<8x128xf32>, vector<8x128xf32> -> vector<40x128xf32>
    %c0_22 = arith.constant 0 : index
    %c0_23 = arith.constant 0 : index
    %c0_24 = arith.constant 0 : index
    %72 = vector.load %arg7[%c0_22, %c0_23, %c0_24] : memref<3x16x40xf32, #tpu.memory_space<vmem>>, vector<1x16x40xf32>
    %73 = vector.shape_cast %72 : vector<1x16x40xf32> to vector<16x40xf32>
    %cst_25 = arith.constant dense<0.000000e+00> : vector<16x128xf32>
    %74 = tpu.matmul %73, %71, %cst_25 {dimension_numbers = #tpu.dot_dimension_numbers<[1], [0], [0], [1], [0, 0, 1, 1], [], []>} : vector<16x40xf32>, vector<40x128xf32>, vector<16x128xf32> -> vector<16x128xf32>
    %75 = vector.extract_strided_slice %74 {offsets = [0, 0], sizes = [8, 128], strides = [1, 1]} : vector<16x128xf32> to vector<8x128xf32>
    %76 = vector.broadcast %22 : vector<8x1xf32> to vector<8x128xf32>
    %77 = arith.addf %75, %76 : vector<8x128xf32>
    %78 = vector.extract_strided_slice %74 {offsets = [8, 0], sizes = [8, 128], strides = [1, 1]} : vector<16x128xf32> to vector<8x128xf32>
    %79 = vector.broadcast %23 : vector<8x1xf32> to vector<8x128xf32>
    %80 = arith.addf %78, %79 : vector<8x128xf32>
    %c0_26 = arith.constant 0 : index
    %c0_27 = arith.constant 0 : index
    %c0_28 = arith.constant 0 : index
    %81 = vector.load %arg8[%c0_26, %c0_27, %c0_28] : memref<3x8x8xf32, #tpu.memory_space<vmem>>, vector<1x8x8xf32>
    %82 = vector.shape_cast %81 : vector<1x8x8xf32> to vector<8x8xf32>
    %cst_29 = arith.constant dense<0.000000e+00> : vector<8x128xf32>
    %83 = tpu.matmul %82, %54, %cst_29 {dimension_numbers = #tpu.dot_dimension_numbers<[1], [0], [0], [1], [0, 0, 1, 1], [], []>} : vector<8x8xf32>, vector<8x128xf32>, vector<8x128xf32> -> vector<8x128xf32>
    %84 = vector.broadcast %24 : vector<8x1xf32> to vector<8x128xf32>
    %85 = arith.addf %83, %84 : vector<8x128xf32>
    %cst_30 = arith.constant dense<0.000000e+00> : vector<128x128xf32>
    %86 = tpu.matmul %77, %80, %cst_30 {dimension_numbers = #tpu.dot_dimension_numbers<[0], [0], [1], [1], [0, 1, 1, 1], [], []>} : vector<8x128xf32>, vector<8x128xf32>, vector<128x128xf32> -> vector<128x128xf32>
    %cst_31 = arith.constant 0.353553385 : f32
    %87 = vector.broadcast %cst_31 : f32 to vector<128x128xf32>
    %88 = arith.mulf %86, %87 : vector<128x128xf32>
    %89 = arith.addf %88, %1 : vector<128x128xf32>
    %cst_32 = arith.constant dense<0xFF800000> : vector<128xf32>
    %90 = vector.multi_reduction <maximumf>, %89, %cst_32 [1] : vector<128x128xf32> to vector<128xf32>
    %91 = vector.shape_cast %90 : vector<128xf32> to vector<128x1xf32>
    %92 = vector.broadcast %91 : vector<128x1xf32> to vector<128x128xf32>
    %93 = arith.subf %89, %92 : vector<128x128xf32>
    %94 = math.exp %93 : vector<128x128xf32>
    %cst_33 = arith.constant dense<0.000000e+00> : vector<128xf32>
    %95 = vector.multi_reduction <add>, %94, %cst_33 [1] : vector<128x128xf32> to vector<128xf32>
    %96 = vector.shape_cast %95 : vector<128xf32> to vector<128x1xf32>
    %97 = tpu.reciprocal %96 : vector<128x1xf32> -> vector<128x1xf32>
    %98 = vector.broadcast %97 : vector<128x1xf32> to vector<128x128xf32>
    %99 = arith.mulf %94, %98 : vector<128x128xf32>
    %cst_34 = arith.constant dense<0.000000e+00> : vector<8x128xf32>
    %100 = tpu.matmul %85, %99, %cst_34 {dimension_numbers = #tpu.dot_dimension_numbers<[1], [1], [0], [0], [0, 0, 1, 0], [], []>} : vector<8x128xf32>, vector<128x128xf32>, vector<8x128xf32> -> vector<8x128xf32>
    %101 = arith.addf %54, %100 : vector<8x128xf32>
    %cst_35 = arith.constant dense<0.000000e+00> : vector<128xf32>
    %102 = vector.multi_reduction <add>, %101, %cst_35 [0] : vector<8x128xf32> to vector<128xf32>
    %103 = vector.shape_cast %102 : vector<128xf32> to vector<1x128xf32>
    %cst_36 = arith.constant 8.000000e+00 : f32
    %104 = vector.broadcast %cst_36 : f32 to vector<1x128xf32>
    %105 = arith.divf %103, %104 : vector<1x128xf32>
    %106 = vector.broadcast %105 : vector<1x128xf32> to vector<8x128xf32>
    %107 = arith.subf %101, %106 : vector<8x128xf32>
    %108 = arith.mulf %107, %107 : vector<8x128xf32>
    %cst_37 = arith.constant dense<0.000000e+00> : vector<128xf32>
    %109 = vector.multi_reduction <add>, %108, %cst_37 [0] : vector<8x128xf32> to vector<128xf32>
    %110 = vector.shape_cast %109 : vector<128xf32> to vector<1x128xf32>
    %cst_38 = arith.constant 8.000000e+00 : f32
    %111 = vector.broadcast %cst_38 : f32 to vector<1x128xf32>
    %112 = arith.divf %110, %111 : vector<1x128xf32>
    %113 = vector.broadcast %105 : vector<1x128xf32> to vector<8x128xf32>
    %114 = arith.subf %101, %113 : vector<8x128xf32>
    %115 = vector.broadcast %18 : vector<8x1xf32> to vector<8x128xf32>
    %116 = arith.mulf %115, %114 : vector<8x128xf32>
    %cst_39 = arith.constant 9.99999997E-7 : f32
    %117 = vector.broadcast %cst_39 : f32 to vector<1x128xf32>
    %118 = arith.addf %112, %117 : vector<1x128xf32>
    %119 = math.rsqrt %118 : vector<1x128xf32>
    %120 = vector.broadcast %119 : vector<1x128xf32> to vector<8x128xf32>
    %121 = arith.mulf %116, %120 : vector<8x128xf32>
    %122 = vector.broadcast %19 : vector<8x1xf32> to vector<8x128xf32>
    %123 = arith.addf %121, %122 : vector<8x128xf32>
    %c0_40 = arith.constant 0 : index
    %c0_41 = arith.constant 0 : index
    %c0_42 = arith.constant 0 : index
    %124 = vector.load %arg9[%c0_40, %c0_41, %c0_42] : memref<3x8x8xf32, #tpu.memory_space<vmem>>, vector<1x8x8xf32>
    %125 = vector.shape_cast %124 : vector<1x8x8xf32> to vector<8x8xf32>
    %cst_43 = arith.constant dense<0.000000e+00> : vector<8x128xf32>
    %126 = tpu.matmul %125, %123, %cst_43 {dimension_numbers = #tpu.dot_dimension_numbers<[1], [0], [0], [1], [0, 0, 1, 1], [], []>} : vector<8x8xf32>, vector<8x128xf32>, vector<8x128xf32> -> vector<8x128xf32>
    %127 = vector.broadcast %25 : vector<8x1xf32> to vector<8x128xf32>
    %128 = arith.addf %126, %127 : vector<8x128xf32>
    %cst_44 = arith.constant 0.000000e+00 : f32
    %129 = vector.broadcast %cst_44 : f32 to vector<8x128xf32>
    %130 = arith.maximumf %128, %129 : vector<8x128xf32>
    %c0_45 = arith.constant 0 : index
    %c0_46 = arith.constant 0 : index
    %c0_47 = arith.constant 0 : index
    %131 = vector.load %arg10[%c0_45, %c0_46, %c0_47] : memref<3x8x8xf32, #tpu.memory_space<vmem>>, vector<1x8x8xf32>
    %132 = vector.shape_cast %131 : vector<1x8x8xf32> to vector<8x8xf32>
    %cst_48 = arith.constant dense<0.000000e+00> : vector<8x128xf32>
    %133 = tpu.matmul %132, %130, %cst_48 {dimension_numbers = #tpu.dot_dimension_numbers<[1], [0], [0], [1], [0, 0, 1, 1], [], []>} : vector<8x8xf32>, vector<8x128xf32>, vector<8x128xf32> -> vector<8x128xf32>
    %134 = arith.addf %101, %133 : vector<8x128xf32>
    %135 = vector.broadcast %26 : vector<8x1xf32> to vector<8x128xf32>
    %136 = arith.addf %134, %135 : vector<8x128xf32>
    %cst_49 = arith.constant dense<0.000000e+00> : vector<128xf32>
    %137 = vector.multi_reduction <add>, %136, %cst_49 [0] : vector<8x128xf32> to vector<128xf32>
    %138 = vector.shape_cast %137 : vector<128xf32> to vector<1x128xf32>
    %cst_50 = arith.constant 8.000000e+00 : f32
    %139 = vector.broadcast %cst_50 : f32 to vector<1x128xf32>
    %140 = arith.divf %138, %139 : vector<1x128xf32>
    %141 = vector.broadcast %140 : vector<1x128xf32> to vector<8x128xf32>
    %142 = arith.subf %136, %141 : vector<8x128xf32>
    %143 = arith.mulf %142, %142 : vector<8x128xf32>
    %cst_51 = arith.constant dense<0.000000e+00> : vector<128xf32>
    %144 = vector.multi_reduction <add>, %143, %cst_51 [0] : vector<8x128xf32> to vector<128xf32>
    %145 = vector.shape_cast %144 : vector<128xf32> to vector<1x128xf32>
    %cst_52 = arith.constant 8.000000e+00 : f32
    %146 = vector.broadcast %cst_52 : f32 to vector<1x128xf32>
    %147 = arith.divf %145, %146 : vector<1x128xf32>
    %148 = vector.broadcast %140 : vector<1x128xf32> to vector<8x128xf32>
    %149 = arith.subf %136, %148 : vector<8x128xf32>
    %150 = vector.broadcast %20 : vector<8x1xf32> to vector<8x128xf32>
    %151 = arith.mulf %150, %149 : vector<8x128xf32>
    %cst_53 = arith.constant 9.99999997E-7 : f32
    %152 = vector.broadcast %cst_53 : f32 to vector<1x128xf32>
    %153 = arith.addf %147, %152 : vector<1x128xf32>
    %154 = math.rsqrt %153 : vector<1x128xf32>
    %155 = vector.broadcast %154 : vector<1x128xf32> to vector<8x128xf32>
    %156 = arith.mulf %151, %155 : vector<8x128xf32>
    %157 = vector.broadcast %21 : vector<8x1xf32> to vector<8x128xf32>
    %158 = arith.addf %156, %157 : vector<8x128xf32>
    %c0_54 = arith.constant 0 : index
    %c0_55 = arith.constant 0 : index
    %159 = vector.load %arg2[%c0_54, %c0_55] : memref<8x128xf32, #tpu.memory_space<vmem>>, vector<8x128xf32>
    %160 = arith.addf %158, %159 : vector<8x128xf32>
    %c1_56 = arith.constant 1 : index
    %c0_57 = arith.constant 0 : index
    %c0_58 = arith.constant 0 : index
    %161 = vector.load %arg5[%c1_56, %c0_57, %c0_58] : memref<3x8x13xf32, #tpu.memory_space<vmem>>, vector<1x8x13xf32>
    %162 = vector.shape_cast %161 : vector<1x8x13xf32> to vector<8x13xf32>
    %163 = vector.extract_strided_slice %162 {offsets = [0, 0], sizes = [8, 1], strides = [1, 1]} : vector<8x13xf32> to vector<8x1xf32>
    %164 = vector.extract_strided_slice %162 {offsets = [0, 1], sizes = [8, 1], strides = [1, 1]} : vector<8x13xf32> to vector<8x1xf32>
    %165 = vector.extract_strided_slice %162 {offsets = [0, 2], sizes = [8, 1], strides = [1, 1]} : vector<8x13xf32> to vector<8x1xf32>
    %166 = vector.extract_strided_slice %162 {offsets = [0, 3], sizes = [8, 1], strides = [1, 1]} : vector<8x13xf32> to vector<8x1xf32>
    %167 = vector.extract_strided_slice %162 {offsets = [0, 4], sizes = [8, 1], strides = [1, 1]} : vector<8x13xf32> to vector<8x1xf32>
    %168 = vector.extract_strided_slice %162 {offsets = [0, 5], sizes = [8, 1], strides = [1, 1]} : vector<8x13xf32> to vector<8x1xf32>
    %169 = vector.extract_strided_slice %162 {offsets = [0, 6], sizes = [8, 1], strides = [1, 1]} : vector<8x13xf32> to vector<8x1xf32>
    %170 = vector.extract_strided_slice %162 {offsets = [0, 7], sizes = [8, 1], strides = [1, 1]} : vector<8x13xf32> to vector<8x1xf32>
    %171 = vector.extract_strided_slice %162 {offsets = [0, 8], sizes = [8, 1], strides = [1, 1]} : vector<8x13xf32> to vector<8x1xf32>
    %172 = vector.extract_strided_slice %162 {offsets = [0, 9], sizes = [8, 1], strides = [1, 1]} : vector<8x13xf32> to vector<8x1xf32>
    %173 = vector.extract_strided_slice %162 {offsets = [0, 10], sizes = [8, 1], strides = [1, 1]} : vector<8x13xf32> to vector<8x1xf32>
    %174 = vector.extract_strided_slice %162 {offsets = [0, 11], sizes = [8, 1], strides = [1, 1]} : vector<8x13xf32> to vector<8x1xf32>
    %c0_59 = arith.constant 0 : index
    %c0_60 = arith.constant 0 : index
    %c0_61 = arith.constant 0 : index
    %175 = vector.load %arg6[%c0_59, %c0_60, %c0_61] : memref<2x8x8xf32, #tpu.memory_space<vmem>>, vector<1x8x8xf32>
    %176 = vector.shape_cast %175 : vector<1x8x8xf32> to vector<8x8xf32>
    %cst_62 = arith.constant dense<0.000000e+00> : vector<8x128xf32>
    %177 = tpu.matmul %176, %160, %cst_62 {dimension_numbers = #tpu.dot_dimension_numbers<[1], [0], [0], [1], [0, 0, 1, 1], [], []>} : vector<8x8xf32>, vector<8x128xf32>, vector<8x128xf32> -> vector<8x128xf32>
    %178 = vector.broadcast %163 : vector<8x1xf32> to vector<8x128xf32>
    %179 = arith.addf %177, %178 : vector<8x128xf32>
    %cst_63 = arith.constant dense<0.000000e+00> : vector<128xf32>
    %180 = vector.multi_reduction <add>, %179, %cst_63 [0] : vector<8x128xf32> to vector<128xf32>
    %181 = vector.shape_cast %180 : vector<128xf32> to vector<1x128xf32>
    %cst_64 = arith.constant 8.000000e+00 : f32
    %182 = vector.broadcast %cst_64 : f32 to vector<1x128xf32>
    %183 = arith.divf %181, %182 : vector<1x128xf32>
    %184 = vector.broadcast %183 : vector<1x128xf32> to vector<8x128xf32>
    %185 = arith.subf %179, %184 : vector<8x128xf32>
    %186 = arith.mulf %185, %185 : vector<8x128xf32>
    %cst_65 = arith.constant dense<0.000000e+00> : vector<128xf32>
    %187 = vector.multi_reduction <add>, %186, %cst_65 [0] : vector<8x128xf32> to vector<128xf32>
    %188 = vector.shape_cast %187 : vector<128xf32> to vector<1x128xf32>
    %cst_66 = arith.constant 8.000000e+00 : f32
    %189 = vector.broadcast %cst_66 : f32 to vector<1x128xf32>
    %190 = arith.divf %188, %189 : vector<1x128xf32>
    %191 = vector.broadcast %183 : vector<1x128xf32> to vector<8x128xf32>
    %192 = arith.subf %179, %191 : vector<8x128xf32>
    %193 = vector.broadcast %164 : vector<8x1xf32> to vector<8x128xf32>
    %194 = arith.mulf %193, %192 : vector<8x128xf32>
    %cst_67 = arith.constant 9.99999997E-7 : f32
    %195 = vector.broadcast %cst_67 : f32 to vector<1x128xf32>
    %196 = arith.addf %190, %195 : vector<1x128xf32>
    %197 = math.rsqrt %196 : vector<1x128xf32>
    %198 = vector.broadcast %197 : vector<1x128xf32> to vector<8x128xf32>
    %199 = arith.mulf %194, %198 : vector<8x128xf32>
    %200 = vector.broadcast %165 : vector<8x1xf32> to vector<8x128xf32>
    %201 = arith.addf %199, %200 : vector<8x128xf32>
    %202 = tpu.concatenate %2, %201 in 1 : vector<8x4xf32>, vector<8x128xf32> -> vector<8x132xf32>
    %203 = vector.extract_strided_slice %202 {offsets = [0, 0], sizes = [8, 128], strides = [1, 1]} : vector<8x132xf32> to vector<8x128xf32>
    %204 = vector.broadcast %4 : vector<1x128xf32> to vector<8x128xf32>
    %205 = arith.mulf %203, %204 : vector<8x128xf32>
    %206 = vector.extract_strided_slice %202 {offsets = [0, 1], sizes = [8, 128], strides = [1, 1]} : vector<8x132xf32> to vector<8x128xf32>
    %207 = vector.broadcast %6 : vector<1x128xf32> to vector<8x128xf32>
    %208 = arith.mulf %206, %207 : vector<8x128xf32>
    %209 = vector.extract_strided_slice %202 {offsets = [0, 2], sizes = [8, 128], strides = [1, 1]} : vector<8x132xf32> to vector<8x128xf32>
    %210 = vector.broadcast %8 : vector<1x128xf32> to vector<8x128xf32>
    %211 = arith.mulf %209, %210 : vector<8x128xf32>
    %212 = vector.extract_strided_slice %202 {offsets = [0, 3], sizes = [8, 128], strides = [1, 1]} : vector<8x132xf32> to vector<8x128xf32>
    %213 = vector.broadcast %10 : vector<1x128xf32> to vector<8x128xf32>
    %214 = arith.mulf %212, %213 : vector<8x128xf32>
    %215 = vector.extract_strided_slice %202 {offsets = [0, 4], sizes = [8, 128], strides = [1, 1]} : vector<8x132xf32> to vector<8x128xf32>
    %216 = vector.broadcast %12 : vector<1x128xf32> to vector<8x128xf32>
    %217 = arith.mulf %215, %216 : vector<8x128xf32>
    %218 = tpu.concatenate %205, %208, %211, %214, %217 in 0 : vector<8x128xf32>, vector<8x128xf32>, vector<8x128xf32>, vector<8x128xf32>, vector<8x128xf32> -> vector<40x128xf32>
    %c1_68 = arith.constant 1 : index
    %c0_69 = arith.constant 0 : index
    %c0_70 = arith.constant 0 : index
    %219 = vector.load %arg7[%c1_68, %c0_69, %c0_70] : memref<3x16x40xf32, #tpu.memory_space<vmem>>, vector<1x16x40xf32>
    %220 = vector.shape_cast %219 : vector<1x16x40xf32> to vector<16x40xf32>
    %cst_71 = arith.constant dense<0.000000e+00> : vector<16x128xf32>
    %221 = tpu.matmul %220, %218, %cst_71 {dimension_numbers = #tpu.dot_dimension_numbers<[1], [0], [0], [1], [0, 0, 1, 1], [], []>} : vector<16x40xf32>, vector<40x128xf32>, vector<16x128xf32> -> vector<16x128xf32>
    %222 = vector.extract_strided_slice %221 {offsets = [0, 0], sizes = [8, 128], strides = [1, 1]} : vector<16x128xf32> to vector<8x128xf32>
    %223 = vector.broadcast %170 : vector<8x1xf32> to vector<8x128xf32>
    %224 = arith.addf %222, %223 : vector<8x128xf32>
    %225 = vector.extract_strided_slice %221 {offsets = [8, 0], sizes = [8, 128], strides = [1, 1]} : vector<16x128xf32> to vector<8x128xf32>
    %226 = vector.broadcast %171 : vector<8x1xf32> to vector<8x128xf32>
    %227 = arith.addf %225, %226 : vector<8x128xf32>
    %c1_72 = arith.constant 1 : index
    %c0_73 = arith.constant 0 : index
    %c0_74 = arith.constant 0 : index
    %228 = vector.load %arg8[%c1_72, %c0_73, %c0_74] : memref<3x8x8xf32, #tpu.memory_space<vmem>>, vector<1x8x8xf32>
    %229 = vector.shape_cast %228 : vector<1x8x8xf32> to vector<8x8xf32>
    %cst_75 = arith.constant dense<0.000000e+00> : vector<8x128xf32>
    %230 = tpu.matmul %229, %201, %cst_75 {dimension_numbers = #tpu.dot_dimension_numbers<[1], [0], [0], [1], [0, 0, 1, 1], [], []>} : vector<8x8xf32>, vector<8x128xf32>, vector<8x128xf32> -> vector<8x128xf32>
    %231 = vector.broadcast %172 : vector<8x1xf32> to vector<8x128xf32>
    %232 = arith.addf %230, %231 : vector<8x128xf32>
    %cst_76 = arith.constant dense<0.000000e+00> : vector<128x128xf32>
    %233 = tpu.matmul %224, %227, %cst_76 {dimension_numbers = #tpu.dot_dimension_numbers<[0], [0], [1], [1], [0, 1, 1, 1], [], []>} : vector<8x128xf32>, vector<8x128xf32>, vector<128x128xf32> -> vector<128x128xf32>
    %cst_77 = arith.constant 0.353553385 : f32
    %234 = vector.broadcast %cst_77 : f32 to vector<128x128xf32>
    %235 = arith.mulf %233, %234 : vector<128x128xf32>
    %236 = arith.addf %235, %1 : vector<128x128xf32>
    %cst_78 = arith.constant dense<0xFF800000> : vector<128xf32>
    %237 = vector.multi_reduction <maximumf>, %236, %cst_78 [1] : vector<128x128xf32> to vector<128xf32>
    %238 = vector.shape_cast %237 : vector<128xf32> to vector<128x1xf32>
    %239 = vector.broadcast %238 : vector<128x1xf32> to vector<128x128xf32>
    %240 = arith.subf %236, %239 : vector<128x128xf32>
    %241 = math.exp %240 : vector<128x128xf32>
    %cst_79 = arith.constant dense<0.000000e+00> : vector<128xf32>
    %242 = vector.multi_reduction <add>, %241, %cst_79 [1] : vector<128x128xf32> to vector<128xf32>
    %243 = vector.shape_cast %242 : vector<128xf32> to vector<128x1xf32>
    %244 = tpu.reciprocal %243 : vector<128x1xf32> -> vector<128x1xf32>
    %245 = vector.broadcast %244 : vector<128x1xf32> to vector<128x128xf32>
    %246 = arith.mulf %241, %245 : vector<128x128xf32>
    %cst_80 = arith.constant dense<0.000000e+00> : vector<8x128xf32>
    %247 = tpu.matmul %232, %246, %cst_80 {dimension_numbers = #tpu.dot_dimension_numbers<[1], [1], [0], [0], [0, 0, 1, 0], [], []>} : vector<8x128xf32>, vector<128x128xf32>, vector<8x128xf32> -> vector<8x128xf32>
    %248 = arith.addf %201, %247 : vector<8x128xf32>
    %cst_81 = arith.constant dense<0.000000e+00> : vector<128xf32>
    %249 = vector.multi_reduction <add>, %248, %cst_81 [0] : vector<8x128xf32> to vector<128xf32>
    %250 = vector.shape_cast %249 : vector<128xf32> to vector<1x128xf32>
    %cst_82 = arith.constant 8.000000e+00 : f32
    %251 = vector.broadcast %cst_82 : f32 to vector<1x128xf32>
    %252 = arith.divf %250, %251 : vector<1x128xf32>
    %253 = vector.broadcast %252 : vector<1x128xf32> to vector<8x128xf32>
    %254 = arith.subf %248, %253 : vector<8x128xf32>
    %255 = arith.mulf %254, %254 : vector<8x128xf32>
    %cst_83 = arith.constant dense<0.000000e+00> : vector<128xf32>
    %256 = vector.multi_reduction <add>, %255, %cst_83 [0] : vector<8x128xf32> to vector<128xf32>
    %257 = vector.shape_cast %256 : vector<128xf32> to vector<1x128xf32>
    %cst_84 = arith.constant 8.000000e+00 : f32
    %258 = vector.broadcast %cst_84 : f32 to vector<1x128xf32>
    %259 = arith.divf %257, %258 : vector<1x128xf32>
    %260 = vector.broadcast %252 : vector<1x128xf32> to vector<8x128xf32>
    %261 = arith.subf %248, %260 : vector<8x128xf32>
    %262 = vector.broadcast %166 : vector<8x1xf32> to vector<8x128xf32>
    %263 = arith.mulf %262, %261 : vector<8x128xf32>
    %cst_85 = arith.constant 9.99999997E-7 : f32
    %264 = vector.broadcast %cst_85 : f32 to vector<1x128xf32>
    %265 = arith.addf %259, %264 : vector<1x128xf32>
    %266 = math.rsqrt %265 : vector<1x128xf32>
    %267 = vector.broadcast %266 : vector<1x128xf32> to vector<8x128xf32>
    %268 = arith.mulf %263, %267 : vector<8x128xf32>
    %269 = vector.broadcast %167 : vector<8x1xf32> to vector<8x128xf32>
    %270 = arith.addf %268, %269 : vector<8x128xf32>
    %c1_86 = arith.constant 1 : index
    %c0_87 = arith.constant 0 : index
    %c0_88 = arith.constant 0 : index
    %271 = vector.load %arg9[%c1_86, %c0_87, %c0_88] : memref<3x8x8xf32, #tpu.memory_space<vmem>>, vector<1x8x8xf32>
    %272 = vector.shape_cast %271 : vector<1x8x8xf32> to vector<8x8xf32>
    %cst_89 = arith.constant dense<0.000000e+00> : vector<8x128xf32>
    %273 = tpu.matmul %272, %270, %cst_89 {dimension_numbers = #tpu.dot_dimension_numbers<[1], [0], [0], [1], [0, 0, 1, 1], [], []>} : vector<8x8xf32>, vector<8x128xf32>, vector<8x128xf32> -> vector<8x128xf32>
    %274 = vector.broadcast %173 : vector<8x1xf32> to vector<8x128xf32>
    %275 = arith.addf %273, %274 : vector<8x128xf32>
    %cst_90 = arith.constant 0.000000e+00 : f32
    %276 = vector.broadcast %cst_90 : f32 to vector<8x128xf32>
    %277 = arith.maximumf %275, %276 : vector<8x128xf32>
    %c1_91 = arith.constant 1 : index
    %c0_92 = arith.constant 0 : index
    %c0_93 = arith.constant 0 : index
    %278 = vector.load %arg10[%c1_91, %c0_92, %c0_93] : memref<3x8x8xf32, #tpu.memory_space<vmem>>, vector<1x8x8xf32>
    %279 = vector.shape_cast %278 : vector<1x8x8xf32> to vector<8x8xf32>
    %cst_94 = arith.constant dense<0.000000e+00> : vector<8x128xf32>
    %280 = tpu.matmul %279, %277, %cst_94 {dimension_numbers = #tpu.dot_dimension_numbers<[1], [0], [0], [1], [0, 0, 1, 1], [], []>} : vector<8x8xf32>, vector<8x128xf32>, vector<8x128xf32> -> vector<8x128xf32>
    %281 = arith.addf %248, %280 : vector<8x128xf32>
    %282 = vector.broadcast %174 : vector<8x1xf32> to vector<8x128xf32>
    %283 = arith.addf %281, %282 : vector<8x128xf32>
    %cst_95 = arith.constant dense<0.000000e+00> : vector<128xf32>
    %284 = vector.multi_reduction <add>, %283, %cst_95 [0] : vector<8x128xf32> to vector<128xf32>
    %285 = vector.shape_cast %284 : vector<128xf32> to vector<1x128xf32>
    %cst_96 = arith.constant 8.000000e+00 : f32
    %286 = vector.broadcast %cst_96 : f32 to vector<1x128xf32>
    %287 = arith.divf %285, %286 : vector<1x128xf32>
    %288 = vector.broadcast %287 : vector<1x128xf32> to vector<8x128xf32>
    %289 = arith.subf %283, %288 : vector<8x128xf32>
    %290 = arith.mulf %289, %289 : vector<8x128xf32>
    %cst_97 = arith.constant dense<0.000000e+00> : vector<128xf32>
    %291 = vector.multi_reduction <add>, %290, %cst_97 [0] : vector<8x128xf32> to vector<128xf32>
    %292 = vector.shape_cast %291 : vector<128xf32> to vector<1x128xf32>
    %cst_98 = arith.constant 8.000000e+00 : f32
    %293 = vector.broadcast %cst_98 : f32 to vector<1x128xf32>
    %294 = arith.divf %292, %293 : vector<1x128xf32>
    %295 = vector.broadcast %287 : vector<1x128xf32> to vector<8x128xf32>
    %296 = arith.subf %283, %295 : vector<8x128xf32>
    %297 = vector.broadcast %168 : vector<8x1xf32> to vector<8x128xf32>
    %298 = arith.mulf %297, %296 : vector<8x128xf32>
    %cst_99 = arith.constant 9.99999997E-7 : f32
    %299 = vector.broadcast %cst_99 : f32 to vector<1x128xf32>
    %300 = arith.addf %294, %299 : vector<1x128xf32>
    %301 = math.rsqrt %300 : vector<1x128xf32>
    %302 = vector.broadcast %301 : vector<1x128xf32> to vector<8x128xf32>
    %303 = arith.mulf %298, %302 : vector<8x128xf32>
    %304 = vector.broadcast %169 : vector<8x1xf32> to vector<8x128xf32>
    %305 = arith.addf %303, %304 : vector<8x128xf32>
    %c2_100 = arith.constant 2 : index
    %c0_101 = arith.constant 0 : index
    %c0_102 = arith.constant 0 : index
    %306 = vector.load %arg5[%c2_100, %c0_101, %c0_102] : memref<3x8x13xf32, #tpu.memory_space<vmem>>, vector<1x8x13xf32>
    %307 = vector.shape_cast %306 : vector<1x8x13xf32> to vector<8x13xf32>
    %308 = vector.extract_strided_slice %307 {offsets = [0, 0], sizes = [8, 1], strides = [1, 1]} : vector<8x13xf32> to vector<8x1xf32>
    %309 = vector.extract_strided_slice %307 {offsets = [0, 1], sizes = [8, 1], strides = [1, 1]} : vector<8x13xf32> to vector<8x1xf32>
    %310 = vector.extract_strided_slice %307 {offsets = [0, 2], sizes = [8, 1], strides = [1, 1]} : vector<8x13xf32> to vector<8x1xf32>
    %311 = vector.extract_strided_slice %307 {offsets = [0, 3], sizes = [8, 1], strides = [1, 1]} : vector<8x13xf32> to vector<8x1xf32>
    %312 = vector.extract_strided_slice %307 {offsets = [0, 4], sizes = [8, 1], strides = [1, 1]} : vector<8x13xf32> to vector<8x1xf32>
    %313 = vector.extract_strided_slice %307 {offsets = [0, 5], sizes = [8, 1], strides = [1, 1]} : vector<8x13xf32> to vector<8x1xf32>
    %314 = vector.extract_strided_slice %307 {offsets = [0, 6], sizes = [8, 1], strides = [1, 1]} : vector<8x13xf32> to vector<8x1xf32>
    %315 = vector.extract_strided_slice %307 {offsets = [0, 7], sizes = [8, 1], strides = [1, 1]} : vector<8x13xf32> to vector<8x1xf32>
    %316 = vector.extract_strided_slice %307 {offsets = [0, 8], sizes = [8, 1], strides = [1, 1]} : vector<8x13xf32> to vector<8x1xf32>
    %317 = vector.extract_strided_slice %307 {offsets = [0, 9], sizes = [8, 1], strides = [1, 1]} : vector<8x13xf32> to vector<8x1xf32>
    %318 = vector.extract_strided_slice %307 {offsets = [0, 10], sizes = [8, 1], strides = [1, 1]} : vector<8x13xf32> to vector<8x1xf32>
    %319 = vector.extract_strided_slice %307 {offsets = [0, 11], sizes = [8, 1], strides = [1, 1]} : vector<8x13xf32> to vector<8x1xf32>
    %c1_103 = arith.constant 1 : index
    %c0_104 = arith.constant 0 : index
    %c0_105 = arith.constant 0 : index
    %320 = vector.load %arg6[%c1_103, %c0_104, %c0_105] : memref<2x8x8xf32, #tpu.memory_space<vmem>>, vector<1x8x8xf32>
    %321 = vector.shape_cast %320 : vector<1x8x8xf32> to vector<8x8xf32>
    %cst_106 = arith.constant dense<0.000000e+00> : vector<8x128xf32>
    %322 = tpu.matmul %321, %305, %cst_106 {dimension_numbers = #tpu.dot_dimension_numbers<[1], [0], [0], [1], [0, 0, 1, 1], [], []>} : vector<8x8xf32>, vector<8x128xf32>, vector<8x128xf32> -> vector<8x128xf32>
    %323 = vector.broadcast %308 : vector<8x1xf32> to vector<8x128xf32>
    %324 = arith.addf %322, %323 : vector<8x128xf32>
    %cst_107 = arith.constant dense<0.000000e+00> : vector<128xf32>
    %325 = vector.multi_reduction <add>, %324, %cst_107 [0] : vector<8x128xf32> to vector<128xf32>
    %326 = vector.shape_cast %325 : vector<128xf32> to vector<1x128xf32>
    %cst_108 = arith.constant 8.000000e+00 : f32
    %327 = vector.broadcast %cst_108 : f32 to vector<1x128xf32>
    %328 = arith.divf %326, %327 : vector<1x128xf32>
    %329 = vector.broadcast %328 : vector<1x128xf32> to vector<8x128xf32>
    %330 = arith.subf %324, %329 : vector<8x128xf32>
    %331 = arith.mulf %330, %330 : vector<8x128xf32>
    %cst_109 = arith.constant dense<0.000000e+00> : vector<128xf32>
    %332 = vector.multi_reduction <add>, %331, %cst_109 [0] : vector<8x128xf32> to vector<128xf32>
    %333 = vector.shape_cast %332 : vector<128xf32> to vector<1x128xf32>
    %cst_110 = arith.constant 8.000000e+00 : f32
    %334 = vector.broadcast %cst_110 : f32 to vector<1x128xf32>
    %335 = arith.divf %333, %334 : vector<1x128xf32>
    %336 = vector.broadcast %328 : vector<1x128xf32> to vector<8x128xf32>
    %337 = arith.subf %324, %336 : vector<8x128xf32>
    %338 = vector.broadcast %309 : vector<8x1xf32> to vector<8x128xf32>
    %339 = arith.mulf %338, %337 : vector<8x128xf32>
    %cst_111 = arith.constant 9.99999997E-7 : f32
    %340 = vector.broadcast %cst_111 : f32 to vector<1x128xf32>
    %341 = arith.addf %335, %340 : vector<1x128xf32>
    %342 = math.rsqrt %341 : vector<1x128xf32>
    %343 = vector.broadcast %342 : vector<1x128xf32> to vector<8x128xf32>
    %344 = arith.mulf %339, %343 : vector<8x128xf32>
    %345 = vector.broadcast %310 : vector<8x1xf32> to vector<8x128xf32>
    %346 = arith.addf %344, %345 : vector<8x128xf32>
    %347 = tpu.concatenate %2, %346 in 1 : vector<8x4xf32>, vector<8x128xf32> -> vector<8x132xf32>
    %348 = vector.extract_strided_slice %347 {offsets = [0, 0], sizes = [8, 128], strides = [1, 1]} : vector<8x132xf32> to vector<8x128xf32>
    %349 = vector.broadcast %4 : vector<1x128xf32> to vector<8x128xf32>
    %350 = arith.mulf %348, %349 : vector<8x128xf32>
    %351 = vector.extract_strided_slice %347 {offsets = [0, 1], sizes = [8, 128], strides = [1, 1]} : vector<8x132xf32> to vector<8x128xf32>
    %352 = vector.broadcast %6 : vector<1x128xf32> to vector<8x128xf32>
    %353 = arith.mulf %351, %352 : vector<8x128xf32>
    %354 = vector.extract_strided_slice %347 {offsets = [0, 2], sizes = [8, 128], strides = [1, 1]} : vector<8x132xf32> to vector<8x128xf32>
    %355 = vector.broadcast %8 : vector<1x128xf32> to vector<8x128xf32>
    %356 = arith.mulf %354, %355 : vector<8x128xf32>
    %357 = vector.extract_strided_slice %347 {offsets = [0, 3], sizes = [8, 128], strides = [1, 1]} : vector<8x132xf32> to vector<8x128xf32>
    %358 = vector.broadcast %10 : vector<1x128xf32> to vector<8x128xf32>
    %359 = arith.mulf %357, %358 : vector<8x128xf32>
    %360 = vector.extract_strided_slice %347 {offsets = [0, 4], sizes = [8, 128], strides = [1, 1]} : vector<8x132xf32> to vector<8x128xf32>
    %361 = vector.broadcast %12 : vector<1x128xf32> to vector<8x128xf32>
    %362 = arith.mulf %360, %361 : vector<8x128xf32>
    %363 = tpu.concatenate %350, %353, %356, %359, %362 in 0 : vector<8x128xf32>, vector<8x128xf32>, vector<8x128xf32>, vector<8x128xf32>, vector<8x128xf32> -> vector<40x128xf32>
    %c2_112 = arith.constant 2 : index
    %c0_113 = arith.constant 0 : index
    %c0_114 = arith.constant 0 : index
    %364 = vector.load %arg7[%c2_112, %c0_113, %c0_114] : memref<3x16x40xf32, #tpu.memory_space<vmem>>, vector<1x16x40xf32>
    %365 = vector.shape_cast %364 : vector<1x16x40xf32> to vector<16x40xf32>
    %cst_115 = arith.constant dense<0.000000e+00> : vector<16x128xf32>
    %366 = tpu.matmul %365, %363, %cst_115 {dimension_numbers = #tpu.dot_dimension_numbers<[1], [0], [0], [1], [0, 0, 1, 1], [], []>} : vector<16x40xf32>, vector<40x128xf32>, vector<16x128xf32> -> vector<16x128xf32>
    %367 = vector.extract_strided_slice %366 {offsets = [0, 0], sizes = [8, 128], strides = [1, 1]} : vector<16x128xf32> to vector<8x128xf32>
    %368 = vector.broadcast %315 : vector<8x1xf32> to vector<8x128xf32>
    %369 = arith.addf %367, %368 : vector<8x128xf32>
    %370 = vector.extract_strided_slice %366 {offsets = [8, 0], sizes = [8, 128], strides = [1, 1]} : vector<16x128xf32> to vector<8x128xf32>
    %371 = vector.broadcast %316 : vector<8x1xf32> to vector<8x128xf32>
    %372 = arith.addf %370, %371 : vector<8x128xf32>
    %c2_116 = arith.constant 2 : index
    %c0_117 = arith.constant 0 : index
    %c0_118 = arith.constant 0 : index
    %373 = vector.load %arg8[%c2_116, %c0_117, %c0_118] : memref<3x8x8xf32, #tpu.memory_space<vmem>>, vector<1x8x8xf32>
    %374 = vector.shape_cast %373 : vector<1x8x8xf32> to vector<8x8xf32>
    %cst_119 = arith.constant dense<0.000000e+00> : vector<8x128xf32>
    %375 = tpu.matmul %374, %346, %cst_119 {dimension_numbers = #tpu.dot_dimension_numbers<[1], [0], [0], [1], [0, 0, 1, 1], [], []>} : vector<8x8xf32>, vector<8x128xf32>, vector<8x128xf32> -> vector<8x128xf32>
    %376 = vector.broadcast %317 : vector<8x1xf32> to vector<8x128xf32>
    %377 = arith.addf %375, %376 : vector<8x128xf32>
    %cst_120 = arith.constant dense<0.000000e+00> : vector<128x128xf32>
    %378 = tpu.matmul %369, %372, %cst_120 {dimension_numbers = #tpu.dot_dimension_numbers<[0], [0], [1], [1], [0, 1, 1, 1], [], []>} : vector<8x128xf32>, vector<8x128xf32>, vector<128x128xf32> -> vector<128x128xf32>
    %cst_121 = arith.constant 0.353553385 : f32
    %379 = vector.broadcast %cst_121 : f32 to vector<128x128xf32>
    %380 = arith.mulf %378, %379 : vector<128x128xf32>
    %381 = arith.addf %380, %1 : vector<128x128xf32>
    %cst_122 = arith.constant dense<0xFF800000> : vector<128xf32>
    %382 = vector.multi_reduction <maximumf>, %381, %cst_122 [1] : vector<128x128xf32> to vector<128xf32>
    %383 = vector.shape_cast %382 : vector<128xf32> to vector<128x1xf32>
    %384 = vector.broadcast %383 : vector<128x1xf32> to vector<128x128xf32>
    %385 = arith.subf %381, %384 : vector<128x128xf32>
    %386 = math.exp %385 : vector<128x128xf32>
    %cst_123 = arith.constant dense<0.000000e+00> : vector<128xf32>
    %387 = vector.multi_reduction <add>, %386, %cst_123 [1] : vector<128x128xf32> to vector<128xf32>
    %388 = vector.shape_cast %387 : vector<128xf32> to vector<128x1xf32>
    %389 = tpu.reciprocal %388 : vector<128x1xf32> -> vector<128x1xf32>
    %390 = vector.broadcast %389 : vector<128x1xf32> to vector<128x128xf32>
    %391 = arith.mulf %386, %390 : vector<128x128xf32>
    %cst_124 = arith.constant dense<0.000000e+00> : vector<8x128xf32>
    %392 = tpu.matmul %377, %391, %cst_124 {dimension_numbers = #tpu.dot_dimension_numbers<[1], [1], [0], [0], [0, 0, 1, 0], [], []>} : vector<8x128xf32>, vector<128x128xf32>, vector<8x128xf32> -> vector<8x128xf32>
    %393 = arith.addf %346, %392 : vector<8x128xf32>
    %cst_125 = arith.constant dense<0.000000e+00> : vector<128xf32>
    %394 = vector.multi_reduction <add>, %393, %cst_125 [0] : vector<8x128xf32> to vector<128xf32>
    %395 = vector.shape_cast %394 : vector<128xf32> to vector<1x128xf32>
    %cst_126 = arith.constant 8.000000e+00 : f32
    %396 = vector.broadcast %cst_126 : f32 to vector<1x128xf32>
    %397 = arith.divf %395, %396 : vector<1x128xf32>
    %398 = vector.broadcast %397 : vector<1x128xf32> to vector<8x128xf32>
    %399 = arith.subf %393, %398 : vector<8x128xf32>
    %400 = arith.mulf %399, %399 : vector<8x128xf32>
    %cst_127 = arith.constant dense<0.000000e+00> : vector<128xf32>
    %401 = vector.multi_reduction <add>, %400, %cst_127 [0] : vector<8x128xf32> to vector<128xf32>
    %402 = vector.shape_cast %401 : vector<128xf32> to vector<1x128xf32>
    %cst_128 = arith.constant 8.000000e+00 : f32
    %403 = vector.broadcast %cst_128 : f32 to vector<1x128xf32>
    %404 = arith.divf %402, %403 : vector<1x128xf32>
    %405 = vector.broadcast %397 : vector<1x128xf32> to vector<8x128xf32>
    %406 = arith.subf %393, %405 : vector<8x128xf32>
    %407 = vector.broadcast %311 : vector<8x1xf32> to vector<8x128xf32>
    %408 = arith.mulf %407, %406 : vector<8x128xf32>
    %cst_129 = arith.constant 9.99999997E-7 : f32
    %409 = vector.broadcast %cst_129 : f32 to vector<1x128xf32>
    %410 = arith.addf %404, %409 : vector<1x128xf32>
    %411 = math.rsqrt %410 : vector<1x128xf32>
    %412 = vector.broadcast %411 : vector<1x128xf32> to vector<8x128xf32>
    %413 = arith.mulf %408, %412 : vector<8x128xf32>
    %414 = vector.broadcast %312 : vector<8x1xf32> to vector<8x128xf32>
    %415 = arith.addf %413, %414 : vector<8x128xf32>
    %c2_130 = arith.constant 2 : index
    %c0_131 = arith.constant 0 : index
    %c0_132 = arith.constant 0 : index
    %416 = vector.load %arg9[%c2_130, %c0_131, %c0_132] : memref<3x8x8xf32, #tpu.memory_space<vmem>>, vector<1x8x8xf32>
    %417 = vector.shape_cast %416 : vector<1x8x8xf32> to vector<8x8xf32>
    %cst_133 = arith.constant dense<0.000000e+00> : vector<8x128xf32>
    %418 = tpu.matmul %417, %415, %cst_133 {dimension_numbers = #tpu.dot_dimension_numbers<[1], [0], [0], [1], [0, 0, 1, 1], [], []>} : vector<8x8xf32>, vector<8x128xf32>, vector<8x128xf32> -> vector<8x128xf32>
    %419 = vector.broadcast %318 : vector<8x1xf32> to vector<8x128xf32>
    %420 = arith.addf %418, %419 : vector<8x128xf32>
    %cst_134 = arith.constant 0.000000e+00 : f32
    %421 = vector.broadcast %cst_134 : f32 to vector<8x128xf32>
    %422 = arith.maximumf %420, %421 : vector<8x128xf32>
    %c2_135 = arith.constant 2 : index
    %c0_136 = arith.constant 0 : index
    %c0_137 = arith.constant 0 : index
    %423 = vector.load %arg10[%c2_135, %c0_136, %c0_137] : memref<3x8x8xf32, #tpu.memory_space<vmem>>, vector<1x8x8xf32>
    %424 = vector.shape_cast %423 : vector<1x8x8xf32> to vector<8x8xf32>
    %cst_138 = arith.constant dense<0.000000e+00> : vector<8x128xf32>
    %425 = tpu.matmul %424, %422, %cst_138 {dimension_numbers = #tpu.dot_dimension_numbers<[1], [0], [0], [1], [0, 0, 1, 1], [], []>} : vector<8x8xf32>, vector<8x128xf32>, vector<8x128xf32> -> vector<8x128xf32>
    %426 = arith.addf %393, %425 : vector<8x128xf32>
    %427 = vector.broadcast %319 : vector<8x1xf32> to vector<8x128xf32>
    %428 = arith.addf %426, %427 : vector<8x128xf32>
    %cst_139 = arith.constant dense<0.000000e+00> : vector<128xf32>
    %429 = vector.multi_reduction <add>, %428, %cst_139 [0] : vector<8x128xf32> to vector<128xf32>
    %430 = vector.shape_cast %429 : vector<128xf32> to vector<1x128xf32>
    %cst_140 = arith.constant 8.000000e+00 : f32
    %431 = vector.broadcast %cst_140 : f32 to vector<1x128xf32>
    %432 = arith.divf %430, %431 : vector<1x128xf32>
    %433 = vector.broadcast %432 : vector<1x128xf32> to vector<8x128xf32>
    %434 = arith.subf %428, %433 : vector<8x128xf32>
    %435 = arith.mulf %434, %434 : vector<8x128xf32>
    %cst_141 = arith.constant dense<0.000000e+00> : vector<128xf32>
    %436 = vector.multi_reduction <add>, %435, %cst_141 [0] : vector<8x128xf32> to vector<128xf32>
    %437 = vector.shape_cast %436 : vector<128xf32> to vector<1x128xf32>
    %cst_142 = arith.constant 8.000000e+00 : f32
    %438 = vector.broadcast %cst_142 : f32 to vector<1x128xf32>
    %439 = arith.divf %437, %438 : vector<1x128xf32>
    %440 = vector.broadcast %432 : vector<1x128xf32> to vector<8x128xf32>
    %441 = arith.subf %428, %440 : vector<8x128xf32>
    %442 = vector.broadcast %313 : vector<8x1xf32> to vector<8x128xf32>
    %443 = arith.mulf %442, %441 : vector<8x128xf32>
    %cst_143 = arith.constant 9.99999997E-7 : f32
    %444 = vector.broadcast %cst_143 : f32 to vector<1x128xf32>
    %445 = arith.addf %439, %444 : vector<1x128xf32>
    %446 = math.rsqrt %445 : vector<1x128xf32>
    %447 = vector.broadcast %446 : vector<1x128xf32> to vector<8x128xf32>
    %448 = arith.mulf %443, %447 : vector<8x128xf32>
    %449 = vector.broadcast %314 : vector<8x1xf32> to vector<8x128xf32>
    %450 = arith.addf %448, %449 : vector<8x128xf32>
    %c0_144 = arith.constant 0 : index
    %c0_145 = arith.constant 0 : index
    %451 = vector.load %arg11[%c0_144, %c0_145] : memref<8x2xf32, #tpu.memory_space<vmem>>, vector<8x1xf32>
    %c0_146 = arith.constant 0 : index
    %c1_147 = arith.constant 1 : index
    %452 = vector.load %arg11[%c0_146, %c1_147] : memref<8x2xf32, #tpu.memory_space<vmem>>, vector<8x1xf32>
    %cst_148 = arith.constant dense<0.000000e+00> : vector<128xf32>
    %453 = vector.multi_reduction <add>, %450, %cst_148 [0] : vector<8x128xf32> to vector<128xf32>
    %454 = vector.shape_cast %453 : vector<128xf32> to vector<1x128xf32>
    %cst_149 = arith.constant 8.000000e+00 : f32
    %455 = vector.broadcast %cst_149 : f32 to vector<1x128xf32>
    %456 = arith.divf %454, %455 : vector<1x128xf32>
    %457 = vector.broadcast %456 : vector<1x128xf32> to vector<8x128xf32>
    %458 = arith.subf %450, %457 : vector<8x128xf32>
    %459 = arith.mulf %458, %458 : vector<8x128xf32>
    %cst_150 = arith.constant dense<0.000000e+00> : vector<128xf32>
    %460 = vector.multi_reduction <add>, %459, %cst_150 [0] : vector<8x128xf32> to vector<128xf32>
    %461 = vector.shape_cast %460 : vector<128xf32> to vector<1x128xf32>
    %cst_151 = arith.constant 8.000000e+00 : f32
    %462 = vector.broadcast %cst_151 : f32 to vector<1x128xf32>
    %463 = arith.divf %461, %462 : vector<1x128xf32>
    %464 = vector.broadcast %456 : vector<1x128xf32> to vector<8x128xf32>
    %465 = arith.subf %450, %464 : vector<8x128xf32>
    %466 = vector.broadcast %451 : vector<8x1xf32> to vector<8x128xf32>
    %467 = arith.mulf %466, %465 : vector<8x128xf32>
    %cst_152 = arith.constant 9.99999997E-7 : f32
    %468 = vector.broadcast %cst_152 : f32 to vector<1x128xf32>
    %469 = arith.addf %463, %468 : vector<1x128xf32>
    %470 = math.rsqrt %469 : vector<1x128xf32>
    %471 = vector.broadcast %470 : vector<1x128xf32> to vector<8x128xf32>
    %472 = arith.mulf %467, %471 : vector<8x128xf32>
    %473 = vector.broadcast %452 : vector<8x1xf32> to vector<8x128xf32>
    %474 = arith.addf %472, %473 : vector<8x128xf32>
    %c0_153 = arith.constant 0 : index
    %c0_154 = arith.constant 0 : index
    %475 = vector.load %arg12[%c0_153, %c0_154] : memref<8x128xf32, #tpu.memory_space<vmem>>, vector<8x128xf32>
    tpu.vector_store %arg12[%c0_153, %c0_154], %474 {strides = array<i32>} : memref<8x128xf32, #tpu.memory_space<vmem>>, vector<8x128xf32>,
    return
  }
  func.func @transform_0(%arg0: i32) -> (i32, i32) {
    %c0_i32 = arith.constant 0 : i32
    %c0_i32_0 = arith.constant 0 : i32
    return %c0_i32, %arg0 : i32, i32
  }
  func.func @transform_1(%arg0: i32) -> (i32, i32) {
    %c0_i32 = arith.constant 0 : i32
    %c0_i32_0 = arith.constant 0 : i32
    return %c0_i32, %arg0 : i32, i32
  }
  func.func @transform_2(%arg0: i32) -> (i32, i32) {
    %c0_i32 = arith.constant 0 : i32
    %c0_i32_0 = arith.constant 0 : i32
    %c0_i32_1 = arith.constant 0 : i32
    return %c0_i32, %c0_i32_0 : i32, i32
  }
  func.func @transform_3(%arg0: i32) -> (i32, i32, i32) {
    %c0_i32 = arith.constant 0 : i32
    %c0_i32_0 = arith.constant 0 : i32
    %c0_i32_1 = arith.constant 0 : i32
    %c0_i32_2 = arith.constant 0 : i32
    return %c0_i32, %c0_i32_0, %c0_i32_1 : i32, i32, i32
  }
  func.func @transform_4(%arg0: i32) -> (i32, i32, i32) {
    %c0_i32 = arith.constant 0 : i32
    %c0_i32_0 = arith.constant 0 : i32
    %c0_i32_1 = arith.constant 0 : i32
    %c0_i32_2 = arith.constant 0 : i32
    return %c0_i32, %c0_i32_0, %c0_i32_1 : i32, i32, i32
  }
  func.func @transform_5(%arg0: i32) -> (i32, i32, i32) {
    %c0_i32 = arith.constant 0 : i32
    %c0_i32_0 = arith.constant 0 : i32
    %c0_i32_1 = arith.constant 0 : i32
    %c0_i32_2 = arith.constant 0 : i32
    return %c0_i32, %c0_i32_0, %c0_i32_1 : i32, i32, i32
  }
  func.func @transform_6(%arg0: i32) -> (i32, i32, i32) {
    %c0_i32 = arith.constant 0 : i32
    %c0_i32_0 = arith.constant 0 : i32
    %c0_i32_1 = arith.constant 0 : i32
    %c0_i32_2 = arith.constant 0 : i32
    return %c0_i32, %c0_i32_0, %c0_i32_1 : i32, i32, i32
  }
  func.func @transform_7(%arg0: i32) -> (i32, i32, i32) {
    %c0_i32 = arith.constant 0 : i32
    %c0_i32_0 = arith.constant 0 : i32
    %c0_i32_1 = arith.constant 0 : i32
    %c0_i32_2 = arith.constant 0 : i32
    return %c0_i32, %c0_i32_0, %c0_i32_1 : i32, i32, i32
  }
  func.func @transform_8(%arg0: i32) -> (i32, i32, i32) {
    %c0_i32 = arith.constant 0 : i32
    %c0_i32_0 = arith.constant 0 : i32
    %c0_i32_1 = arith.constant 0 : i32
    %c0_i32_2 = arith.constant 0 : i32
    return %c0_i32, %c0_i32_0, %c0_i32_1 : i32, i32, i32
  }
  func.func @transform_9(%arg0: i32) -> (i32, i32, i32) {
    %c0_i32 = arith.constant 0 : i32
    %c0_i32_0 = arith.constant 0 : i32
    %c0_i32_1 = arith.constant 0 : i32
    %c0_i32_2 = arith.constant 0 : i32
    return %c0_i32, %c0_i32_0, %c0_i32_1 : i32, i32, i32
  }
  func.func @transform_10(%arg0: i32) -> (i32, i32) {
    %c0_i32 = arith.constant 0 : i32
    %c0_i32_0 = arith.constant 0 : i32
    %c0_i32_1 = arith.constant 0 : i32
    return %c0_i32, %c0_i32_0 : i32, i32
  }
  func.func @transform_11(%arg0: i32) -> (i32, i32) {
    %c0_i32 = arith.constant 0 : i32
    %c0_i32_0 = arith.constant 0 : i32
    return %c0_i32, %arg0 : i32, i32
  }
}

</mosaic_0001>

<bundles_post_ra>
// kernel: tpu_custom_call.1
= control target key start
LH: loop header
LB: loop body
LE: loop exit
PB: predicated region body
PF: predicated region fallthrough
CT: control target
= control target key end

     0   :  { %16 = vsyncpa [#allocation3], 0  ;;  %s5407_s0 = inlined_call_operand.vmem [shape: f32[1,128], index: 0, kind: input, shape index: {}]   ;;  %s5408_s1 = inlined_call_operand.hbm [shape: f32[8,128], index: 1, kind: input, shape index: {}]   ;;  %s5409_s2 = inlined_call_operand.hbm [shape: f32[128,128], index: 2, kind: input, shape index: {}]   ;;  %s5410_s3 = inlined_call_operand.hbm [shape: f32[5,1,128], index: 3, kind: input, shape index: {}]   ;;  %s5411_s4 = inlined_call_operand.vmem [shape: f32[3,8,13], index: 4, kind: input, shape index: {}]   ;;  %s5412_s5 = inlined_call_operand.hbm [shape: f32[2,8,8], index: 5, kind: input, shape index: {}]   ;;  %s5413_s6 = inlined_call_operand.hbm [shape: f32[3,16,40], index: 6, kind: input, shape index: {}]   ;;  %s5414_s7 = inlined_call_operand.hbm [shape: f32[3,8,8], index: 7, kind: input, shape index: {}]   ;;  %s5415_s8 = inlined_call_operand.hbm [shape: f32[3,8,8], index: 8, kind: input, shape index: {}]   ;;  %s5416_s9 = inlined_call_operand.hbm [shape: f32[3,8,8], index: 9, kind: input, shape index: {}]   ;;  %s5417_s10 = inlined_call_operand.vmem [shape: f32[8,2], index: 10, kind: input, shape index: {}]   ;;  %s5418_s11 = inlined_call_operand.hbm [shape: f32[8,128], index: 11, kind: output, shape index: {}]  }
   0x1   :  { %17 = vsyncpa [#allocation6], 0 }
   0x2   :  { %18 = vsyncpa [#allocation9], 0 }
   0x3   :  { %19 = vsyncpa [#allocation12], 0 }
   0x4   :  { %20 = vsyncpa [#allocation15], 0 }
   0x5   :  { %21 = vsyncpa [#allocation4], 0  ;;  %s4416_s17 = smov [#allocation5]   ;;  %s4206_s21 = scalar_lea.hbm %s5409_s2, 2048 }
   0x6   :  { %s39_s18 = sshll.u32 %s4416_s17, 4  ;;  %p4207_p0 = scmp.ne.s32.totalorder %s5409_s2, %s4206_s21  ;;  %s40_s18 = int_to_ptr.vmem [resolvable:$true] %s39_s18 }
   0x7   :  { %p4210_p1 = scmp.lt.u32.totalorder %s4206_s21, %s5409_s2 }
   0x9   :  { %p4212_p2 = pnand %p4210_p1, %p4207_p0 }
   0xb   :  { %4215 = shalt.err (!%p4212_p2)
}
   0xc   :  { %s4216_s26 = scalar_lea.vmem %s40_s18, 2048  ;;  %p4221_p4 = scmp.lt.s32.totalorder %s40_s18, %s40_s18 }
   0xd   :  { %p4217_p3 = scmp.ne.s32.totalorder %s40_s18, %s4216_s26  ;;  %p4222_p5 = scmp.lt.s32.totalorder %s4216_s26, %s4216_s26 }
   0xf   :  { %p4223_p6 = por %p4222_p5, %p4221_p4 }
  0x11   :  { %p4224_p7 = pnand %p4223_p6, %p4217_p3 }
  0x13   :  { %4227 = shalt.err (!%p4224_p7)
}
  0x14   :  { %s4417_s27 = smov 128   ;;  %s4418_s28 = smov 8  }
  0x15   :  { %45 = dma.hbm_to_vmem [thread:$0]  %s5409_s2, 2048, %s40_s18, [#allocation6], %s4417_s27, %s4417_s27, %s4418_s28  }
  0x16   :  { %s4419_s12 = smov [#allocation8]   ;;  %s4420_s14 = smov [#allocation11]  }
  0x17   :  { %s65_s13 = sshll.u32 %s4419_s12, 4  ;;  %s89_s15 = sshll.u32 %s4420_s14, 4  ;;  %s66_s13 = int_to_ptr.vmem [resolvable:$true] %s65_s13  ;;  %s90_s15 = int_to_ptr.vmem [resolvable:$true] %s89_s15 }
  0x18   :  { %s4228_s19 = scalar_lea.hbm %s5412_s5, 256 }
  0x19   :  { %p4229_p8 = scmp.ne.s32.totalorder %s5412_s5, %s4228_s19  ;;  %p4232_p9 = scmp.lt.u32.totalorder %s4228_s19, %s5412_s5 }
  0x1b   :  { %p4234_p10 = pnand %p4232_p9, %p4229_p8 }
  0x1d   :  { %4237 = shalt.err (!%p4234_p10)
}
  0x1e   :  { %s4238_s2 = scalar_lea.vmem %s66_s13, 256  ;;  %p4243_p12 = scmp.lt.s32.totalorder %s66_s13, %s66_s13 }
  0x1f   :  { %p4239_p11 = scmp.ne.s32.totalorder %s66_s13, %s4238_s2  ;;  %p4244_p13 = scmp.lt.s32.totalorder %s4238_s2, %s4238_s2 }
  0x21   :  { %p4245_p0 = por %p4244_p13, %p4243_p12 }
  0x23   :  { %p4246_p1 = pnand %p4245_p0, %p4239_p11 }
  0x25   :  { %4249 = shalt.err (!%p4246_p1)
}
  0x26   :  { %71 = dma.hbm_to_vmem [thread:$0]  %s5412_s5, 256, %s66_s13, [#allocation9], %s4417_s27, %s4417_s27, %s4418_s28  }
  0x27   :  { %s4250_s29 = scalar_lea.hbm %s5414_s7, 384 }
  0x28   :  { %p4251_p2 = scmp.ne.s32.totalorder %s5414_s7, %s4250_s29  ;;  %p4254_p3 = scmp.lt.u32.totalorder %s4250_s29, %s5414_s7 }
  0x2a   :  { %p4256_p4 = pnand %p4254_p3, %p4251_p2 }
  0x2c   :  { %4259 = shalt.err (!%p4256_p4)
}
  0x2d   :  { %s4260_s17 = scalar_lea.vmem %s90_s15, 384  ;;  %p4265_p6 = scmp.lt.s32.totalorder %s90_s15, %s90_s15 }
  0x2e   :  { %p4261_p5 = scmp.ne.s32.totalorder %s90_s15, %s4260_s17  ;;  %p4266_p7 = scmp.lt.s32.totalorder %s4260_s17, %s4260_s17 }
  0x30   :  { %p4267_p8 = por %p4266_p7, %p4265_p6 }
  0x32   :  { %p4268_p9 = pnand %p4267_p8, %p4261_p5 }
  0x34   :  { %4271 = shalt.err (!%p4268_p9)
}
  0x35   :  { %95 = dma.hbm_to_vmem [thread:$0]  %s5414_s7, 384, %s90_s15, [#allocation12], %s4417_s27, %s4417_s27, %s4418_s28  }
  0x36   :  { %s4421_s19 = smov [#allocation2]   ;;  %s4422_s21 = smov [#allocation7]  }
  0x37   :  { %s30_s20 = sshll.u32 %s4421_s19, 4  ;;  %s51_s22 = sshll.u32 %s4422_s21, 4  ;;  %s31_s20 = int_to_ptr.vmem [resolvable:$true] %s30_s20  ;;  %s52_s22 = int_to_ptr.vmem [resolvable:$true] %s51_s22 }
  0x38   :  { %s4272_s18 = scalar_lea.hbm %s5408_s1, 128 }
  0x39   :  { %p4273_p10 = scmp.ne.s32.totalorder %s5408_s1, %s4272_s18  ;;  %p4276_p11 = scmp.lt.u32.totalorder %s4272_s18, %s5408_s1 }
  0x3b   :  { %p4278_p12 = pnand %p4276_p11, %p4273_p10 }
  0x3d   :  { %4281 = shalt.err (!%p4278_p12)
}
  0x3e   :  { %s4282_s7 = scalar_lea.vmem %s31_s20, 128  ;;  %p4287_p0 = scmp.lt.s32.totalorder %s31_s20, %s31_s20 }
  0x3f   :  { %p4283_p13 = scmp.ne.s32.totalorder %s31_s20, %s4282_s7  ;;  %p4288_p1 = scmp.lt.s32.totalorder %s4282_s7, %s4282_s7 }
  0x41   :  { %p4289_p2 = por %p4288_p1, %p4287_p0 }
  0x43   :  { %p4290_p3 = pnand %p4289_p2, %p4283_p13 }
  0x45   :  { %4293 = shalt.err (!%p4290_p3)
}
  0x46   :  { %33 = dma.hbm_to_vmem [thread:$0]  %s5408_s1, 128, %s31_s20, [#allocation3]  }
  0x47   :  { %s4294_s16 = scalar_lea.hbm %s5410_s3, 80 }
  0x48   :  { %p4295_p4 = scmp.ne.s32.totalorder %s5410_s3, %s4294_s16  ;;  %p4298_p5 = scmp.lt.u32.totalorder %s4294_s16, %s5410_s3 }
  0x4a   :  { %p4300_p6 = pnand %p4298_p5, %p4295_p4 }
  0x4c   :  { %4303 = shalt.err (!%p4300_p6)
}
  0x4d   :  { %s4304_s21 = scalar_lea.vmem %s52_s22, 80  ;;  %s4308_s23 = scalar_lea.vmem %s52_s22, 96 }
  0x4e   :  { %p4305_p7 = scmp.ne.s32.totalorder %s52_s22, %s4304_s21  ;;  %p4309_p8 = scmp.lt.s32.totalorder %s52_s22, %s52_s22 }
  0x4f   :  { %p4310_p9 = scmp.lt.s32.totalorder %s4308_s23, %s4304_s21 }
  0x51   :  { %p4311_p10 = por %p4310_p9, %p4309_p8 }
  0x53   :  { %p4312_p11 = pnand %p4311_p10, %p4305_p7 }
  0x55   :  { %4315 = shalt.err (!%p4312_p11)
}
  0x56   :  { %s4423_s1 = smov 16   ;;  %s4424_s20 = smov 1  }
  0x57   :  { %57 = dma.hbm_to_vmem [thread:$0]  %s5410_s3, 80, %s52_s22, [#allocation6], %s4423_s1, %s4423_s1, %s4424_s20  }
  0x58   :  { %s4425_s24 = smov [#allocation10]   ;;  %s4426_s26 = smov [#allocation13]  }
  0x59   :  { %s77_s25 = sshll.u32 %s4425_s24, 4  ;;  %s101_s29 = sshll.u32 %s4426_s26, 4  ;;  %s78_s25 = int_to_ptr.vmem [resolvable:$true] %s77_s25  ;;  %s102_s29 = int_to_ptr.vmem [resolvable:$true] %s101_s29 }
  0x5a   :  { %s4316_s30 = scalar_lea.hbm %s5413_s6, 768 }
  0x5b   :  { %p4317_p12 = scmp.ne.s32.totalorder %s5413_s6, %s4316_s30  ;;  %p4320_p13 = scmp.lt.u32.totalorder %s4316_s30, %s5413_s6 }
  0x5d   :  { %p4322_p0 = pnand %p4320_p13, %p4317_p12 }
  0x5f   :  { %4325 = shalt.err (!%p4322_p0)
}
  0x60   :  { %s4326_s3 = scalar_lea.vmem %s78_s25, 768  ;;  %p4331_p2 = scmp.lt.s32.totalorder %s78_s25, %s78_s25 }
  0x61   :  { %p4327_p1 = scmp.ne.s32.totalorder %s78_s25, %s4326_s3  ;;  %p4332_p3 = scmp.lt.s32.totalorder %s4326_s3, %s4326_s3 }
  0x63   :  { %p4333_p4 = por %p4332_p3, %p4331_p2 }
  0x65   :  { %p4334_p5 = pnand %p4333_p4, %p4327_p1 }
  0x67   :  { %4337 = shalt.err (!%p4334_p5)
}
  0x68   :  { %83 = dma.hbm_to_vmem [thread:$0]  %s5413_s6, 768, %s78_s25, [#allocation9], %s4417_s27, %s4417_s27, %s4418_s28  }
  0x69   :  { %s4338_s21 = scalar_lea.hbm %s5415_s8, 384 }
  0x6a   :  { %p4339_p6 = scmp.ne.s32.totalorder %s5415_s8, %s4338_s21  ;;  %p4342_p7 = scmp.lt.u32.totalorder %s4338_s21, %s5415_s8 }
  0x6c   :  { %p4344_p8 = pnand %p4342_p7, %p4339_p6 }
  0x6e   :  { %4347 = shalt.err (!%p4344_p8)
}
  0x6f   :  { %s4348_s24 = scalar_lea.vmem %s102_s29, 384  ;;  %p4353_p10 = scmp.lt.s32.totalorder %s102_s29, %s102_s29 }
  0x70   :  { %p4349_p9 = scmp.ne.s32.totalorder %s102_s29, %s4348_s24  ;;  %p4354_p11 = scmp.lt.s32.totalorder %s4348_s24, %s4348_s24 }
  0x72   :  { %p4355_p12 = por %p4354_p11, %p4353_p10 }
  0x74   :  { %p4356_p13 = pnand %p4355_p12, %p4349_p9 }
  0x76   :  { %4359 = shalt.err (!%p4356_p13)
}
  0x77   :  { %107 = dma.hbm_to_vmem [thread:$0]  %s5415_s8, 384, %s102_s29, [#allocation12], %s4417_s27, %s4417_s27, %s4418_s28  }
  0x78   :  { %s4427_s26 = smov [#allocation14]   ;;  %s4360_s12 = scalar_lea.hbm %s5416_s9, 384 }
  0x79   :  { %s113_s7 = sshll.u32 %s4427_s26, 4  ;;  %p4361_p0 = scmp.ne.s32.totalorder %s5416_s9, %s4360_s12  ;;  %s114_s7 = int_to_ptr.vmem [resolvable:$true] %s113_s7 }
  0x7a   :  { %p4364_p1 = scmp.lt.u32.totalorder %s4360_s12, %s5416_s9 }
  0x7c   :  { %p4366_p2 = pnand %p4364_p1, %p4361_p0 }
  0x7e   :  { %4369 = shalt.err (!%p4366_p2)
}
  0x7f   :  { %s4370_s22 = scalar_lea.vmem %s114_s7, 384  ;;  %p4375_p4 = scmp.lt.s32.totalorder %s114_s7, %s114_s7 }
  0x80   :  { %p4371_p3 = scmp.ne.s32.totalorder %s114_s7, %s4370_s22  ;;  %p4376_p5 = scmp.lt.s32.totalorder %s4370_s22, %s4370_s22 }
  0x82   :  { %p4377_p6 = por %p4376_p5, %p4375_p4 }
  0x84   :  { %p4378_p7 = pnand %p4377_p6, %p4371_p3 }
  0x86   :  { %4381 = shalt.err (!%p4378_p7)
}
  0x87   :  { %119 = dma.hbm_to_vmem [thread:$0]  %s5416_s9, 384, %s114_s7, [#allocation15], %s4417_s27, %s4417_s27, %s4418_s28  }
  0x88   :  { %4404 = dma.done.wait [#allocation3], 128  }
  0x89   :  { %4405 = vsyncadd [#allocation3], 4294967168 }
  0x8a   :  { %4406 = dma.done.wait [#allocation6], 2128  }
  0x8b   :  { %4407 = vsyncadd [#allocation6], 4294965168 }
  0x8c   :  { %4408 = dma.done.wait [#allocation9], 1024  }
  0x8d   :  { %4409 = vsyncadd [#allocation9], 4294966272 }
  0x8e   :  { %4410 = dma.done.wait [#allocation12], 768  }
  0x8f   :  { %4411 = vsyncadd [#allocation12], 4294966528 }
  0x90   :  { %4412 = dma.done.wait [#allocation15], 384  }
  0x91   :  { %4413 = vsyncadd [#allocation15], 4294966912  ;;  %v4428_v0 = vmov 12   ;;  %v4429_v1 = vmov 1   ;;  %v4631_v2 = vld [vmem:[%s5411_s4] sm:$0xff]  ;;  %v4430_v3 = vmov 0  }
  0x92   :  { %3892 = vset.pattern.permute.xlu0 %v4428_v0  ;;  %3894 = vset.pattern.permute.xlu1 %v4429_v1  ;;  %v4431_v4 = vmov 2   ;;  %v3267_v5 = vld [vmem:[#allocation7 + $0x1] ss:$0 sm:$0xff]  ;;  %v3269_v6 = vld [vmem:[#allocation7 + $0x3] ss:$0 sm:$0xff]  ;;  %s4432_s9 = smov 3  }
  0x93   :  { %175 = vperm.xlu0 %3892, %v4631_v2   ;;  %208 = vperm.xlu1 %3894, %v4631_v2   ;;  %v3265_v8 = vld [vmem:[%s5407_s0] ss:$0 sm:$0xff]  ;;  %s4433_s0 = smov 4   ;;  %v3268_v35 = vld [vmem:[#allocation7 + $0x2] ss:$0 sm:$0xff]  ;;  %vm224_vm0 = vcmask 31744  }
  0x94   :  { %v3270_v36 = vld [vmem:[#allocation7 + $0x4] ss:$0 sm:$0xff]  ;;  %s4435_s19 = smov 127   ;;  %v309_v49 = vld [vmem:[#allocation10] sm:$0xff]  ;;  %vm311_vm1 = vcmask 326656   ;;  %s4436_s21 = smov 126  }
  0x95   :  { %3493 = vmatprep.mubr.msk.f32.mxu0 %vm311_vm1, %v309_v49  ;;  %s4437_s23 = smov 125   ;;  %v4438_v53 = vmov 7   ;;  %v4439_v55 = vmov 8   ;;  %s4440_s1 = smov 124   ;;  %v3266_v57 = vld [vmem:[#allocation7] ss:$0 sm:$0xff] }
  0x96   :  { %vm279_vm2 = vcmask 1039360   ;;  %vm288_vm3 = vcmask 1031168   ;;  %vm297_vm4 = vcmask 1022976   ;;  %vm306_vm5 = vcmask 1014784  }
  0x97   :  { %3893 = vset.pattern.permute.xlu0 %v4430_v3  ;;  %3895 = vset.pattern.permute.xlu1 %v4431_v4  ;;  %vm408_vm6 = vcmask 64512   ;;  %vm4442_vm7 = vmmov 0  }
  0x98   :  { %186 = vperm.xlu0 %3893, %v4631_v2   ;;  %216 = vperm.xlu1 %3895, %v4631_v2  }
  0x9c   :  { %238 = vrot.lane.b32.xlu0 %v3267_v5, %s4424_s20  ;;  %s4434_s20 = smov 2   ;;  %3911 = vset.pattern.permute.xlu1 %v4438_v53 }
  0x9d   :  { %3912 = vset.pattern.permute.xlu0 %v4439_v55 }
  0xa0   :  { %258 = vrot.lane.b32.xlu0 %v3269_v6, %s4432_s9 }
 0x112   :  { %v176_v7 = vpop.permute.xlu0 %175  ;;  %v209_v29 = vpop.permute.xlu1 %208 }
 0x113   :  { %v184_v9 = vmul.f32 %v3265_v8, %v176_v7 }
 0x117   :  { %v187_v10 = vpop.permute.xlu0 %186  ;;  %v217_v32 = vpop.permute.xlu1 %216 }
 0x118   :  { %v189_v11 = vadd.f32 %v187_v10, %v184_v9 }
 0x11a   :  { %v190_v12 = vrot.slane %v189_v11, 4 }
 0x11b   :  { %v4648_v37 = vpop.permute.xlu0 %238 }
 0x11c   :  { %v191_v13 = vadd.f32 %v190_v12, %v189_v11 }
 0x11e   :  { %v192_v14 = vrot.slane %v191_v13, 2 }
 0x11f   :  { %v4650_v39 = vpop.permute.xlu0 %258 }
 0x120   :  { %v193_v15 = vadd.f32 %v192_v14, %v191_v13 }
 0x122   :  { %v194_v16 = vrot.slane %v193_v15, 1 }
 0x124   :  { %v195_v17 = vadd.f32 %v194_v16, %v193_v15  ;;  %v310_v16 = vld [vmem:[#allocation10 + $0x8] sm:$0xff] }
 0x126   :  { %v197_v18 = vmul.f32 0.125, %v195_v17  ;;  %v4441_v17 = vmov 0.0  }
 0x128   :  { %v198_v19 = vsub.f32 %v189_v11, %v197_v18 }
 0x12a   :  { %v199_v20 = vmul.f32 %v198_v19, %v198_v19  ;;  %v211_v30 = vmul.f32 %v209_v29, %v198_v19 }
 0x12c   :  { %v200_v21 = vrot.slane %v199_v20, 4 }
 0x12e   :  { %v201_v22 = vadd.f32 %v200_v21, %v199_v20 }
 0x130   :  { %v202_v23 = vrot.slane %v201_v22, 2 }
 0x132   :  { %v203_v24 = vadd.f32 %v202_v23, %v201_v22 }
 0x134   :  { %v204_v25 = vrot.slane %v203_v24, 1 }
 0x136   :  { %v205_v26 = vadd.f32 %v204_v25, %v203_v24 }
 0x138   :  { %v206_v27 = vmul.f32 0.125, %v205_v26 }
 0x13a   :  { %v212_v28 = vadd.f32 1e-06, %v206_v27 }
 0x13c   :  { %3977 = vrsqrt.f32 %v212_v28 }
 0x146   :  { %v3978_v31 = vpop.eup %3977 }
 0x147   :  { %v214_v33 = vmul.f32 %v3978_v31, %v211_v30 }
 0x149   :  { %v4643_v34 = vadd.f32 %v217_v32, %v214_v33 }
 0x14b   :  { %221 = vrot.lane.b32.xlu1 %v4643_v34, %s4433_s0 }
 0x14f   :  { %248 = vrot.lane.b32.xlu1 %v3268_v35, %s4434_s20 }
 0x153   :  { %268 = vrot.lane.b32.xlu1 %v3270_v36, %s4433_s0 }
 0x1bd   :  { %v222_v38 = vpop.permute.xlu1 %221 }
 0x1be   :  { %v225_v40 = vsel %vm224_vm0, 0.0, %v222_v38  ;;  %v242_v41 = vmul.f32 %v4648_v37, %v222_v38  ;;  %v262_v46 = vmul.f32 %v4650_v39, %v222_v38 }
 0x1bf   :  { %v241_v42 = vmul.f32 %v4648_v37, %v225_v40  ;;  %v261_v45 = vmul.f32 %v4650_v39, %v225_v40  ;;  %v232_v61 = vmul.f32 %v3266_v57, %v225_v40 }
 0x1c1   :  { %v4655_v43 = vpop.permute.xlu1 %248  ;;  %v3896_v44 = vpack.i.bf16 %v242_v41, %v241_v42  ;;  %v3906_v52 = vpack.i.bf16 %v262_v46, %v261_v45  ;;  %v147_v46 = vld [vmem:[#allocation5] sm:$0xff] }
 0x1c2   :  { %v251_v47 = vmul.f32 %v4655_v43, %v225_v40  ;;  %v252_v48 = vmul.f32 %v4655_v43, %v222_v38 }
 0x1c3   :  { %3897 = vrot.lane.b32.xlu0 %v3896_v44, %s4435_s19 }
 0x1c4   :  { %v3901_v50 = vpack.i.bf16 %v252_v48, %v251_v47 }
 0x1c5   :  { %v4663_v51 = vpop.permute.xlu1 %268 }
 0x1c6   :  { %3902 = vrot.lane.b32.xlu1 %v3901_v50, %s4436_s21  ;;  %v271_v54 = vmul.f32 %v4663_v51, %v225_v40  ;;  %v272_v56 = vmul.f32 %v4663_v51, %v222_v38  ;;  %v4701_v50 = vld [vmem:[#allocation5 + $0x8] sm:$0xff] }
 0x1c7   :  { %3907 = vrot.lane.b32.xlu0 %v3906_v52, %s4437_s23 }
 0x1ca   :  { %302 = vrot.lane.b32.xlu1 %v271_v54, %s4440_s1 }
 0x1cb   :  { %304 = vrot.lane.b32.xlu0 %v272_v56, %s4440_s1  ;;  %v150_v56 = vld [vmem:[#allocation5 + $0x18] sm:$0xff] }
 0x1ce   :  { %394 = vperm.xlu1 %3911, %v4631_v2  }
 0x1cf   :  { %399 = vperm.xlu0 %3912, %v4631_v2  }
 0x235   :  { %v3898_v58 = vpop.permute.xlu0 %3897 }
 0x236   :  { %v3900_v59 = vunpack.i.h.bf16 %v3898_v58  ;;  %v3899_v60 = vunpack.i.l.bf16 %v3898_v58 }
 0x238   :  { %v3903_v62 = vpop.permute.xlu1 %3902  ;;  %v280_v63 = vsel %vm279_vm2, %v3899_v60, %v3900_v59  ;;  %v149_v59 = vld [vmem:[#allocation5 + $0x10] sm:$0xff] }
 0x239   :  { %v3905_v0 = vunpack.i.h.bf16 %v3903_v62  ;;  %v3904_v5 = vunpack.i.l.bf16 %v3903_v62  ;;  %v3908_v6 = vpop.permute.xlu0 %3907  ;;  %v3760_v7 = vpack.c.bf16 %v280_v63, %v232_v61 }
 0x23a   :  { %v3910_v8 = vunpack.i.h.bf16 %v3908_v6  ;;  %v3909_v9 = vunpack.i.l.bf16 %v3908_v6 }
 0x23b   :  { %3761 = vmatprep.subr.bf16.mxu0 %v3760_v7  ;;  %v289_v10 = vsel %vm288_vm3, %v3904_v5, %v3905_v0  ;;  %v152_v0 = vld [vmem:[#allocation5 + $0x28] sm:$0xff] }
 0x23c   :  { %3763 = vmatpush3.bf16.msra.mxu0 %v3760_v7  ;;  %v298_v11 = vsel %vm297_vm4, %v3909_v9, %v3910_v8  ;;  %v303_v12 = vpop.permute.xlu1 %302  ;;  %v4716_v9 = vld [vmem:[#allocation5 + $0x20] sm:$0xff] }
 0x23d   :  { %v305_v13 = vpop.permute.xlu0 %304  ;;  %v3764_v14 = vpack.c.bf16 %v298_v11, %v289_v10 }
 0x23e   :  { %v307_v15 = vsel %vm306_vm5, %v303_v12, %v305_v13  ;;  %v4722_v12 = vld [vmem:[#allocation5 + $0x38] sm:$0xff] }
 0x23f   :  { %3765 = vmatprep.subr.bf16.mxu0 %v3764_v14 }
 0x240   :  { %3767 = vmatpush3.bf16.msra.mxu0 %v3764_v14 }
 0x241   :  { %3491 = vmatprep.subr.mxu0 %v307_v15 }
 0x244   :  { %3492 = vmatpush3.msra.mxu0 %v307_v15 }
 0x245   :  { %3494 = vmatmul.mubr.msk.f32.vlgmr.msra.gmra.mrb[0].mxu0 %vm311_vm1, %v310_v16  ;;  %3496 = vmatprep.subr.mxu0 %v4441_v17 }
 0x246   :  { %3497 = vmatpush3.msra.mxu0 %v4643_v34  ;;  %3498 = vmatprep.mubr.msk.f32.mxu0 %vm4442_vm7, %v4441_v17 }
 0x247   :  { %3562 = vmatprep.subr.mxu0 %v4441_v17 }
 0x24d   :  { %v395_v19 = vpop.permute.xlu1 %394 }
 0x24e   :  { %v400_v18 = vpop.permute.xlu0 %399 }
 0x318   :  { %v3495_v20 = vpop.f32.mrb[0].mxu0 }
 0x319   :  { %v402_v21 = vadd.f32 %v3495_v20, %v400_v18  ;;  %v384_v22 = vpop.f32.mrb[1].mxu0  ;;  %v4728_v18 = vld [vmem:[#allocation5 + $0x30] sm:$0xff] }
 0x31a   :  { %v397_v23 = vadd.f32 %v395_v19, %v384_v22 }
 0x31b   :  { %3501 = vmatprep.subr.mxu1 %v402_v21 }
 0x31c   :  { %3502 = vmatpush3.msra.mxu1 %v402_v21  ;;  %482 = vxpose.xlu1.b32.start.end [1/1] (short) %v397_v23, 128  ;;  %v4734_v21 = vld [vmem:[#allocation5 + $0x48] sm:$0xff] }
 0x39c   :  { %v498_v24 = vpop.trf.xlu1 }
 0x39d   :  { %3503 = vmatprep.mubr.msk.f32.mxu1 %vm408_vm6, %v498_v24 }
 0x3a0   :  { %v499_v25 = vpop.trf.xlu1 }
 0x3a1   :  { %3504 = vmatmul.mubr.msk.f32.vlgmr.msra.gmra.mrb[0].mxu1 %vm408_vm6, %v499_v25 }
 0x3a4   :  { %v500_v26 = vpop.trf.xlu1 }
 0x3a5   :  { %3506 = vmatprep.mubr.msk.f32.mxu1 %vm408_vm6, %v500_v26  ;;  %v4740_v26 = vld [vmem:[#allocation5 + $0x40] sm:$0xff] }
 0x3a8   :  { %v501_v27 = vpop.trf.xlu1 }
 0x3a9   :  { %3507 = vmatmul.mubr.msk.f32.gmra.mrb[2].mxu1 %vm408_vm6, %v501_v27 }
 0x3ac   :  { %v502_v28 = vpop.trf.xlu1 }
 0x3ad   :  { %3509 = vmatprep.mubr.msk.f32.mxu1 %vm408_vm6, %v502_v28 }
 0x3b0   :  { %v503_v29 = vpop.trf.xlu1 }
 0x3b1   :  { %3510 = vmatmul.mubr.msk.f32.gmra.mrb[4].mxu1 %vm408_vm6, %v503_v29  ;;  %v4746_v29 = vld [vmem:[#allocation5 + $0x58] sm:$0xff] }
 0x3b4   :  { %v504_v30 = vpop.trf.xlu1 }
 0x3b5   :  { %3512 = vmatprep.mubr.msk.f32.mxu1 %vm408_vm6, %v504_v30 }
 0x3b8   :  { %v505_v31 = vpop.trf.xlu1 }
 0x3b9   :  { %3513 = vmatmul.mubr.msk.f32.gmra.mrb[6].mxu1 %vm408_vm6, %v505_v31 }
 0x3bc   :  { %v506_v32 = vpop.trf.xlu1 }
 0x3bd   :  { %3515 = vmatprep.mubr.msk.f32.mxu1 %vm408_vm6, %v506_v32 }
 0x3c0   :  { %v507_v33 = vpop.trf.xlu1 }
 0x3c1   :  { %3516 = vmatmul.mubr.msk.f32.gmra.mrb[8].mxu1 %vm408_vm6, %v507_v33 }
 0x3c4   :  { %v508_v35 = vpop.trf.xlu1 }
 0x3c5   :  { %3518 = vmatprep.mubr.msk.f32.mxu1 %vm408_vm6, %v508_v35  ;;  %v4752_v35 = vld [vmem:[#allocation5 + $0x50] sm:$0xff] }
 0x3c8   :  { %v509_v36 = vpop.trf.xlu1 }
 0x3c9   :  { %3519 = vmatmul.mubr.msk.f32.gmra.mrb[10].mxu1 %vm408_vm6, %v509_v36 }
 0x3cc   :  { %v510_v38 = vpop.trf.xlu1 }
 0x3cd   :  { %3521 = vmatprep.mubr.msk.f32.mxu1 %vm408_vm6, %v510_v38 }
 0x3d0   :  { %v511_v40 = vpop.trf.xlu1 }
 0x3d1   :  { %3522 = vmatmul.mubr.msk.f32.gmra.mrb[12].mxu1 %vm408_vm6, %v511_v40  ;;  %v4758_v40 = vld [vmem:[#allocation5 + $0x68] sm:$0xff] }
 0x3d4   :  { %v512_v41 = vpop.trf.xlu1 }
 0x3d5   :  { %3524 = vmatprep.mubr.msk.f32.mxu1 %vm408_vm6, %v512_v41  ;;  %v403_v41 = vld [vmem:[#allocation11] sm:$0xff] }
 0x3d6   :  { %3499 = vmatmul.mubr.msk.f32.vlgmr.msra.gmra.mrb[2].mxu0 %vm408_vm6, %v403_v41 }
 0x3d7   :  { %3564 = vmatprep.mubr.msk.f32.mxu0 %vm4442_vm7, %v4441_v17 }
 0x3d8   :  { %v513_v42 = vpop.trf.xlu1 }
 0x3d9   :  { %3525 = vmatmul.mubr.msk.f32.gmra.mrb[14].mxu1 %vm408_vm6, %v513_v42 }
 0x3da   :  { %3559 = vmatprep.mubr.msk.f32.mxu1 %vm4442_vm7, %v4441_v17 }
 0x474   :  { %v3505_v44 = vpop.f32.mrb[0].mxu1 }
 0x475   :  { %v628_v45 = vpop.f32.mrb[1].mxu1  ;;  %v708_v48 = vmul.f32 0.35355338, %v3505_v44 }
 0x476   :  { %v707_v47 = vmul.f32 0.35355338, %v628_v45 }
 0x477   :  { %v4705_v54 = vadd.f32 %v708_v48, %v4701_v50 }
 0x478   :  { %v4699_v49 = vadd.f32 %v707_v47, %v147_v46  ;;  %v4766_v46 = vld [vmem:[#allocation5 + $0x60] sm:$0xff] }
 0x47a   :  { %739 = vmax.xlane.f32.xlu0 %v4699_v49 }
 0x47c   :  { %v3508_v52 = vpop.f32.mrb[2].mxu1 }
 0x47d   :  { %v710_v57 = vmul.f32 0.35355338, %v3508_v52  ;;  %v638_v58 = vpop.f32.mrb[3].mxu1 }
 0x47e   :  { %v709_v60 = vmul.f32 0.35355338, %v638_v58  ;;  %741 = vmax.xlane.f32.xlu0 %v4705_v54 }
 0x47f   :  { %v4708_v61 = vadd.f32 %v710_v57, %v150_v56  ;;  %v4778_v57 = vld [vmem:[#allocation5 + $0x70] sm:$0xff] }
 0x480   :  { %v4710_v62 = vadd.f32 %v709_v60, %v149_v59  ;;  %v4780_v60 = vld [vmem:[#allocation5 + $0x78] sm:$0xff] }
 0x482   :  { %745 = vmax.xlane.f32.xlu0 %v4708_v61  ;;  %743 = vmax.xlane.f32.xlu1 %v4710_v62 }
 0x484   :  { %v3511_v63 = vpop.f32.mrb[4].mxu1 }
 0x485   :  { %v712_v5 = vmul.f32 0.35355338, %v3511_v63  ;;  %v648_v6 = vpop.f32.mrb[5].mxu1 }
 0x486   :  { %v711_v7 = vmul.f32 0.35355338, %v648_v6 }
 0x487   :  { %v4714_v8 = vadd.f32 %v712_v5, %v152_v0  ;;  %v4443_v5 = vmov 9  }
 0x488   :  { %v4720_v10 = vadd.f32 %v711_v7, %v4716_v9  ;;  %3913 = vset.pattern.permute.xlu1 %v4443_v5 }
 0x489   :  { %749 = vmax.xlane.f32.xlu0 %v4714_v8 }
 0x48c   :  { %v3514_v11 = vpop.f32.mrb[6].mxu1 }
 0x48d   :  { %v714_v13 = vmul.f32 0.35355338, %v3514_v11  ;;  %747 = vmax.xlane.f32.xlu0 %v4720_v10  ;;  %v658_v14 = vpop.f32.mrb[7].mxu1 }
 0x48e   :  { %v713_v15 = vmul.f32 0.35355338, %v658_v14 }
 0x48f   :  { %v4726_v16 = vadd.f32 %v714_v13, %v4722_v12 }
 0x490   :  { %v4732_v19 = vadd.f32 %v713_v15, %v4728_v18 }
 0x491   :  { %753 = vmax.xlane.f32.xlu0 %v4726_v16 }
 0x494   :  { %v3517_v20 = vpop.f32.mrb[8].mxu1 }
 0x495   :  { %v716_v22 = vmul.f32 0.35355338, %v3517_v20  ;;  %751 = vmax.xlane.f32.xlu0 %v4732_v19  ;;  %v668_v23 = vpop.f32.mrb[9].mxu1 }
 0x496   :  { %v715_v24 = vmul.f32 0.35355338, %v668_v23 }
 0x497   :  { %v4738_v25 = vadd.f32 %v716_v22, %v4734_v21 }
 0x498   :  { %v4744_v27 = vadd.f32 %v715_v24, %v4740_v26 }
 0x499   :  { %757 = vmax.xlane.f32.xlu0 %v4738_v25 }
 0x49c   :  { %v3520_v28 = vpop.f32.mrb[10].mxu1 }
 0x49d   :  { %v718_v30 = vmul.f32 0.35355338, %v3520_v28  ;;  %755 = vmax.xlane.f32.xlu0 %v4744_v27  ;;  %v678_v31 = vpop.f32.mrb[11].mxu1 }
 0x49e   :  { %v717_v32 = vmul.f32 0.35355338, %v678_v31 }
 0x49f   :  { %v4750_v33 = vadd.f32 %v718_v30, %v4746_v29 }
 0x4a0   :  { %v4756_v36 = vadd.f32 %v717_v32, %v4752_v35 }
 0x4a1   :  { %761 = vmax.xlane.f32.xlu0 %v4750_v33 }
 0x4a4   :  { %v3523_v38 = vpop.f32.mrb[12].mxu1 }
 0x4a5   :  { %v720_v42 = vmul.f32 0.35355338, %v3523_v38  ;;  %759 = vmax.xlane.f32.xlu0 %v4756_v36  ;;  %v688_v44 = vpop.f32.mrb[13].mxu1 }
 0x4a6   :  { %v719_v45 = vmul.f32 0.35355338, %v688_v44 }
 0x4a7   :  { %v4771_v47 = vadd.f32 %v720_v42, %v4758_v40 }
 0x4a8   :  { %v4775_v48 = vadd.f32 %v719_v45, %v4766_v46 }
 0x4a9   :  { %765 = vmax.xlane.f32.xlu0 %v4771_v47 }
 0x4ac   :  { %v3526_v52 = vpop.f32.mrb[14].mxu1 }
 0x4ad   :  { %763 = vmax.xlane.f32.xlu0 %v4775_v48  ;;  %v698_v56 = vpop.f32.mrb[15].mxu1  ;;  %v722_v58 = vmul.f32 0.35355338, %v3526_v52 }
 0x4ae   :  { %v721_v59 = vmul.f32 0.35355338, %v698_v56 }
 0x4af   :  { %v4787_v0 = vadd.f32 %v722_v58, %v4780_v60 }
 0x4b0   :  { %v4783_v63 = vadd.f32 %v721_v59, %v4778_v57 }
 0x4b2   :  { %767 = vmax.xlane.f32.xlu0 %v4783_v63 }
 0x4b6   :  { %769 = vmax.xlane.f32.xlu0 %v4787_v0 }
 0x507   :  { %v740_v6 = vpop.xlane.xlu0 %739 }
 0x508   :  { %v771_v11 = vsub.f32 %v4699_v49, %v740_v6 }
 0x50a   :  { %v787_v20 = vmul.f32 1.442695, %v771_v11 }
 0x50b   :  { %v742_v7 = vpop.xlane.xlu0 %741 }
 0x50c   :  { %v772_v13 = vsub.f32 %v4705_v54, %v742_v7 }
 0x50e   :  { %v789_v14 = vmul.f32 1.442695, %v772_v13 }
 0x50f   :  { %v746_v15 = vpop.xlane.xlu0 %745  ;;  %v744_v23 = vpop.xlane.xlu1 %743 }
 0x510   :  { %3979 = vpow2.f32 %v789_v14  ;;  %v774_v22 = vsub.f32 %v4708_v61, %v746_v15  ;;  %v773_v28 = vsub.f32 %v4710_v62, %v744_v23 }
 0x511   :  { %3981 = vpow2.f32 %v787_v20 }
 0x512   :  { %v793_v24 = vmul.f32 1.442695, %v774_v22  ;;  %v791_v31 = vmul.f32 1.442695, %v773_v28 }
 0x514   :  { %3983 = vpow2.f32 %v793_v24 }
 0x515   :  { %3985 = vpow2.f32 %v791_v31 }
 0x516   :  { %v750_v30 = vpop.xlane.xlu0 %749 }
 0x517   :  { %v776_v32 = vsub.f32 %v4714_v8, %v750_v30 }
 0x519   :  { %v797_v54 = vmul.f32 1.442695, %v776_v32 }
 0x51a   :  { %v4796_v38 = vpop.eup %3979  ;;  %v748_v49 = vpop.xlane.xlu0 %747 }
 0x51b   :  { %821 = vadd.xlane.f32.xlu0 %v4796_v38  ;;  %v775_v41 = vsub.f32 %v4720_v10, %v748_v49  ;;  %v4800_v61 = vpop.eup %3981  ;;  %3987 = vpow2.f32 %v797_v54  ;;  %v4444_v54 = vmov 0.0|0.0  }
 0x51c   :  { %3768 = vmatprep.subr.bf16.mxu1 %v4444_v54 }
 0x51d   :  { %v795_v62 = vmul.f32 1.442695, %v775_v41 }
 0x51e   :  { %v754_v42 = vpop.xlane.xlu0 %753  ;;  %v4804_v45 = vpop.eup %3983 }
 0x51f   :  { %819 = vadd.xlane.f32.xlu0 %v4800_v61  ;;  %v778_v44 = vsub.f32 %v4726_v16, %v754_v42  ;;  %3989 = vpow2.f32 %v795_v62  ;;  %v4808_v58 = vpop.eup %3985 }
 0x521   :  { %v801_v52 = vmul.f32 1.442695, %v778_v44 }
 0x522   :  { %v752_v8 = vpop.xlane.xlu0 %751 }
 0x523   :  { %825 = vadd.xlane.f32.xlu0 %v4804_v45  ;;  %v777_v56 = vsub.f32 %v4732_v19, %v752_v8  ;;  %3991 = vpow2.f32 %v801_v52 }
 0x525   :  { %v799_v59 = vmul.f32 1.442695, %v777_v56  ;;  %v4812_v7 = vpop.eup %3987 }
 0x526   :  { %v758_v10 = vpop.xlane.xlu0 %757 }
 0x527   :  { %823 = vadd.xlane.f32.xlu0 %v4808_v58  ;;  %v780_v6 = vsub.f32 %v4738_v25, %v758_v10  ;;  %3993 = vpow2.f32 %v799_v59 }
 0x529   :  { %v805_v11 = vmul.f32 1.442695, %v780_v6  ;;  %v4816_v14 = vpop.eup %3989 }
 0x52a   :  { %v756_v16 = vpop.xlane.xlu0 %755 }
 0x52b   :  { %829 = vadd.xlane.f32.xlu0 %v4812_v7  ;;  %v779_v13 = vsub.f32 %v4744_v27, %v756_v16  ;;  %3995 = vpow2.f32 %v805_v11 }
 0x52d   :  { %v803_v15 = vmul.f32 1.442695, %v779_v13  ;;  %v4819_v20 = vpop.eup %3991  ;;  %v4445_v13 = vmov 3  }
 0x52e   :  { %v762_v19 = vpop.xlane.xlu0 %761  ;;  %3914 = vset.pattern.permute.xlu0 %v4445_v13 }
 0x52f   :  { %827 = vadd.xlane.f32.xlu0 %v4816_v14  ;;  %3997 = vpow2.f32 %v803_v15  ;;  %v782_v23 = vsub.f32 %v4750_v33, %v762_v19  ;;  %v4446_v19 = vmov 4  }
 0x531   :  { %v4824_v28 = vpop.eup %3993  ;;  %v809_v30 = vmul.f32 1.442695, %v782_v23 }
 0x532   :  { %v760_v22 = vpop.xlane.xlu0 %759 }
 0x533   :  { %v781_v25 = vsub.f32 %v4756_v36, %v760_v22  ;;  %833 = vadd.xlane.f32.xlu0 %v4819_v20 }
 0x535   :  { %v807_v24 = vmul.f32 1.442695, %v781_v25  ;;  %v4828_v32 = vpop.eup %3995 }
 0x536   :  { %v766_v27 = vpop.xlane.xlu0 %765 }
 0x537   :  { %3999 = vpow2.f32 %v807_v24  ;;  %831 = vadd.xlane.f32.xlu0 %v4824_v28  ;;  %v784_v31 = vsub.f32 %v4771_v47, %v766_v27 }
 0x538   :  { %4001 = vpow2.f32 %v809_v30 }
 0x539   :  { %v813_v33 = vmul.f32 1.442695, %v784_v31  ;;  %v4833_v42 = vpop.eup %3997 }
 0x53a   :  { %v764_v49 = vpop.xlane.xlu0 %763 }
 0x53b   :  { %v783_v36 = vsub.f32 %v4775_v48, %v764_v49  ;;  %837 = vadd.xlane.f32.xlu0 %v4828_v32 }
 0x53d   :  { %v811_v41 = vmul.f32 1.442695, %v783_v36 }
 0x53f   :  { %4003 = vpow2.f32 %v811_v41  ;;  %v768_v62 = vpop.xlane.xlu0 %767  ;;  %835 = vadd.xlane.f32.xlu0 %v4833_v42 }
 0x540   :  { %4005 = vpow2.f32 %v813_v33  ;;  %v785_v47 = vsub.f32 %v4783_v63, %v768_v62 }
 0x541   :  { %v4837_v44 = vpop.eup %3999 }
 0x542   :  { %v815_v8 = vmul.f32 1.442695, %v785_v47  ;;  %v4841_v56 = vpop.eup %4001 }
 0x543   :  { %v770_v52 = vpop.xlane.xlu0 %769  ;;  %839 = vadd.xlane.f32.xlu0 %v4837_v44 }
 0x544   :  { %4007 = vpow2.f32 %v815_v8  ;;  %v786_v48 = vsub.f32 %v4787_v0, %v770_v52  ;;  %v4857_v0 = vpop.f32.mrb[2].mxu0 }
 0x545   :  { %v3500_v11 = vpop.f32.mrb[3].mxu0 }
 0x546   :  { %v817_v10 = vmul.f32 1.442695, %v786_v48 }
 0x547   :  { %841 = vadd.xlane.f32.xlu0 %v4841_v56 }
 0x548   :  { %4009 = vpow2.f32 %v817_v10 }
 0x549   :  { %v4844_v59 = vpop.eup %4003 }
 0x54a   :  { %v4846_v6 = vpop.eup %4005  ;;  %843 = vadd.xlane.f32.xlu1 %v4844_v59 }
 0x54b   :  { %845 = vadd.xlane.f32.xlu0 %v4846_v6 }
 0x54e   :  { %v4850_v63 = vpop.eup %4007 }
 0x54f   :  { %847 = vadd.xlane.f32.xlu1 %v4850_v63 }
 0x552   :  { %v4853_v16 = vpop.eup %4009 }
 0x553   :  { %849 = vadd.xlane.f32.xlu0 %v4853_v16 }
 0x560   :  { %405 = vperm.xlu1 %3913, %v4631_v2  }
 0x564   :  { %3915 = vset.pattern.permute.xlu1 %v4446_v19 }
 0x565   :  { %979 = vperm.xlu1 %3915, %v4631_v2  }
 0x569   :  { %971 = vperm.xlu0 %3914, %v4631_v2  }
 0x56d   :  { %3938 = vset.pattern.permute.xlu0 %v4438_v53 }
 0x5a8   :  { %v822_v15 = vpop.xlane.xlu0 %821 }
 0x5a9   :  { %4011 = vrcp.f32 %v822_v15 }
 0x5ac   :  { %v820_v22 = vpop.xlane.xlu0 %819 }
 0x5ad   :  { %4013 = vrcp.f32 %v820_v22 }
 0x5b0   :  { %v826_v25 = vpop.xlane.xlu0 %825 }
 0x5b1   :  { %4015 = vrcp.f32 %v826_v25 }
 0x5b3   :  { %v4012_v24 = vpop.eup %4011 }
 0x5b4   :  { %v824_v23 = vpop.xlane.xlu0 %823  ;;  %v868_v49 = vmul.f32 %v4012_v24, %v4796_v38 }
 0x5b5   :  { %4017 = vrcp.f32 %v824_v23 }
 0x5b7   :  { %v4014_v27 = vpop.eup %4013 }
 0x5b8   :  { %v830_v30 = vpop.xlane.xlu0 %829  ;;  %v867_v31 = vmul.f32 %v4014_v27, %v4800_v61 }
 0x5b9   :  { %4019 = vrcp.f32 %v830_v30 }
 0x5ba   :  { %v3769_v36 = vpack.c.bf16 %v868_v49, %v867_v31 }
 0x5bb   :  { %v4016_v41 = vpop.eup %4015 }
 0x5bc   :  { %3770 = vmatpush3.bf16.xpose.msra.mxu1 %v3769_v36  ;;  %v828_v33 = vpop.xlane.xlu0 %827  ;;  %v870_v52 = vmul.f32 %v4016_v41, %v4804_v45 }
 0x5bd   :  { %4021 = vrcp.f32 %v828_v33  ;;  %3771 = vmatprep.subr.bf16.mxu1 %v4444_v54 }
 0x5bf   :  { %v4018_v62 = vpop.eup %4017 }
 0x5c0   :  { %v834_v47 = vpop.xlane.xlu0 %833  ;;  %v869_v8 = vmul.f32 %v4018_v62, %v4808_v58 }
 0x5c1   :  { %4023 = vrcp.f32 %v834_v47 }
 0x5c2   :  { %v3772_v48 = vpack.c.bf16 %v870_v52, %v869_v8 }
 0x5c3   :  { %v4020_v10 = vpop.eup %4019 }
 0x5c4   :  { %3773 = vmatpush3.bf16.xpose.msra.mxu1 %v3772_v48  ;;  %v832_v61 = vpop.xlane.xlu0 %831  ;;  %v872_v22 = vmul.f32 %v4020_v10, %v4812_v7 }
 0x5c5   :  { %4025 = vrcp.f32 %v832_v61  ;;  %3774 = vmatprep.subr.bf16.mxu1 %v4444_v54 }
 0x5c7   :  { %v4022_v38 = vpop.eup %4021 }
 0x5c8   :  { %v838_v11 = vpop.xlane.xlu0 %837  ;;  %v871_v15 = vmul.f32 %v4022_v38, %v4816_v14 }
 0x5c9   :  { %4027 = vrcp.f32 %v838_v11 }
 0x5ca   :  { %v3775_v25 = vpack.c.bf16 %v872_v22, %v871_v15 }
 0x5cb   :  { %v4024_v23 = vpop.eup %4023 }
 0x5cc   :  { %3776 = vmatpush3.bf16.xpose.msra.mxu1 %v3775_v25  ;;  %v836_v58 = vpop.xlane.xlu0 %835  ;;  %v874_v30 = vmul.f32 %v4024_v23, %v4819_v20 }
 0x5cd   :  { %4029 = vrcp.f32 %v836_v58  ;;  %3777 = vmatprep.subr.bf16.mxu1 %v4444_v54 }
 0x5cf   :  { %v4026_v45 = vpop.eup %4025 }
 0x5d0   :  { %v840_v24 = vpop.xlane.xlu0 %839  ;;  %v873_v27 = vmul.f32 %v4026_v45, %v4824_v28 }
 0x5d1   :  { %4031 = vrcp.f32 %v840_v24 }
 0x5d2   :  { %v3778_v31 = vpack.c.bf16 %v874_v30, %v873_v27 }
 0x5d3   :  { %v4028_v49 = vpop.eup %4027 }
 0x5d4   :  { %3779 = vmatpush3.bf16.xpose.msra.mxu1 %v3778_v31  ;;  %v842_v14 = vpop.xlane.xlu0 %841  ;;  %v876_v62 = vmul.f32 %v4028_v49, %v4828_v32 }
 0x5d5   :  { %4033 = vrcp.f32 %v842_v14  ;;  %3780 = vmatprep.subr.bf16.mxu1 %v4444_v54 }
 0x5d7   :  { %v4030_v7 = vpop.eup %4029  ;;  %v844_v36 = vpop.xlane.xlu1 %843 }
 0x5d8   :  { %4035 = vrcp.f32 %v844_v36  ;;  %v846_v33 = vpop.xlane.xlu0 %845  ;;  %v875_v41 = vmul.f32 %v4030_v7, %v4833_v42 }
 0x5d9   :  { %4037 = vrcp.f32 %v846_v33 }
 0x5da   :  { %v3781_v28 = vpack.c.bf16 %v876_v62, %v875_v41 }
 0x5db   :  { %v4032_v20 = vpop.eup %4031 }
 0x5dc   :  { %3782 = vmatpush3.bf16.xpose.msra.mxu1 %v3781_v28  ;;  %v848_v8 = vpop.xlane.xlu1 %847  ;;  %v877_v48 = vmul.f32 %v4032_v20, %v4837_v44 }
 0x5dd   :  { %3783 = vmatprep.subr.bf16.mxu1 %v4444_v54 }
 0x5df   :  { %v4034_v47 = vpop.eup %4033 }
 0x5e0   :  { %v850_v52 = vpop.xlane.xlu0 %849  ;;  %v878_v61 = vmul.f32 %v4034_v47, %v4841_v56  ;;  %v406_v23 = vpop.permute.xlu1 %405 }
 0x5e1   :  { %4039 = vrcp.f32 %v850_v52  ;;  %v479_v45 = vadd.f32 %v4857_v0, %v406_v23 }
 0x5e2   :  { %v4036_v10 = vpop.eup %4035  ;;  %v3784_v38 = vpack.c.bf16 %v878_v61, %v877_v48  ;;  %4041 = vrcp.f32 %v848_v8 }
 0x5e3   :  { %v4038_v11 = vpop.eup %4037  ;;  %v879_v32 = vmul.f32 %v4036_v10, %v4844_v59  ;;  %v4447_v59 = vmov 10  }
 0x5e4   :  { %3785 = vmatpush3.bf16.xpose.msra.mxu1 %v3784_v38  ;;  %v880_v42 = vmul.f32 %v4038_v11, %v4846_v6  ;;  %3916 = vset.pattern.permute.xlu1 %v4447_v59  ;;  %v980_v10 = vpop.permute.xlu1 %979 }
 0x5e5   :  { %3786 = vmatprep.subr.bf16.mxu1 %v4444_v54  ;;  %985 = vperm.xlu1 %3916, %v4631_v2  }
 0x5e6   :  { %v3787_v15 = vpack.c.bf16 %v880_v42, %v879_v32  ;;  %v983_v32 = vld [vmem:[#allocation13] sm:$0xff]  ;;  %v4448_v42 = vmov 11  }
 0x5e9   :  { %3917 = vset.pattern.permute.xlu1 %v4448_v42 }
 0x5ea   :  { %1138 = vperm.xlu1 %3917, %v4631_v2  }
 0x5eb   :  { %v4040_v22 = vpop.eup %4039 }
 0x5ec   :  { %3788 = vmatpush3.bf16.xpose.msra.mxu1 %v3787_v15  ;;  %v4042_v25 = vpop.eup %4041  ;;  %v882_v44 = vmul.f32 %v4040_v22, %v4853_v16  ;;  %v4449_v15 = vmov 5   ;;  %v4450_v22 = vmov 6  }
 0x5ed   :  { %3789 = vmatprep.subr.bf16.mxu1 %v4444_v54  ;;  %v881_v56 = vmul.f32 %v4042_v25, %v4850_v63 }
 0x5ee   :  { %3918 = vset.pattern.permute.xlu1 %v4449_v15 }
 0x5ef   :  { %v3790_v58 = vpack.c.bf16 %v882_v44, %v881_v56  ;;  %1159 = vperm.xlu1 %3918, %v4631_v2  }
 0x5f3   :  { %3919 = vset.pattern.permute.xlu1 %v4450_v22 }
 0x5f4   :  { %3791 = vmatpush3.bf16.xpose.msra.mxu1 %v3790_v58  ;;  %1167 = vperm.xlu1 %3919, %v4631_v2   ;;  %v4912_v2 = vld [vmem:[%s5411_s4 + $0x8] sm:$0xff] }
 0x5f5   :  { %3684 = vmatprep.subr.mxu1 %v4441_v17 }
 0x5f8   :  { %3920 = vset.pattern.permute.xlu1 %v4430_v3 }
 0x5f9   :  { %1178 = vperm.xlu1 %3920, %v4912_v2  }
 0x5fb   :  { %3560 = vmatmul.mubr.f32.vlgmr.msra.gmra.mrb[16].mxu1 %v479_v45  ;;  %v1062_v45 = vld [vmem:[#allocation14] sm:$0xff] }
 0x5fc   :  { %3686 = vmatprep.mubr.msk.f32.mxu1 %vm4442_vm7, %v4441_v17 }
 0x5fd   :  { %3921 = vset.pattern.permute.xlu1 %v4429_v1 }
 0x5fe   :  { %1271 = vperm.xlu1 %3921, %v4912_v2  }
 0x602   :  { %3922 = vset.pattern.permute.xlu1 %v4431_v4 }
 0x603   :  { %1279 = vperm.xlu1 %3922, %v4912_v2  }
 0x607   :  { %3939 = vset.pattern.permute.xlu1 %v4439_v55 }
 0x664   :  { %v986_v25 = vpop.permute.xlu1 %985 }
 0x6ce   :  { %v949_v6 = vpop.f32.mrb[16].mxu1 }
 0x6cf   :  { %v953_v16 = vadd.f32 %v949_v6, %v4643_v34  ;;  %v3561_v63 = vpop.f32.mrb[17].mxu1  ;;  %v972_v34 = vpop.permute.xlu0 %971 }
 0x6d0   :  { %v1139_v63 = vpop.permute.xlu1 %1138 }
 0x6d1   :  { %v954_v24 = vrot.slane %v953_v16, 4 }
 0x6d3   :  { %v955_v27 = vadd.f32 %v954_v24, %v953_v16 }
 0x6d5   :  { %v956_v30 = vrot.slane %v955_v27, 2 }
 0x6d7   :  { %v957_v31 = vadd.f32 %v956_v30, %v955_v27 }
 0x6d9   :  { %v958_v14 = vrot.slane %v957_v31, 1 }
 0x6db   :  { %v959_v49 = vadd.f32 %v958_v14, %v957_v31 }
 0x6dd   :  { %v960_v0 = vmul.f32 0.125, %v959_v49 }
 0x6df   :  { %v961_v7 = vsub.f32 %v953_v16, %v960_v0 }
 0x6e1   :  { %v962_v36 = vmul.f32 %v961_v7, %v961_v7  ;;  %v974_v48 = vmul.f32 %v972_v34, %v961_v7 }
 0x6e3   :  { %v963_v33 = vrot.slane %v962_v36, 4 }
 0x6e5   :  { %v964_v41 = vadd.f32 %v963_v33, %v962_v36 }
 0x6e7   :  { %v965_v62 = vrot.slane %v964_v41, 2 }
 0x6e9   :  { %v966_v28 = vadd.f32 %v965_v62, %v964_v41 }
 0x6eb   :  { %v967_v20 = vrot.slane %v966_v28, 1 }
 0x6ed   :  { %v968_v47 = vadd.f32 %v967_v20, %v966_v28 }
 0x6ef   :  { %v969_v8 = vmul.f32 0.125, %v968_v47 }
 0x6f1   :  { %v975_v52 = vadd.f32 1e-06, %v969_v8 }
 0x6f3   :  { %4043 = vrsqrt.f32 %v975_v52 }
 0x6fd   :  { %v4044_v61 = vpop.eup %4043 }
 0x6fe   :  { %v977_v38 = vmul.f32 %v4044_v61, %v974_v48 }
 0x700   :  { %v982_v11 = vadd.f32 %v980_v10, %v977_v38 }
 0x702   :  { %3563 = vmatpush3.msra.mxu0 %v982_v11 }
 0x703   :  { %3565 = vmatmul.mubr.msk.f32.vlgmr.msra.gmra.mrb[4].mxu0 %vm408_vm6, %v983_v32  ;;  %3567 = vmatprep.subr.mxu0 %v4441_v17 }
 0x704   :  { %3569 = vmatprep.mubr.msk.f32.mxu0 %vm4442_vm7, %v4441_v17 }
 0x7d6   :  { %v1057_v44 = vpop.f32.mrb[4].mxu0 }
 0x7d7   :  { %v1058_v56 = vadd.f32 %v1057_v44, %v986_v25  ;;  %v3566_v58 = vpop.f32.mrb[5].mxu0  ;;  %v1171_v25 = vld [vmem:[#allocation2] sm:$0xff] }
 0x7d8   :  { %v1175_v58 = vld [vmem:[#allocation8] sm:$0xff] }
 0x7d9   :  { %v1061_v23 = vmax.f32 %v1058_v56, 0.0 }
 0x7db   :  { %3568 = vmatpush3.msra.mxu0 %v1061_v23 }
 0x7dc   :  { %3570 = vmatmul.mubr.msk.f32.vlgmr.msra.gmra.mrb[6].mxu0 %vm408_vm6, %v1062_v45  ;;  %3572 = vmatprep.subr.mxu0 %v4441_v17 }
 0x7dd   :  { %3574 = vmatprep.mubr.msk.f32.mxu0 %vm4442_vm7, %v4441_v17 }
 0x8af   :  { %v1132_v6 = vpop.f32.mrb[6].mxu0 }
 0x8b0   :  { %v1136_v24 = vadd.f32 %v1132_v6, %v953_v16  ;;  %v3571_v27 = vpop.f32.mrb[7].mxu0  ;;  %v1160_v16 = vpop.permute.xlu1 %1159 }
 0x8b2   :  { %v1141_v30 = vadd.f32 %v1139_v63, %v1136_v24 }
 0x8b4   :  { %v1142_v31 = vrot.slane %v1141_v30, 4  ;;  %v1168_v11 = vpop.permute.xlu1 %1167 }
 0x8b6   :  { %v1143_v14 = vadd.f32 %v1142_v31, %v1141_v30 }
 0x8b8   :  { %v1144_v49 = vrot.slane %v1143_v14, 2  ;;  %v1179_v23 = vpop.permute.xlu1 %1178 }
 0x8ba   :  { %v1145_v0 = vadd.f32 %v1144_v49, %v1143_v14 }
 0x8bc   :  { %v1146_v7 = vrot.slane %v1145_v0, 1 }
 0x8be   :  { %v1147_v36 = vadd.f32 %v1146_v7, %v1145_v0 }
 0x8c0   :  { %v1148_v33 = vmul.f32 0.125, %v1147_v36 }
 0x8c2   :  { %v1149_v41 = vsub.f32 %v1141_v30, %v1148_v33 }
 0x8c4   :  { %v1150_v62 = vmul.f32 %v1149_v41, %v1149_v41  ;;  %v1162_v10 = vmul.f32 %v1160_v16, %v1149_v41 }
 0x8c6   :  { %v1151_v28 = vrot.slane %v1150_v62, 4 }
 0x8c8   :  { %v1152_v20 = vadd.f32 %v1151_v28, %v1150_v62 }
 0x8ca   :  { %v1153_v47 = vrot.slane %v1152_v20, 2 }
 0x8cc   :  { %v1154_v8 = vadd.f32 %v1153_v47, %v1152_v20 }
 0x8ce   :  { %v1155_v52 = vrot.slane %v1154_v8, 1 }
 0x8d0   :  { %v1156_v34 = vadd.f32 %v1155_v52, %v1154_v8 }
 0x8d2   :  { %v1157_v48 = vmul.f32 0.125, %v1156_v34  ;;  %v1272_v34 = vpop.permute.xlu1 %1271 }
 0x8d4   :  { %v1163_v61 = vadd.f32 1e-06, %v1157_v48 }
 0x8d6   :  { %4045 = vrsqrt.f32 %v1163_v61  ;;  %v1280_v16 = vpop.permute.xlu1 %1279 }
 0x8e0   :  { %v4046_v38 = vpop.eup %4045 }
 0x8e1   :  { %v1165_v32 = vmul.f32 %v4046_v38, %v1162_v10 }
 0x8e3   :  { %v1170_v44 = vadd.f32 %v1168_v11, %v1165_v32 }
 0x8e5   :  { %v1172_v56 = vadd.f32 %v1171_v25, %v1170_v44 }
 0x8e7   :  { %3573 = vmatpush3.msra.mxu0 %v1172_v56 }
 0x8e8   :  { %3575 = vmatmul.mubr.msk.f32.vlgmr.msra.gmra.mrb[8].mxu0 %vm408_vm6, %v1175_v58 }
 0x9bb   :  { %v1250_v45 = vpop.f32.mrb[8].mxu0 }
 0x9bc   :  { %v1251_v6 = vadd.f32 %v1250_v45, %v1179_v23  ;;  %v3576_v63 = vpop.f32.mrb[9].mxu0 }
 0x9be   :  { %v1254_v24 = vrot.slane %v1251_v6, 4 }
 0x9c0   :  { %v1255_v27 = vadd.f32 %v1254_v24, %v1251_v6  ;;  %v1330_v24 = vld [vmem:[#allocation10 + $0x10] sm:$0xff] }
 0x9c1   :  { %3587 = vmatprep.mubr.msk.f32.mxu0 %vm311_vm1, %v1330_v24 }
 0x9c2   :  { %v1256_v30 = vrot.slane %v1255_v27, 2 }
 0x9c4   :  { %v1257_v31 = vadd.f32 %v1256_v30, %v1255_v27 }
 0x9c6   :  { %v1258_v14 = vrot.slane %v1257_v31, 1 }
 0x9c8   :  { %v1259_v49 = vadd.f32 %v1258_v14, %v1257_v31 }
 0x9ca   :  { %v1260_v0 = vmul.f32 0.125, %v1259_v49 }
 0x9cc   :  { %v1261_v7 = vsub.f32 %v1251_v6, %v1260_v0 }
 0x9ce   :  { %v1262_v36 = vmul.f32 %v1261_v7, %v1261_v7  ;;  %v1274_v48 = vmul.f32 %v1272_v34, %v1261_v7 }
 0x9d0   :  { %v1263_v33 = vrot.slane %v1262_v36, 4 }
 0x9d2   :  { %v1264_v41 = vadd.f32 %v1263_v33, %v1262_v36  ;;  %v4943_v36 = vld [vmem:[#allocation7] ss:$0 sm:$0xff] }
 0x9d4   :  { %v1265_v62 = vrot.slane %v1264_v41, 2 }
 0x9d6   :  { %v1266_v28 = vadd.f32 %v1265_v62, %v1264_v41 }
 0x9d8   :  { %v1267_v20 = vrot.slane %v1266_v28, 1 }
 0x9da   :  { %v1268_v47 = vadd.f32 %v1267_v20, %v1266_v28 }
 0x9dc   :  { %v1269_v8 = vmul.f32 0.125, %v1268_v47 }
 0x9de   :  { %v1275_v52 = vadd.f32 1e-06, %v1269_v8 }
 0x9e0   :  { %4047 = vrsqrt.f32 %v1275_v52 }
 0x9ea   :  { %v4048_v61 = vpop.eup %4047 }
 0x9eb   :  { %v1277_v10 = vmul.f32 %v4048_v61, %v1274_v48 }
 0x9ed   :  { %v4921_v38 = vadd.f32 %v1280_v16, %v1277_v10 }
 0x9ef   :  { %1284 = vrot.lane.b32.xlu0 %v4921_v38, %s4433_s0 }
 0xa61   :  { %v1285_v11 = vpop.permute.xlu0 %1284 }
 0xa62   :  { %v1287_v32 = vsel %vm224_vm0, 0.0, %v1285_v11  ;;  %v1292_v25 = vmul.f32 %v1285_v11, %v4655_v43  ;;  %v1290_v44 = vmul.f32 %v1285_v11, %v4648_v37  ;;  %v1294_v63 = vmul.f32 %v1285_v11, %v4650_v39 }
 0xa63   :  { %v1291_v56 = vmul.f32 %v1287_v32, %v4655_v43  ;;  %v1289_v58 = vmul.f32 %v1287_v32, %v4648_v37  ;;  %v1293_v6 = vmul.f32 %v1287_v32, %v4650_v39  ;;  %v1295_v27 = vmul.f32 %v1287_v32, %v4663_v51 }
 0xa64   :  { %v1296_v31 = vmul.f32 %v1285_v11, %v4663_v51  ;;  %v1288_v33 = vmul.f32 %v4943_v36, %v1287_v32  ;;  %v1331_v32 = vld [vmem:[#allocation10 + $0x18] sm:$0xff] }
 0xa65   :  { %v3928_v23 = vpack.i.bf16 %v1292_v25, %v1291_v56  ;;  %v3923_v45 = vpack.i.bf16 %v1290_v44, %v1289_v58  ;;  %v3933_v30 = vpack.i.bf16 %v1294_v63, %v1293_v6  ;;  %v1424_v25 = vld [vmem:[#allocation11 + $0x8] sm:$0xff] }
 0xa67   :  { %3929 = vrot.lane.b32.xlu0 %v3928_v23, %s4436_s21  ;;  %3924 = vrot.lane.b32.xlu1 %v3923_v45, %s4435_s19 }
 0xa6b   :  { %1323 = vrot.lane.b32.xlu0 %v1295_v27, %s4440_s1  ;;  %3934 = vrot.lane.b32.xlu1 %v3933_v30, %s4437_s23 }
 0xa6f   :  { %1325 = vrot.lane.b32.xlu1 %v1296_v31, %s4440_s1  ;;  %1414 = vperm.xlu0 %3938, %v4912_v2  }
 0xa73   :  { %1419 = vperm.xlu1 %3939, %v4912_v2   ;;  %3940 = vset.pattern.permute.xlu0 %v4443_v5 }
 0xad9   :  { %v3930_v14 = vpop.permute.xlu0 %3929  ;;  %v3925_v49 = vpop.permute.xlu1 %3924 }
 0xada   :  { %v3927_v0 = vunpack.i.h.bf16 %v3925_v49  ;;  %v3926_v7 = vunpack.i.l.bf16 %v3925_v49  ;;  %v3932_v41 = vunpack.i.h.bf16 %v3930_v14  ;;  %v3931_v62 = vunpack.i.l.bf16 %v3930_v14 }
 0xadc   :  { %v1303_v28 = vsel %vm279_vm2, %v3926_v7, %v3927_v0  ;;  %v1311_v34 = vsel %vm288_vm3, %v3931_v62, %v3932_v41 }
 0xadd   :  { %v3935_v20 = vpop.permute.xlu1 %3934  ;;  %v3792_v47 = vpack.c.bf16 %v1303_v28, %v1288_v33  ;;  %v1324_v10 = vpop.permute.xlu0 %1323 }
 0xade   :  { %v3937_v8 = vunpack.i.h.bf16 %v3935_v20  ;;  %v3936_v52 = vunpack.i.l.bf16 %v3935_v20 }
 0xadf   :  { %3793 = vmatprep.subr.bf16.mxu0 %v3792_v47 }
 0xae0   :  { %3795 = vmatpush3.bf16.msra.mxu0 %v3792_v47  ;;  %v1319_v48 = vsel %vm297_vm4, %v3936_v52, %v3937_v8 }
 0xae1   :  { %v1326_v61 = vpop.permute.xlu1 %1325  ;;  %v3796_v16 = vpack.c.bf16 %v1319_v48, %v1311_v34 }
 0xae2   :  { %v1327_v11 = vsel %vm306_vm5, %v1324_v10, %v1326_v61 }
 0xae3   :  { %3797 = vmatprep.subr.bf16.mxu0 %v3796_v16 }
 0xae4   :  { %3799 = vmatpush3.bf16.msra.mxu0 %v3796_v16 }
 0xae5   :  { %3585 = vmatprep.subr.mxu0 %v1327_v11 }
 0xae8   :  { %3586 = vmatpush3.msra.mxu0 %v1327_v11 }
 0xae9   :  { %3588 = vmatmul.mubr.msk.f32.vlgmr.msra.gmra.mrb[10].mxu0 %vm311_vm1, %v1331_v32  ;;  %3590 = vmatprep.subr.mxu0 %v4441_v17  ;;  %v4982_v32 = vld [vmem:[#allocation5] sm:$0xff] }
 0xaea   :  { %3591 = vmatpush3.msra.mxu0 %v4921_v38  ;;  %3592 = vmatprep.mubr.msk.f32.mxu0 %vm4442_vm7, %v4441_v17 }
 0xaed   :  { %3593 = vmatmul.mubr.msk.f32.vlgmr.msra.gmra.mrb[12].mxu0 %vm408_vm6, %v1424_v25 }
 0xaee   :  { %v1415_v56 = vpop.permute.xlu0 %1414 }
 0xaf2   :  { %v1420_v44 = vpop.permute.xlu1 %1419 }
 0xbbc   :  { %v3589_v58 = vpop.f32.mrb[10].mxu0 }
 0xbbd   :  { %v1422_v23 = vadd.f32 %v3589_v58, %v1420_v44  ;;  %v1404_v45 = vpop.f32.mrb[11].mxu0 }
 0xbbe   :  { %v1417_v6 = vadd.f32 %v1415_v56, %v1404_v45  ;;  %v4988_v45 = vld [vmem:[#allocation5 + $0x10] sm:$0xff] }
 0xbbf   :  { %3595 = vmatprep.subr.mxu0 %v1422_v23 }
 0xbc0   :  { %3596 = vmatpush3.msra.mxu0 %v1422_v23  ;;  %1502 = vxpose.xlu1.b32.start.end [1/1] (short) %v1417_v6, 128  ;;  %v4958_v63 = vpop.f32.mrb[12].mxu0 }
 0xbc1   :  { %3800 = vmatprep.subr.bf16.mxu0 %v4444_v54  ;;  %v3594_v24 = vpop.f32.mrb[13].mxu0 }
 0xbc2   :  { %v4994_v24 = vld [vmem:[#allocation5 + $0x18] sm:$0xff] }
 0xbde   :  { %3941 = vset.pattern.permute.xlu1 %v4445_v13 }
 0xc40   :  { %v1518_v27 = vpop.trf.xlu1 }
 0xc41   :  { %3597 = vmatprep.mubr.msk.f32.mxu0 %vm408_vm6, %v1518_v27 }
 0xc44   :  { %v1519_v30 = vpop.trf.xlu1 }
 0xc45   :  { %3598 = vmatmul.mubr.msk.f32.vlgmr.msra.gmra.mrb[14].mxu0 %vm408_vm6, %v1519_v30 }
 0xc48   :  { %v1520_v31 = vpop.trf.xlu1 }
 0xc49   :  { %3600 = vmatprep.mubr.msk.f32.mxu0 %vm408_vm6, %v1520_v31 }
 0xc4c   :  { %v1521_v14 = vpop.trf.xlu1 }
 0xc4d   :  { %3601 = vmatmul.mubr.msk.f32.gmra.mrb[16].mxu0 %vm408_vm6, %v1521_v14 }
 0xc50   :  { %v1522_v49 = vpop.trf.xlu1 }
 0xc51   :  { %3603 = vmatprep.mubr.msk.f32.mxu0 %vm408_vm6, %v1522_v49  ;;  %v5000_v49 = vld [vmem:[#allocation5 + $0x28] sm:$0xff] }
 0xc54   :  { %v1523_v0 = vpop.trf.xlu1 }
 0xc55   :  { %3604 = vmatmul.mubr.msk.f32.gmra.mrb[18].mxu0 %vm408_vm6, %v1523_v0 }
 0xc58   :  { %v1524_v7 = vpop.trf.xlu1 }
 0xc59   :  { %3606 = vmatprep.mubr.msk.f32.mxu0 %vm408_vm6, %v1524_v7 }
 0xc5c   :  { %v1525_v33 = vpop.trf.xlu1 }
 0xc5d   :  { %3607 = vmatmul.mubr.msk.f32.gmra.mrb[20].mxu0 %vm408_vm6, %v1525_v33 }
 0xc60   :  { %v1526_v41 = vpop.trf.xlu1 }
 0xc61   :  { %3609 = vmatprep.mubr.msk.f32.mxu0 %vm408_vm6, %v1526_v41 }
 0xc64   :  { %v1527_v62 = vpop.trf.xlu1 }
 0xc65   :  { %3610 = vmatmul.mubr.msk.f32.gmra.mrb[22].mxu0 %vm408_vm6, %v1527_v62 }
 0xc68   :  { %v1528_v28 = vpop.trf.xlu1 }
 0xc69   :  { %3612 = vmatprep.mubr.msk.f32.mxu0 %vm408_vm6, %v1528_v28 }
 0xc6c   :  { %v1529_v20 = vpop.trf.xlu1 }
 0xc6d   :  { %3613 = vmatmul.mubr.msk.f32.gmra.mrb[24].mxu0 %vm408_vm6, %v1529_v20 }
 0xc70   :  { %v1530_v47 = vpop.trf.xlu1 }
 0xc71   :  { %3615 = vmatprep.mubr.msk.f32.mxu0 %vm408_vm6, %v1530_v47 }
 0xc74   :  { %v1531_v8 = vpop.trf.xlu1 }
 0xc75   :  { %3616 = vmatmul.mubr.msk.f32.gmra.mrb[26].mxu0 %vm408_vm6, %v1531_v8 }
 0xc78   :  { %v1532_v52 = vpop.trf.xlu1 }
 0xc79   :  { %3618 = vmatprep.mubr.msk.f32.mxu0 %vm408_vm6, %v1532_v52 }
 0xc7c   :  { %v1533_v34 = vpop.trf.xlu1 }
 0xc7d   :  { %3619 = vmatmul.mubr.msk.f32.gmra.mrb[28].mxu0 %vm408_vm6, %v1533_v34 }
 0xc7e   :  { %3653 = vmatprep.mubr.msk.f32.mxu0 %vm4442_vm7, %v4441_v17 }
 0xd18   :  { %v3599_v48 = vpop.f32.mrb[14].mxu0 }
 0xd19   :  { %v1728_v61 = vmul.f32 0.35355338, %v3599_v48  ;;  %v1648_v16 = vpop.f32.mrb[15].mxu0 }
 0xd1a   :  { %v1727_v10 = vmul.f32 0.35355338, %v1648_v16 }
 0xd1b   :  { %v4979_v11 = vadd.f32 %v1728_v61, %v4701_v50 }
 0xd1c   :  { %v4985_v25 = vadd.f32 %v4982_v32, %v1727_v10 }
 0xd1d   :  { %1761 = vmax.xlane.f32.xlu0 %v4979_v11 }
 0xd20   :  { %v3602_v44 = vpop.f32.mrb[16].mxu0 }
 0xd21   :  { %1759 = vmax.xlane.f32.xlu0 %v4985_v25  ;;  %v1658_v56 = vpop.f32.mrb[17].mxu0  ;;  %v1730_v23 = vmul.f32 0.35355338, %v3602_v44 }
 0xd22   :  { %v1729_v58 = vmul.f32 0.35355338, %v1658_v56 }
 0xd23   :  { %v4997_v27 = vadd.f32 %v4994_v24, %v1730_v23 }
 0xd24   :  { %v4991_v6 = vadd.f32 %v4988_v45, %v1729_v58 }
 0xd26   :  { %1763 = vmax.xlane.f32.xlu0 %v4991_v6 }
 0xd28   :  { %v3605_v50 = vpop.f32.mrb[18].mxu0 }
 0xd29   :  { %v1732_v30 = vmul.f32 0.35355338, %v3605_v50  ;;  %v1668_v31 = vpop.f32.mrb[19].mxu0 }
 0xd2a   :  { %v1731_v14 = vmul.f32 0.35355338, %v1668_v31  ;;  %1765 = vmax.xlane.f32.xlu0 %v4997_v27 }
 0xd2b   :  { %v5003_v0 = vadd.f32 %v5000_v49, %v1732_v30 }
 0xd2c   :  { %v5006_v7 = vadd.f32 %v1731_v14, %v4716_v9 }
 0xd2e   :  { %1769 = vmax.xlane.f32.xlu0 %v5003_v0  ;;  %1767 = vmax.xlane.f32.xlu1 %v5006_v7 }
 0xd30   :  { %v3608_v33 = vpop.f32.mrb[20].mxu0 }
 0xd31   :  { %v1734_v41 = vmul.f32 0.35355338, %v3608_v33  ;;  %v1678_v62 = vpop.f32.mrb[21].mxu0 }
 0xd32   :  { %v1733_v28 = vmul.f32 0.35355338, %v1678_v62 }
 0xd33   :  { %v5011_v20 = vadd.f32 %v1734_v41, %v4722_v12 }
 0xd34   :  { %v5015_v47 = vadd.f32 %v1733_v28, %v4728_v18 }
 0xd35   :  { %1773 = vmax.xlane.f32.xlu0 %v5011_v20 }
 0xd38   :  { %v3611_v8 = vpop.f32.mrb[22].mxu0 }
 0xd39   :  { %v1736_v52 = vmul.f32 0.35355338, %v3611_v8  ;;  %1771 = vmax.xlane.f32.xlu0 %v5015_v47  ;;  %v1688_v9 = vpop.f32.mrb[23].mxu0 }
 0xd3a   :  { %v1735_v48 = vmul.f32 0.35355338, %v1688_v9 }
 0xd3b   :  { %v5019_v34 = vadd.f32 %v1736_v52, %v4734_v21 }
 0xd3c   :  { %v5023_v61 = vadd.f32 %v1735_v48, %v4740_v26 }
 0xd3d   :  { %1777 = vmax.xlane.f32.xlu0 %v5019_v34 }
 0xd40   :  { %v3614_v12 = vpop.f32.mrb[24].mxu0 }
 0xd41   :  { %v1738_v16 = vmul.f32 0.35355338, %v3614_v12  ;;  %1775 = vmax.xlane.f32.xlu0 %v5023_v61  ;;  %v1698_v18 = vpop.f32.mrb[25].mxu0 }
 0xd42   :  { %v1737_v44 = vmul.f32 0.35355338, %v1698_v18 }
 0xd43   :  { %v5027_v10 = vadd.f32 %v1738_v16, %v4746_v29 }
 0xd44   :  { %v5031_v21 = vadd.f32 %v1737_v44, %v4752_v35 }
 0xd45   :  { %1781 = vmax.xlane.f32.xlu0 %v5027_v10 }
 0xd48   :  { %v3617_v56 = vpop.f32.mrb[26].mxu0 }
 0xd49   :  { %v1740_v58 = vmul.f32 0.35355338, %v3617_v56  ;;  %1779 = vmax.xlane.f32.xlu0 %v5031_v21  ;;  %v1708_v26 = vpop.f32.mrb[27].mxu0 }
 0xd4a   :  { %v1739_v23 = vmul.f32 0.35355338, %v1708_v26 }
 0xd4b   :  { %v5035_v50 = vadd.f32 %v1740_v58, %v4758_v40 }
 0xd4c   :  { %v5038_v30 = vadd.f32 %v1739_v23, %v4766_v46 }
 0xd4d   :  { %1785 = vmax.xlane.f32.xlu0 %v5035_v50 }
 0xd50   :  { %v3620_v29 = vpop.f32.mrb[28].mxu0 }
 0xd51   :  { %1783 = vmax.xlane.f32.xlu0 %v5038_v30  ;;  %v1718_v31 = vpop.f32.mrb[29].mxu0  ;;  %v1742_v35 = vmul.f32 0.35355338, %v3620_v29 }
 0xd52   :  { %v1741_v14 = vmul.f32 0.35355338, %v1718_v31 }
 0xd53   :  { %v5046_v41 = vadd.f32 %v1742_v35, %v4780_v60 }
 0xd54   :  { %v5043_v33 = vadd.f32 %v1741_v14, %v4778_v57 }
 0xd56   :  { %1787 = vmax.xlane.f32.xlu0 %v5043_v33 }
 0xd5a   :  { %1789 = vmax.xlane.f32.xlu0 %v5046_v41 }
 0xdaa   :  { %v1762_v40 = vpop.xlane.xlu0 %1761 }
 0xdab   :  { %v1792_v46 = vsub.f32 %v4979_v11, %v1762_v40 }
 0xdad   :  { %v1809_v62 = vmul.f32 1.442695, %v1792_v46 }
 0xdae   :  { %v1760_v28 = vpop.xlane.xlu0 %1759 }
 0xdaf   :  { %4049 = vpow2.f32 %v1809_v62  ;;  %v1791_v8 = vsub.f32 %v4985_v25, %v1760_v28 }
 0xdb1   :  { %v1807_v52 = vmul.f32 1.442695, %v1791_v8 }
 0xdb3   :  { %4051 = vpow2.f32 %v1807_v52  ;;  %v1764_v9 = vpop.xlane.xlu0 %1763 }
 0xdb4   :  { %v1793_v48 = vsub.f32 %v4991_v6, %v1764_v9 }
 0xdb6   :  { %v1811_v11 = vmul.f32 1.442695, %v1793_v48 }
 0xdb7   :  { %v1766_v57 = vpop.xlane.xlu0 %1765 }
 0xdb8   :  { %v1794_v60 = vsub.f32 %v4997_v27, %v1766_v57 }
 0xdb9   :  { %v5054_v12 = vpop.eup %4049 }
 0xdba   :  { %v1813_v16 = vmul.f32 1.442695, %v1794_v60  ;;  %1841 = vadd.xlane.f32.xlu0 %v5054_v12 }
 0xdbb   :  { %v1770_v18 = vpop.xlane.xlu0 %1769  ;;  %v1768_v25 = vpop.xlane.xlu1 %1767 }
 0xdbc   :  { %4053 = vpow2.f32 %v1813_v16  ;;  %v1796_v44 = vsub.f32 %v5003_v0, %v1770_v18  ;;  %v1795_v6 = vsub.f32 %v5006_v7, %v1768_v25 }
 0xdbd   :  { %v5058_v56 = vpop.eup %4051  ;;  %4055 = vpow2.f32 %v1811_v11 }
 0xdbe   :  { %1839 = vadd.xlane.f32.xlu0 %v5058_v56  ;;  %v1817_v58 = vmul.f32 1.442695, %v1796_v44  ;;  %v1815_v26 = vmul.f32 1.442695, %v1795_v6 }
 0xdc0   :  { %4057 = vpow2.f32 %v1817_v58 }
 0xdc1   :  { %4059 = vpow2.f32 %v1815_v26 }
 0xdc2   :  { %v1774_v27 = vpop.xlane.xlu0 %1773 }
 0xdc3   :  { %v1798_v23 = vsub.f32 %v5011_v20, %v1774_v27 }
 0xdc5   :  { %v1821_v0 = vmul.f32 1.442695, %v1798_v23 }
 0xdc6   :  { %v5063_v29 = vpop.eup %4053  ;;  %v1772_v31 = vpop.xlane.xlu0 %1771 }
 0xdc7   :  { %1845 = vadd.xlane.f32.xlu0 %v5063_v29  ;;  %v1797_v35 = vsub.f32 %v5015_v47, %v1772_v31  ;;  %v5067_v14 = vpop.eup %4055  ;;  %4061 = vpow2.f32 %v1821_v0 }
 0xdc9   :  { %v1819_v7 = vmul.f32 1.442695, %v1797_v35 }
 0xdca   :  { %v1778_v40 = vpop.xlane.xlu0 %1777  ;;  %v5071_v62 = vpop.eup %4057 }
 0xdcb   :  { %1843 = vadd.xlane.f32.xlu0 %v5067_v14  ;;  %v1800_v46 = vsub.f32 %v5019_v34, %v1778_v40  ;;  %4063 = vpow2.f32 %v1819_v7  ;;  %v5075_v52 = vpop.eup %4059 }
 0xdcd   :  { %v1825_v28 = vmul.f32 1.442695, %v1800_v46 }
 0xdce   :  { %v1776_v20 = vpop.xlane.xlu0 %1775 }
 0xdcf   :  { %1849 = vadd.xlane.f32.xlu0 %v5071_v62  ;;  %v1799_v8 = vsub.f32 %v5023_v61, %v1776_v20  ;;  %4065 = vpow2.f32 %v1825_v28 }
 0xdd1   :  { %v1823_v9 = vmul.f32 1.442695, %v1799_v8  ;;  %v5078_v57 = vpop.eup %4061 }
 0xdd2   :  { %v1782_v47 = vpop.xlane.xlu0 %1781 }
 0xdd3   :  { %1847 = vadd.xlane.f32.xlu0 %v5075_v52  ;;  %4067 = vpow2.f32 %v1823_v9  ;;  %v1802_v60 = vsub.f32 %v5027_v10, %v1782_v47 }
 0xdd5   :  { %v5083_v18 = vpop.eup %4063  ;;  %v1829_v44 = vmul.f32 1.442695, %v1802_v60 }
 0xdd6   :  { %v1780_v48 = vpop.xlane.xlu0 %1779 }
 0xdd7   :  { %v1801_v34 = vsub.f32 %v5031_v21, %v1780_v48  ;;  %1853 = vadd.xlane.f32.xlu0 %v5078_v57 }
 0xdd9   :  { %v1827_v16 = vmul.f32 1.442695, %v1801_v34  ;;  %v5087_v58 = vpop.eup %4065 }
 0xdda   :  { %v1786_v61 = vpop.xlane.xlu0 %1785 }
 0xddb   :  { %4069 = vpow2.f32 %v1827_v16  ;;  %v1804_v11 = vsub.f32 %v5035_v50, %v1786_v61  ;;  %1851 = vadd.xlane.f32.xlu0 %v5083_v18 }
 0xddd   :  { %v1833_v25 = vmul.f32 1.442695, %v1804_v11  ;;  %v5091_v27 = vpop.eup %4067 }
 0xdde   :  { %v1784_v6 = vpop.xlane.xlu0 %1783 }
 0xddf   :  { %4071 = vpow2.f32 %v1833_v25  ;;  %v1803_v21 = vsub.f32 %v5038_v30, %v1784_v6  ;;  %1857 = vadd.xlane.f32.xlu0 %v5087_v58 }
 0xde0   :  { %4073 = vpow2.f32 %v1829_v44 }
 0xde1   :  { %v1831_v10 = vmul.f32 1.442695, %v1803_v21 }
 0xde3   :  { %4075 = vpow2.f32 %v1831_v10  ;;  %v1788_v26 = vpop.xlane.xlu0 %1787  ;;  %1855 = vadd.xlane.f32.xlu0 %v5091_v27 }
 0xde4   :  { %v1805_v50 = vsub.f32 %v5043_v33, %v1788_v26 }
 0xde5   :  { %v5095_v23 = vpop.eup %4069 }
 0xde6   :  { %v1835_v31 = vmul.f32 1.442695, %v1805_v50 }
 0xde7   :  { %v1790_v0 = vpop.xlane.xlu0 %1789  ;;  %1859 = vadd.xlane.f32.xlu0 %v5095_v23 }
 0xde8   :  { %4077 = vpow2.f32 %v1835_v31  ;;  %v1806_v30 = vsub.f32 %v5046_v41, %v1790_v0 }
 0xde9   :  { %v5099_v35 = vpop.eup %4071 }
 0xdea   :  { %v5101_v40 = vpop.eup %4073  ;;  %v1837_v7 = vmul.f32 1.442695, %v1806_v30  ;;  %1865 = vadd.xlane.f32.xlu1 %v5099_v35 }
 0xdeb   :  { %1861 = vadd.xlane.f32.xlu0 %v5101_v40 }
 0xdec   :  { %4079 = vpow2.f32 %v1837_v7 }
 0xded   :  { %v5105_v33 = vpop.eup %4075 }
 0xdef   :  { %1863 = vadd.xlane.f32.xlu0 %v5105_v33 }
 0xdf2   :  { %v5108_v46 = vpop.eup %4077 }
 0xdf3   :  { %1867 = vadd.xlane.f32.xlu0 %v5108_v46 }
 0xdf6   :  { %v5111_v20 = vpop.eup %4079 }
 0xdf7   :  { %1869 = vadd.xlane.f32.xlu1 %v5111_v20 }
 0xe08   :  { %1991 = vperm.xlu1 %3941, %v4912_v2  }
 0xe09   :  { %1426 = vperm.xlu0 %3940, %v4912_v2  }
 0xe0c   :  { %3942 = vset.pattern.permute.xlu1 %v4446_v19 }
 0xe0d   :  { %1999 = vperm.xlu1 %3942, %v4912_v2   ;;  %3948 = vset.pattern.permute.xlu0 %v4429_v1 }
 0xe11   :  { %3943 = vset.pattern.permute.xlu1 %v4447_v59 }
 0xe12   :  { %2006 = vperm.xlu1 %3943, %v4912_v2  }
 0xe16   :  { %3944 = vset.pattern.permute.xlu1 %v4448_v42 }
 0xe17   :  { %2160 = vperm.xlu1 %3944, %v4912_v2  }
 0xe1b   :  { %3945 = vset.pattern.permute.xlu1 %v4449_v15 }
 0xe1c   :  { %2181 = vperm.xlu1 %3945, %v4912_v2  }
 0xe20   :  { %3946 = vset.pattern.permute.xlu1 %v4450_v22 }
 0xe21   :  { %2189 = vperm.xlu1 %3946, %v4912_v2  }
 0xe25   :  { %3947 = vset.pattern.permute.xlu1 %v4430_v3 }
 0xe47   :  { %v1842_v41 = vpop.xlane.xlu0 %1841 }
 0xe48   :  { %4081 = vrcp.f32 %v1842_v41 }
 0xe4b   :  { %v1840_v28 = vpop.xlane.xlu0 %1839 }
 0xe4c   :  { %4083 = vrcp.f32 %v1840_v28 }
 0xe52   :  { %v4082_v8 = vpop.eup %4081 }
 0xe53   :  { %v1888_v34 = vmul.f32 %v4082_v8, %v5054_v12 }
 0xe54   :  { %v1846_v47 = vpop.xlane.xlu0 %1845 }
 0xe55   :  { %4085 = vrcp.f32 %v1846_v47 }
 0xe56   :  { %v4084_v9 = vpop.eup %4083 }
 0xe57   :  { %v1887_v48 = vmul.f32 %v4084_v9, %v5058_v56 }
 0xe58   :  { %v1844_v60 = vpop.xlane.xlu0 %1843 }
 0xe59   :  { %4087 = vrcp.f32 %v1844_v60  ;;  %v3801_v16 = vpack.c.bf16 %v1888_v34, %v1887_v48 }
 0xe5b   :  { %3802 = vmatpush3.bf16.xpose.msra.mxu0 %v3801_v16 }
 0xe5c   :  { %v1850_v61 = vpop.xlane.xlu0 %1849  ;;  %3803 = vmatprep.subr.bf16.mxu0 %v4444_v54 }
 0xe5d   :  { %4089 = vrcp.f32 %v1850_v61 }
 0xe5f   :  { %v4086_v11 = vpop.eup %4085 }
 0xe60   :  { %v1848_v2 = vpop.xlane.xlu0 %1847  ;;  %v1890_v21 = vmul.f32 %v4086_v11, %v5063_v29 }
 0xe61   :  { %4091 = vrcp.f32 %v1848_v2 }
 0xe63   :  { %v4088_v44 = vpop.eup %4087 }
 0xe64   :  { %v1854_v25 = vpop.xlane.xlu0 %1853  ;;  %v1889_v6 = vmul.f32 %v4088_v44, %v5067_v14 }
 0xe65   :  { %4093 = vrcp.f32 %v1854_v25 }
 0xe66   :  { %v3804_v56 = vpack.c.bf16 %v1890_v21, %v1889_v6 }
 0xe67   :  { %v4090_v10 = vpop.eup %4089 }
 0xe68   :  { %3805 = vmatpush3.bf16.xpose.msra.mxu0 %v3804_v56  ;;  %v1852_v12 = vpop.xlane.xlu0 %1851  ;;  %v1892_v0 = vmul.f32 %v4090_v10, %v5071_v62 }
 0xe69   :  { %4095 = vrcp.f32 %v1852_v12  ;;  %3806 = vmatprep.subr.bf16.mxu0 %v4444_v54 }
 0xe6b   :  { %v4092_v26 = vpop.eup %4091 }
 0xe6c   :  { %v1858_v50 = vpop.xlane.xlu0 %1857  ;;  %v1891_v31 = vmul.f32 %v4092_v26, %v5075_v52 }
 0xe6d   :  { %4097 = vrcp.f32 %v1858_v50 }
 0xe6e   :  { %v3807_v30 = vpack.c.bf16 %v1892_v0, %v1891_v31 }
 0xe6f   :  { %v4094_v7 = vpop.eup %4093 }
 0xe70   :  { %3808 = vmatpush3.bf16.xpose.msra.mxu0 %v3807_v30  ;;  %v1856_v14 = vpop.xlane.xlu0 %1855  ;;  %v1894_v8 = vmul.f32 %v4094_v7, %v5078_v57 }
 0xe71   :  { %4099 = vrcp.f32 %v1856_v14  ;;  %3809 = vmatprep.subr.bf16.mxu0 %v4444_v54 }
 0xe73   :  { %v4096_v29 = vpop.eup %4095 }
 0xe74   :  { %v1860_v41 = vpop.xlane.xlu0 %1859  ;;  %v1893_v28 = vmul.f32 %v4096_v29, %v5083_v18 }
 0xe75   :  { %4101 = vrcp.f32 %v1860_v41 }
 0xe76   :  { %v3810_v47 = vpack.c.bf16 %v1894_v8, %v1893_v28 }
 0xe77   :  { %v4098_v9 = vpop.eup %4097  ;;  %v1866_v48 = vpop.xlane.xlu1 %1865 }
 0xe78   :  { %3811 = vmatpush3.bf16.xpose.msra.mxu0 %v3810_v47  ;;  %v1862_v52 = vpop.xlane.xlu0 %1861  ;;  %v1896_v16 = vmul.f32 %v4098_v9, %v5087_v58 }
 0xe79   :  { %4103 = vrcp.f32 %v1862_v52  ;;  %3812 = vmatprep.subr.bf16.mxu0 %v4444_v54 }
 0xe7b   :  { %v4100_v62 = vpop.eup %4099 }
 0xe7c   :  { %v1864_v34 = vpop.xlane.xlu0 %1863  ;;  %v1895_v60 = vmul.f32 %v4100_v62, %v5091_v27 }
 0xe7d   :  { %4105 = vrcp.f32 %v1864_v34 }
 0xe7e   :  { %v3813_v61 = vpack.c.bf16 %v1896_v16, %v1895_v60  ;;  %4107 = vrcp.f32 %v1866_v48 }
 0xe7f   :  { %v4102_v57 = vpop.eup %4101 }
 0xe80   :  { %3814 = vmatpush3.bf16.xpose.msra.mxu0 %v3813_v61  ;;  %v1868_v2 = vpop.xlane.xlu0 %1867  ;;  %v1897_v44 = vmul.f32 %v4102_v57, %v5095_v23 }
 0xe81   :  { %3815 = vmatprep.subr.bf16.mxu0 %v4444_v54 }
 0xe83   :  { %v4104_v18 = vpop.eup %4103 }
 0xe84   :  { %v1870_v11 = vpop.xlane.xlu1 %1869  ;;  %v1898_v25 = vmul.f32 %v4104_v18, %v5101_v40 }
 0xe85   :  { %4109 = vrcp.f32 %v1870_v11 }
 0xe86   :  { %v3816_v6 = vpack.c.bf16 %v1898_v25, %v1897_v44  ;;  %4111 = vrcp.f32 %v1868_v2  ;;  %v2004_v44 = vld [vmem:[#allocation13 + $0x8] sm:$0xff] }
 0xe87   :  { %v4106_v21 = vpop.eup %4105 }
 0xe88   :  { %3817 = vmatpush3.bf16.xpose.msra.mxu0 %v3816_v6  ;;  %v4108_v58 = vpop.eup %4107  ;;  %v1899_v27 = vmul.f32 %v4106_v21, %v5105_v33  ;;  %v1427_v31 = vpop.permute.xlu0 %1426 }
 0xe89   :  { %3818 = vmatprep.subr.bf16.mxu0 %v4444_v54  ;;  %v1900_v56 = vmul.f32 %v4108_v58, %v5099_v35  ;;  %v1499_v0 = vadd.f32 %v4958_v63, %v1427_v31 }
 0xe8b   :  { %v3819_v12 = vpack.c.bf16 %v1900_v56, %v1899_v27  ;;  %v2084_v56 = vld [vmem:[#allocation14 + $0x8] sm:$0xff] }
 0xe8f   :  { %v4110_v10 = vpop.eup %4109 }
 0xe90   :  { %3820 = vmatpush3.bf16.xpose.msra.mxu0 %v3819_v12  ;;  %v4112_v26 = vpop.eup %4111  ;;  %v1902_v23 = vmul.f32 %v4110_v10, %v5111_v20  ;;  %v5167_v12 = vld [vmem:[%s5411_s4 + $0x10] sm:$0xff] }
 0xe91   :  { %3821 = vmatprep.subr.bf16.mxu0 %v4444_v54  ;;  %v1901_v40 = vmul.f32 %v4112_v26, %v5108_v46  ;;  %2199 = vperm.xlu1 %3947, %v5167_v12  }
 0xe92   :  { %2292 = vperm.xlu0 %3948, %v5167_v12  }
 0xe93   :  { %v3822_v50 = vpack.c.bf16 %v1902_v23, %v1901_v40 }
 0xe95   :  { %3949 = vset.pattern.permute.xlu1 %v4431_v4 }
 0xe96   :  { %3966 = vset.pattern.permute.xlu0 %v4439_v55  ;;  %2300 = vperm.xlu1 %3949, %v5167_v12  }
 0xe98   :  { %3823 = vmatpush3.bf16.xpose.msra.mxu0 %v3822_v50 }
 0xe99   :  { %3656 = vmatprep.subr.mxu0 %v4441_v17 }
 0xe9a   :  { %3965 = vset.pattern.permute.xlu1 %v4438_v53 }
 0xe9f   :  { %3654 = vmatmul.mubr.f32.vlgmr.msra.gmra.mrb[30].mxu0 %v1499_v0 }
 0xea0   :  { %3658 = vmatprep.mubr.msk.f32.mxu0 %vm4442_vm7, %v4441_v17 }
 0xf72   :  { %v1969_v35 = vpop.f32.mrb[30].mxu0 }
 0xf73   :  { %v1973_v33 = vadd.f32 %v1969_v35, %v4921_v38  ;;  %v3655_v30 = vpop.f32.mrb[31].mxu0  ;;  %v1992_v38 = vpop.permute.xlu1 %1991 }
 0xf75   :  { %v1974_v14 = vrot.slane %v1973_v33, 4 }
 0xf77   :  { %v1975_v7 = vadd.f32 %v1974_v14, %v1973_v33  ;;  %v2000_v18 = vpop.permute.xlu1 %1999 }
 0xf79   :  { %v1976_v20 = vrot.slane %v1975_v7, 2 }
 0xf7b   :  { %v1977_v29 = vadd.f32 %v1976_v20, %v1975_v7  ;;  %v2007_v25 = vpop.permute.xlu1 %2006 }
 0xf7d   :  { %v1978_v46 = vrot.slane %v1977_v29, 1 }
 0xf7f   :  { %v1979_v41 = vadd.f32 %v1978_v46, %v1977_v29  ;;  %v2161_v26 = vpop.permute.xlu1 %2160 }
 0xf81   :  { %v1980_v28 = vmul.f32 0.125, %v1979_v41 }
 0xf83   :  { %v1981_v8 = vsub.f32 %v1973_v33, %v1980_v28 }
 0xf85   :  { %v1982_v47 = vmul.f32 %v1981_v8, %v1981_v8  ;;  %v1994_v61 = vmul.f32 %v1992_v38, %v1981_v8 }
 0xf87   :  { %v1983_v52 = vrot.slane %v1982_v47, 4 }
 0xf89   :  { %v1984_v9 = vadd.f32 %v1983_v52, %v1982_v47 }
 0xf8b   :  { %v1985_v63 = vrot.slane %v1984_v9, 2 }
 0xf8d   :  { %v1986_v62 = vadd.f32 %v1985_v63, %v1984_v9 }
 0xf8f   :  { %v1987_v48 = vrot.slane %v1986_v62, 1 }
 0xf91   :  { %v1988_v34 = vadd.f32 %v1987_v48, %v1986_v62 }
 0xf93   :  { %v1989_v60 = vmul.f32 0.125, %v1988_v34 }
 0xf95   :  { %v1995_v16 = vadd.f32 1e-06, %v1989_v60  ;;  %v2196_v60 = vld [vmem:[#allocation8 + $0x8] sm:$0xff] }
 0xf97   :  { %4113 = vrsqrt.f32 %v1995_v16 }
 0xfa1   :  { %v4114_v57 = vpop.eup %4113 }
 0xfa2   :  { %v1997_v2 = vmul.f32 %v4114_v57, %v1994_v61 }
 0xfa4   :  { %v2002_v11 = vadd.f32 %v2000_v18, %v1997_v2 }
 0xfa6   :  { %3657 = vmatpush3.msra.mxu0 %v2002_v11 }
 0xfa7   :  { %3659 = vmatmul.mubr.msk.f32.vlgmr.msra.gmra.mrb[32].mxu0 %vm408_vm6, %v2004_v44  ;;  %3661 = vmatprep.subr.mxu0 %v4441_v17 }
 0xfa8   :  { %3663 = vmatprep.mubr.msk.f32.mxu0 %vm4442_vm7, %v4441_v17 }
0x107a   :  { %v2078_v6 = vpop.f32.mrb[32].mxu0 }
0x107b   :  { %v2079_v21 = vadd.f32 %v2078_v6, %v2007_v25  ;;  %v3660_v58 = vpop.f32.mrb[33].mxu0 }
0x107d   :  { %v2082_v27 = vmax.f32 %v2079_v21, 0.0 }
0x107f   :  { %3662 = vmatpush3.msra.mxu0 %v2082_v27 }
0x1080   :  { %3664 = vmatmul.mubr.msk.f32.vlgmr.msra.gmra.mrb[34].mxu0 %vm408_vm6, %v2084_v56  ;;  %3666 = vmatprep.subr.mxu0 %v4441_v17 }
0x1081   :  { %3668 = vmatprep.mubr.msk.f32.mxu0 %vm4442_vm7, %v4441_v17 }
0x1153   :  { %v2154_v10 = vpop.f32.mrb[34].mxu0 }
0x1154   :  { %v2158_v23 = vadd.f32 %v2154_v10, %v1973_v33  ;;  %v3665_v40 = vpop.f32.mrb[35].mxu0  ;;  %v2182_v33 = vpop.permute.xlu1 %2181 }
0x1156   :  { %v2163_v50 = vadd.f32 %v2161_v26, %v2158_v23 }
0x1158   :  { %v2164_v31 = vrot.slane %v2163_v50, 4  ;;  %v2190_v62 = vpop.permute.xlu1 %2189 }
0x115a   :  { %v2165_v0 = vadd.f32 %v2164_v31, %v2163_v50 }
0x115c   :  { %v2166_v35 = vrot.slane %v2165_v0, 2  ;;  %v2200_v16 = vpop.permute.xlu1 %2199 }
0x115e   :  { %v2167_v30 = vadd.f32 %v2166_v35, %v2165_v0  ;;  %v2293_v35 = vpop.permute.xlu0 %2292 }
0x1160   :  { %v2168_v14 = vrot.slane %v2167_v30, 1 }
0x1162   :  { %v2169_v7 = vadd.f32 %v2168_v14, %v2167_v30 }
0x1164   :  { %v2170_v20 = vmul.f32 0.125, %v2169_v7  ;;  %v2301_v7 = vpop.permute.xlu1 %2300 }
0x1166   :  { %v2171_v29 = vsub.f32 %v2163_v50, %v2170_v20 }
0x1168   :  { %v2172_v4 = vmul.f32 %v2171_v29, %v2171_v29  ;;  %v2184_v9 = vmul.f32 %v2182_v33, %v2171_v29 }
0x116a   :  { %v2173_v46 = vrot.slane %v2172_v4, 4 }
0x116c   :  { %v2174_v55 = vadd.f32 %v2173_v46, %v2172_v4 }
0x116e   :  { %v2175_v41 = vrot.slane %v2174_v55, 2 }
0x1170   :  { %v2176_v28 = vadd.f32 %v2175_v41, %v2174_v55 }
0x1172   :  { %v2177_v8 = vrot.slane %v2176_v28, 1 }
0x1174   :  { %v2178_v53 = vadd.f32 %v2177_v8, %v2176_v28 }
0x1176   :  { %v2179_v47 = vmul.f32 0.125, %v2178_v53 }
0x1178   :  { %v2185_v52 = vadd.f32 1e-06, %v2179_v47 }
0x117a   :  { %4115 = vrsqrt.f32 %v2185_v52 }
0x1184   :  { %v4116_v63 = vpop.eup %4115 }
0x1185   :  { %v2187_v48 = vmul.f32 %v4116_v63, %v2184_v9  ;;  %v2351_v9 = vld [vmem:[#allocation10 + $0x20] sm:$0xff] }
0x1187   :  { %v2192_v34 = vadd.f32 %v2190_v62, %v2187_v48 }
0x1189   :  { %3667 = vmatpush3.msra.mxu0 %v2192_v34 }
0x118a   :  { %3669 = vmatmul.mubr.msk.f32.vlgmr.msra.gmra.mrb[36].mxu0 %vm408_vm6, %v2196_v60 }
0x118b   :  { %3681 = vmatprep.mubr.msk.f32.mxu0 %vm311_vm1, %v2351_v9 }
0x125d   :  { %v2271_v38 = vpop.f32.mrb[36].mxu0 }
0x125e   :  { %v2272_v61 = vadd.f32 %v2271_v38, %v2200_v16  ;;  %v3670_v57 = vpop.f32.mrb[37].mxu0 }
0x1260   :  { %v2275_v18 = vrot.slane %v2272_v61, 4 }
0x1262   :  { %v2276_v2 = vadd.f32 %v2275_v18, %v2272_v61 }
0x1264   :  { %v2277_v11 = vrot.slane %v2276_v2, 2 }
0x1266   :  { %v2278_v44 = vadd.f32 %v2277_v11, %v2276_v2 }
0x1268   :  { %v2279_v25 = vrot.slane %v2278_v44, 1 }
0x126a   :  { %v2280_v6 = vadd.f32 %v2279_v25, %v2278_v44 }
0x126c   :  { %v2281_v21 = vmul.f32 0.125, %v2280_v6 }
0x126e   :  { %v2282_v58 = vsub.f32 %v2272_v61, %v2281_v21  ;;  %v2352_v21 = vld [vmem:[#allocation10 + $0x28] sm:$0xff] }
0x1270   :  { %v2283_v27 = vmul.f32 %v2282_v58, %v2282_v58  ;;  %v2295_v30 = vmul.f32 %v2293_v35, %v2282_v58  ;;  %v2445_v58 = vld [vmem:[#allocation11 + $0x10] sm:$0xff] }
0x1272   :  { %v2284_v56 = vrot.slane %v2283_v27, 4 }
0x1274   :  { %v2285_v10 = vadd.f32 %v2284_v56, %v2283_v27 }
0x1276   :  { %v2286_v26 = vrot.slane %v2285_v10, 2 }
0x1278   :  { %v2287_v23 = vadd.f32 %v2286_v26, %v2285_v10 }
0x127a   :  { %v2288_v40 = vrot.slane %v2287_v23, 1 }
0x127c   :  { %v2289_v50 = vadd.f32 %v2288_v40, %v2287_v23 }
0x127e   :  { %v2290_v31 = vmul.f32 0.125, %v2289_v50 }
0x1280   :  { %v2296_v0 = vadd.f32 1e-06, %v2290_v31 }
0x1282   :  { %4117 = vrsqrt.f32 %v2296_v0 }
0x128c   :  { %v4118_v14 = vpop.eup %4117 }
0x128d   :  { %v2298_v20 = vmul.f32 %v4118_v14, %v2295_v30 }
0x128f   :  { %v5176_v29 = vadd.f32 %v2301_v7, %v2298_v20 }
0x1291   :  { %2305 = vrot.lane.b32.xlu1 %v5176_v29, %s4433_s0  ;;  %3685 = vmatpush3.msra.mxu1 %v5176_v29 }
0x1292   :  { %3687 = vmatmul.mubr.msk.f32.vlgmr.msra.gmra.mrb[18].mxu1 %vm408_vm6, %v2445_v58 }
0x1303   :  { %v2306_v4 = vpop.permute.xlu1 %2305 }
0x1304   :  { %v2308_v46 = vsel %vm224_vm0, 0.0, %v2306_v4  ;;  %v2311_v55 = vmul.f32 %v2306_v4, %v4648_v37  ;;  %v2313_v41 = vmul.f32 %v2306_v4, %v4655_v43  ;;  %v2315_v53 = vmul.f32 %v2306_v4, %v4650_v39 }
0x1305   :  { %v2312_v28 = vmul.f32 %v2308_v46, %v4655_v43  ;;  %v2310_v8 = vmul.f32 %v2308_v46, %v4648_v37  ;;  %v2314_v33 = vmul.f32 %v2308_v46, %v4650_v39  ;;  %v2316_v63 = vmul.f32 %v2308_v46, %v4663_v51 }
0x1306   :  { %v2317_v37 = vmul.f32 %v2306_v4, %v4663_v51  ;;  %v2309_v60 = vmul.f32 %v4943_v36, %v2308_v46 }
0x1307   :  { %v3955_v47 = vpack.i.bf16 %v2313_v41, %v2312_v28  ;;  %v3950_v52 = vpack.i.bf16 %v2311_v55, %v2310_v8  ;;  %v3960_v62 = vpack.i.bf16 %v2315_v53, %v2314_v33 }
0x1309   :  { %3956 = vrot.lane.b32.xlu1 %v3955_v47, %s4436_s21  ;;  %3951 = vrot.lane.b32.xlu0 %v3950_v52, %s4435_s19 }
0x130d   :  { %2344 = vrot.lane.b32.xlu1 %v2316_v63, %s4440_s1  ;;  %3961 = vrot.lane.b32.xlu0 %v3960_v62, %s4437_s23 }
0x1311   :  { %2346 = vrot.lane.b32.xlu0 %v2317_v37, %s4440_s1  ;;  %2435 = vperm.xlu1 %3965, %v5167_v12  }
0x1315   :  { %2440 = vperm.xlu0 %3966, %v5167_v12  }
0x1319   :  { %3968 = vset.pattern.permute.xlu0 %v4445_v13 }
0x1365   :  { %v5211_v50 = vpop.f32.mrb[18].mxu1 }
0x1366   :  { %v3688_v31 = vpop.f32.mrb[19].mxu1 }
0x137b   :  { %v3957_v39 = vpop.permute.xlu1 %3956  ;;  %v3952_v43 = vpop.permute.xlu0 %3951 }
0x137c   :  { %v3954_v48 = vunpack.i.h.bf16 %v3952_v43  ;;  %v3953_v34 = vunpack.i.l.bf16 %v3952_v43  ;;  %v3959_v16 = vunpack.i.h.bf16 %v3957_v39  ;;  %v3958_v38 = vunpack.i.l.bf16 %v3957_v39  ;;  %v4194_v39 = vld [vmem:[#allocation5 + $0x8] sm:$0xff] }
0x137e   :  { %v2324_v61 = vsel %vm279_vm2, %v3953_v34, %v3954_v48  ;;  %v2332_v11 = vsel %vm288_vm3, %v3958_v38, %v3959_v16 }
0x137f   :  { %v3962_v57 = vpop.permute.xlu0 %3961  ;;  %v3824_v51 = vpack.c.bf16 %v2324_v61, %v2309_v60  ;;  %v2345_v6 = vpop.permute.xlu1 %2344 }
0x1380   :  { %v3964_v18 = vunpack.i.h.bf16 %v3962_v57  ;;  %v3963_v2 = vunpack.i.l.bf16 %v3962_v57 }
0x1381   :  { %3825 = vmatprep.subr.bf16.mxu0 %v3824_v51 }
0x1382   :  { %3827 = vmatpush3.bf16.msra.mxu0 %v3824_v51  ;;  %v2340_v13 = vsel %vm297_vm4, %v3963_v2, %v3964_v18 }
0x1383   :  { %v2347_v44 = vpop.permute.xlu0 %2346  ;;  %v3828_v25 = vpack.c.bf16 %v2340_v13, %v2332_v11  ;;  %v4195_v11 = vld [vmem:[#allocation5 + $0x20] sm:$0xff] }
0x1384   :  { %v2348_v36 = vsel %vm306_vm5, %v2345_v6, %v2347_v44 }
0x1385   :  { %3829 = vmatprep.subr.bf16.mxu0 %v3828_v25 }
0x1386   :  { %3831 = vmatpush3.bf16.msra.mxu0 %v3828_v25  ;;  %v4196_v25 = vld [vmem:[#allocation5 + $0x38] sm:$0xff] }
0x1387   :  { %3679 = vmatprep.subr.mxu0 %v2348_v36 }
0x138a   :  { %3680 = vmatpush3.msra.mxu0 %v2348_v36 }
0x138b   :  { %3682 = vmatmul.mubr.msk.f32.vlgmr.msra.gmra.mrb[38].mxu0 %vm311_vm1, %v2352_v21  ;;  %3750 = vmatprep.subr.mxu0 %v4441_v17  ;;  %v4197_v21 = vld [vmem:[#allocation5 + $0x30] sm:$0xff] }
0x138c   :  { %3752 = vmatprep.mubr.msk.f32.mxu0 %vm4442_vm7, %v4441_v17 }
0x1390   :  { %v2436_v56 = vpop.permute.xlu1 %2435 }
0x1394   :  { %v2441_v27 = vpop.permute.xlu0 %2440 }
0x145e   :  { %v3683_v10 = vpop.f32.mrb[38].mxu0 }
0x145f   :  { %v2443_v26 = vadd.f32 %v3683_v10, %v2441_v27  ;;  %v2425_v23 = vpop.f32.mrb[39].mxu0  ;;  %v4198_v10 = vld [vmem:[#allocation5 + $0x48] sm:$0xff] }
0x1460   :  { %v2438_v40 = vadd.f32 %v2436_v56, %v2425_v23 }
0x1461   :  { %3689 = vmatprep.subr.mxu1 %v2443_v26 }
0x1462   :  { %2523 = vxpose.xlu1.b32.start.end [1/1] (short) %v2438_v40, 128  ;;  %3690 = vmatpush3.msra.mxu1 %v2443_v26  ;;  %v4199_v40 = vld [vmem:[#allocation5 + $0x40] sm:$0xff] }
0x1463   :  { %3832 = vmatprep.subr.bf16.mxu1 %v4444_v54 }
0x1480   :  { %3967 = vset.pattern.permute.xlu1 %v4443_v5 }
0x14e2   :  { %v2539_v0 = vpop.trf.xlu1 }
0x14e3   :  { %3691 = vmatprep.mubr.msk.f32.mxu1 %vm408_vm6, %v2539_v0 }
0x14e6   :  { %v2540_v35 = vpop.trf.xlu1 }
0x14e7   :  { %3692 = vmatmul.mubr.msk.f32.vlgmr.msra.gmra.mrb[20].mxu1 %vm408_vm6, %v2540_v35 }
0x14ea   :  { %v2541_v30 = vpop.trf.xlu1 }
0x14eb   :  { %3694 = vmatprep.mubr.msk.f32.mxu1 %vm408_vm6, %v2541_v30 }
0x14ee   :  { %v2542_v14 = vpop.trf.xlu1 }
0x14ef   :  { %3695 = vmatmul.mubr.msk.f32.gmra.mrb[22].mxu1 %vm408_vm6, %v2542_v14  ;;  %v4200_v14 = vld [vmem:[#allocation5 + $0x58] sm:$0xff] }
0x14f2   :  { %v2543_v7 = vpop.trf.xlu1 }
0x14f3   :  { %3697 = vmatprep.mubr.msk.f32.mxu1 %vm408_vm6, %v2543_v7 }
0x14f6   :  { %v2544_v20 = vpop.trf.xlu1 }
0x14f7   :  { %3698 = vmatmul.mubr.msk.f32.gmra.mrb[24].mxu1 %vm408_vm6, %v2544_v20 }
0x14fa   :  { %v2545_v5 = vpop.trf.xlu1 }
0x14fb   :  { %3700 = vmatprep.mubr.msk.f32.mxu1 %vm408_vm6, %v2545_v5  ;;  %v4201_v5 = vld [vmem:[#allocation5 + $0x50] sm:$0xff] }
0x14fe   :  { %v2546_v4 = vpop.trf.xlu1 }
0x14ff   :  { %3701 = vmatmul.mubr.msk.f32.gmra.mrb[26].mxu1 %vm408_vm6, %v2546_v4 }
0x1502   :  { %v2547_v46 = vpop.trf.xlu1 }
0x1503   :  { %3703 = vmatprep.mubr.msk.f32.mxu1 %vm408_vm6, %v2547_v46 }
0x1506   :  { %v2548_v55 = vpop.trf.xlu1 }
0x1507   :  { %3704 = vmatmul.mubr.msk.f32.gmra.mrb[28].mxu1 %vm408_vm6, %v2548_v55 }
0x150a   :  { %v2549_v41 = vpop.trf.xlu1 }
0x150b   :  { %3706 = vmatprep.mubr.msk.f32.mxu1 %vm408_vm6, %v2549_v41 }
0x150e   :  { %v2550_v28 = vpop.trf.xlu1 }
0x150f   :  { %3707 = vmatmul.mubr.msk.f32.gmra.mrb[30].mxu1 %vm408_vm6, %v2550_v28 }
0x1512   :  { %v2551_v8 = vpop.trf.xlu1 }
0x1513   :  { %3709 = vmatprep.mubr.msk.f32.mxu1 %vm408_vm6, %v2551_v8  ;;  %v4202_v8 = vld [vmem:[#allocation5 + $0x68] sm:$0xff] }
0x1516   :  { %v2552_v53 = vpop.trf.xlu1 }
0x1517   :  { %3710 = vmatmul.mubr.msk.f32.gmra.mrb[32].mxu1 %vm408_vm6, %v2552_v53 }
0x151a   :  { %v2553_v47 = vpop.trf.xlu1 }
0x151b   :  { %3712 = vmatprep.mubr.msk.f32.mxu1 %vm408_vm6, %v2553_v47  ;;  %v4203_v47 = vld [vmem:[#allocation5 + $0x60] sm:$0xff] }
0x151e   :  { %v2554_v52 = vpop.trf.xlu1 }
0x151f   :  { %3713 = vmatmul.mubr.msk.f32.gmra.mrb[34].mxu1 %vm408_vm6, %v2554_v52 }
0x1520   :  { %3747 = vmatprep.mubr.msk.f32.mxu1 %vm4442_vm7, %v4441_v17 }
0x15ba   :  { %v3693_v33 = vpop.f32.mrb[20].mxu1 }
0x15bb   :  { %v2669_v9 = vpop.f32.mrb[21].mxu1  ;;  %v2749_v62 = vmul.f32 0.35355338, %v3693_v33 }
0x15bc   :  { %v2748_v63 = vmul.f32 0.35355338, %v2669_v9 }
0x15bd   :  { %v5235_v43 = vadd.f32 %v4194_v39, %v2749_v62  ;;  %v4204_v39 = vld [vmem:[#allocation5 + $0x70] sm:$0xff] }
0x15be   :  { %v5232_v37 = vadd.f32 %v4982_v32, %v2748_v63 }
0x15c0   :  { %2780 = vmax.xlane.f32.xlu0 %v5232_v37 }
0x15c2   :  { %v3696_v48 = vpop.f32.mrb[22].mxu1 }
0x15c3   :  { %v2751_v34 = vmul.f32 0.35355338, %v3696_v48  ;;  %v2679_v60 = vpop.f32.mrb[23].mxu1 }
0x15c4   :  { %v2750_v16 = vmul.f32 0.35355338, %v2679_v60  ;;  %2782 = vmax.xlane.f32.xlu0 %v5235_v43 }
0x15c5   :  { %v5239_v38 = vadd.f32 %v4994_v24, %v2751_v34  ;;  %v4205_v34 = vld [vmem:[#allocation5 + $0x78] sm:$0xff] }
0x15c6   :  { %v5242_v61 = vadd.f32 %v4988_v45, %v2750_v16 }
0x15c8   :  { %2786 = vmax.xlane.f32.xlu0 %v5239_v38  ;;  %2784 = vmax.xlane.f32.xlu1 %v5242_v61 }
0x15ca   :  { %v3699_v32 = vpop.f32.mrb[24].mxu1 }
0x15cb   :  { %v2753_v57 = vmul.f32 0.35355338, %v3699_v32  ;;  %v2689_v51 = vpop.f32.mrb[25].mxu1 }
0x15cc   :  { %v2752_v2 = vmul.f32 0.35355338, %v2689_v51 }
0x15cd   :  { %v5247_v18 = vadd.f32 %v5000_v49, %v2753_v57 }
0x15ce   :  { %v5250_v13 = vadd.f32 %v4195_v11, %v2752_v2 }
0x15cf   :  { %2790 = vmax.xlane.f32.xlu0 %v5247_v18 }
0x15d2   :  { %v3702_v24 = vpop.f32.mrb[26].mxu1 }
0x15d3   :  { %v2755_v44 = vmul.f32 0.35355338, %v3702_v24  ;;  %2788 = vmax.xlane.f32.xlu0 %v5250_v13  ;;  %v2699_v45 = vpop.f32.mrb[27].mxu1 }
0x15d4   :  { %v2754_v36 = vmul.f32 0.35355338, %v2699_v45 }
0x15d5   :  { %v5253_v6 = vadd.f32 %v4196_v25, %v2755_v44 }
0x15d6   :  { %v5256_v49 = vadd.f32 %v4197_v21, %v2754_v36 }
0x15d7   :  { %2794 = vmax.xlane.f32.xlu0 %v5253_v6 }
0x15da   :  { %v3705_v58 = vpop.f32.mrb[28].mxu1 }
0x15db   :  { %v2757_v27 = vmul.f32 0.35355338, %v3705_v58  ;;  %2792 = vmax.xlane.f32.xlu0 %v5256_v49  ;;  %v2709_v56 = vpop.f32.mrb[29].mxu1 }
0x15dc   :  { %v2756_v23 = vmul.f32 0.35355338, %v2709_v56 }
0x15dd   :  { %v5259_v26 = vadd.f32 %v4198_v10, %v2757_v27 }
0x15de   :  { %v5262_v31 = vadd.f32 %v4199_v40, %v2756_v23 }
0x15df   :  { %2798 = vmax.xlane.f32.xlu0 %v5259_v26 }
0x15e2   :  { %v3708_v0 = vpop.f32.mrb[30].mxu1 }
0x15e3   :  { %v2759_v35 = vmul.f32 0.35355338, %v3708_v0  ;;  %2796 = vmax.xlane.f32.xlu0 %v5262_v31  ;;  %v2719_v30 = vpop.f32.mrb[31].mxu1 }
0x15e4   :  { %v2758_v20 = vmul.f32 0.35355338, %v2719_v30 }
0x15e5   :  { %v5265_v7 = vadd.f32 %v4200_v14, %v2759_v35 }
0x15e6   :  { %v5268_v4 = vadd.f32 %v4201_v5, %v2758_v20 }
0x15e7   :  { %2802 = vmax.xlane.f32.xlu0 %v5265_v7 }
0x15ea   :  { %v3711_v46 = vpop.f32.mrb[32].mxu1 }
0x15eb   :  { %v2761_v55 = vmul.f32 0.35355338, %v3711_v46  ;;  %2800 = vmax.xlane.f32.xlu0 %v5268_v4  ;;  %v2729_v41 = vpop.f32.mrb[33].mxu1 }
0x15ec   :  { %v2760_v28 = vmul.f32 0.35355338, %v2729_v41 }
0x15ed   :  { %v5271_v53 = vadd.f32 %v4202_v8, %v2761_v55 }
0x15ee   :  { %v5273_v52 = vadd.f32 %v4203_v47, %v2760_v28 }
0x15ef   :  { %2806 = vmax.xlane.f32.xlu0 %v5271_v53 }
0x15f2   :  { %v3714_v33 = vpop.f32.mrb[34].mxu1 }
0x15f3   :  { %2804 = vmax.xlane.f32.xlu0 %v5273_v52  ;;  %v2739_v9 = vpop.f32.mrb[35].mxu1  ;;  %v2763_v63 = vmul.f32 0.35355338, %v3714_v33 }
0x15f4   :  { %v2762_v62 = vmul.f32 0.35355338, %v2739_v9 }
0x15f5   :  { %v5279_v60 = vadd.f32 %v4205_v34, %v2763_v63 }
0x15f6   :  { %v5277_v48 = vadd.f32 %v4204_v39, %v2762_v62 }
0x15f8   :  { %2808 = vmax.xlane.f32.xlu0 %v5277_v48 }
0x15fc   :  { %2810 = vmax.xlane.f32.xlu0 %v5279_v60 }
0x164d   :  { %v2781_v16 = vpop.xlane.xlu0 %2780 }
0x164e   :  { %v2812_v57 = vsub.f32 %v5232_v37, %v2781_v16 }
0x1650   :  { %v2828_v24 = vmul.f32 1.442695, %v2812_v57 }
0x1651   :  { %v2783_v32 = vpop.xlane.xlu0 %2782 }
0x1652   :  { %v2813_v51 = vsub.f32 %v5235_v43, %v2783_v32 }
0x1654   :  { %v2830_v2 = vmul.f32 1.442695, %v2813_v51 }
0x1655   :  { %v2787_v11 = vpop.xlane.xlu0 %2786  ;;  %v2785_v45 = vpop.xlane.xlu1 %2784 }
0x1656   :  { %4119 = vpow2.f32 %v2830_v2  ;;  %v2815_v44 = vsub.f32 %v5239_v38, %v2787_v11  ;;  %v2814_v36 = vsub.f32 %v5242_v61, %v2785_v45 }
0x1657   :  { %4121 = vpow2.f32 %v2828_v24 }
0x1658   :  { %v2834_v25 = vmul.f32 1.442695, %v2815_v44  ;;  %v2832_v58 = vmul.f32 1.442695, %v2814_v36 }
0x165a   :  { %4123 = vpow2.f32 %v2834_v25 }
0x165b   :  { %4125 = vpow2.f32 %v2832_v58 }
0x165c   :  { %v2791_v21 = vpop.xlane.xlu0 %2790 }
0x165d   :  { %v2817_v27 = vsub.f32 %v5247_v18, %v2791_v21 }
0x165f   :  { %v2838_v43 = vmul.f32 1.442695, %v2817_v27 }
0x1660   :  { %v5288_v56 = vpop.eup %4119  ;;  %v2789_v37 = vpop.xlane.xlu0 %2788 }
0x1661   :  { %2862 = vadd.xlane.f32.xlu0 %v5288_v56  ;;  %v2816_v10 = vsub.f32 %v5250_v13, %v2789_v37  ;;  %v5292_v38 = vpop.eup %4121  ;;  %4127 = vpow2.f32 %v2838_v43 }
0x1663   :  { %v2836_v61 = vmul.f32 1.442695, %v2816_v10 }
0x1664   :  { %v2795_v23 = vpop.xlane.xlu0 %2794  ;;  %v5296_v0 = vpop.eup %4123 }
0x1665   :  { %2860 = vadd.xlane.f32.xlu0 %v5292_v38  ;;  %v2819_v40 = vsub.f32 %v5253_v6, %v2795_v23  ;;  %4129 = vpow2.f32 %v2836_v61  ;;  %v5300_v14 = vpop.eup %4125 }
0x1667   :  { %v2842_v35 = vmul.f32 1.442695, %v2819_v40 }
0x1668   :  { %v2793_v18 = vpop.xlane.xlu0 %2792 }
0x1669   :  { %2866 = vadd.xlane.f32.xlu0 %v5296_v0  ;;  %v2818_v30 = vsub.f32 %v5256_v49, %v2793_v18  ;;  %4131 = vpow2.f32 %v2842_v35 }
0x166b   :  { %v2840_v20 = vmul.f32 1.442695, %v2818_v30  ;;  %v5304_v46 = vpop.eup %4127 }
0x166c   :  { %v2799_v13 = vpop.xlane.xlu0 %2798 }
0x166d   :  { %2864 = vadd.xlane.f32.xlu0 %v5300_v14  ;;  %v2821_v5 = vsub.f32 %v5259_v26, %v2799_v13  ;;  %4133 = vpow2.f32 %v2840_v20 }
0x166f   :  { %v2846_v55 = vmul.f32 1.442695, %v2821_v5  ;;  %v5308_v28 = vpop.eup %4129 }
0x1670   :  { %v2797_v6 = vpop.xlane.xlu0 %2796 }
0x1671   :  { %2870 = vadd.xlane.f32.xlu0 %v5304_v46  ;;  %v2820_v41 = vsub.f32 %v5262_v31, %v2797_v6  ;;  %4135 = vpow2.f32 %v2846_v55 }
0x1673   :  { %v2844_v8 = vmul.f32 1.442695, %v2820_v41  ;;  %v5311_v47 = vpop.eup %4131 }
0x1674   :  { %v2803_v49 = vpop.xlane.xlu0 %2802 }
0x1675   :  { %2868 = vadd.xlane.f32.xlu0 %v5308_v28  ;;  %4137 = vpow2.f32 %v2844_v8  ;;  %v2823_v9 = vsub.f32 %v5265_v7, %v2803_v49 }
0x1677   :  { %v5316_v62 = vpop.eup %4133  ;;  %v2850_v39 = vmul.f32 1.442695, %v2823_v9 }
0x1678   :  { %v2801_v33 = vpop.xlane.xlu0 %2800 }
0x1679   :  { %v2822_v26 = vsub.f32 %v5268_v4, %v2801_v33  ;;  %2874 = vadd.xlane.f32.xlu0 %v5311_v47 }
0x167b   :  { %v2848_v63 = vmul.f32 1.442695, %v2822_v26  ;;  %v5320_v16 = vpop.eup %4135 }
0x167c   :  { %v2807_v31 = vpop.xlane.xlu0 %2806 }
0x167d   :  { %4139 = vpow2.f32 %v2848_v63  ;;  %2872 = vadd.xlane.f32.xlu0 %v5316_v62  ;;  %v2825_v34 = vsub.f32 %v5271_v53, %v2807_v31 }
0x167e   :  { %4141 = vpow2.f32 %v2850_v39 }
0x167f   :  { %v2854_v57 = vmul.f32 1.442695, %v2825_v34  ;;  %v5324_v51 = vpop.eup %4137 }
0x1680   :  { %v2805_v32 = vpop.xlane.xlu0 %2804 }
0x1681   :  { %v2824_v4 = vsub.f32 %v5273_v52, %v2805_v32  ;;  %2878 = vadd.xlane.f32.xlu0 %v5320_v16 }
0x1683   :  { %v2852_v7 = vmul.f32 1.442695, %v2824_v4 }
0x1685   :  { %4143 = vpow2.f32 %v2852_v7  ;;  %2876 = vadd.xlane.f32.xlu0 %v5324_v51  ;;  %v2809_v2 = vpop.xlane.xlu0 %2808 }
0x1686   :  { %4145 = vpow2.f32 %v2854_v57  ;;  %v2826_v11 = vsub.f32 %v5277_v48, %v2809_v2 }
0x1687   :  { %v5328_v53 = vpop.eup %4139 }
0x1688   :  { %v2856_v24 = vmul.f32 1.442695, %v2826_v11  ;;  %v5332_v45 = vpop.eup %4141 }
0x1689   :  { %2880 = vadd.xlane.f32.xlu0 %v5328_v53  ;;  %v2811_v52 = vpop.xlane.xlu0 %2810 }
0x168a   :  { %4147 = vpow2.f32 %v2856_v24  ;;  %v2827_v44 = vsub.f32 %v5279_v60, %v2811_v52 }
0x168c   :  { %v2858_v25 = vmul.f32 1.442695, %v2827_v44 }
0x168d   :  { %2882 = vadd.xlane.f32.xlu0 %v5332_v45 }
0x168e   :  { %4149 = vpow2.f32 %v2858_v25 }
0x168f   :  { %v5335_v36 = vpop.eup %4143 }
0x1690   :  { %v5337_v21 = vpop.eup %4145  ;;  %2884 = vadd.xlane.f32.xlu1 %v5335_v36 }
0x1691   :  { %2886 = vadd.xlane.f32.xlu0 %v5337_v21 }
0x1694   :  { %v5341_v48 = vpop.eup %4147 }
0x1695   :  { %2888 = vadd.xlane.f32.xlu1 %v5341_v48 }
0x1698   :  { %v5344_v58 = vpop.eup %4149 }
0x1699   :  { %2890 = vadd.xlane.f32.xlu0 %v5344_v58 }
0x16a6   :  { %2447 = vperm.xlu1 %3967, %v5167_v12  }
0x16aa   :  { %3969 = vset.pattern.permute.xlu1 %v4446_v19 }
0x16ab   :  { %3020 = vperm.xlu1 %3969, %v5167_v12  }
0x16af   :  { %3012 = vperm.xlu0 %3968, %v5167_v12   ;;  %3970 = vset.pattern.permute.xlu1 %v4447_v59 }
0x16b0   :  { %3027 = vperm.xlu1 %3970, %v5167_v12  }
0x16b3   :  { %3976 = vset.pattern.permute.xlu0 %v4429_v1 }
0x16b4   :  { %3971 = vset.pattern.permute.xlu1 %v4448_v42 }
0x16b5   :  { %3181 = vperm.xlu1 %3971, %v5167_v12  }
0x16b9   :  { %3972 = vset.pattern.permute.xlu1 %v4449_v15 }
0x16ba   :  { %3202 = vperm.xlu1 %3972, %v5167_v12  }
0x16be   :  { %3973 = vset.pattern.permute.xlu1 %v4450_v22 }
0x16bf   :  { %3210 = vperm.xlu1 %3973, %v5167_v12  }
0x16c3   :  { %3974 = vset.pattern.permute.xlu1 %v4430_v3 }
0x16ee   :  { %v2863_v19 = vpop.xlane.xlu0 %2862 }
0x16ef   :  { %4151 = vrcp.f32 %v2863_v19 }
0x16f2   :  { %v2861_v59 = vpop.xlane.xlu0 %2860 }
0x16f3   :  { %4153 = vrcp.f32 %v2861_v59 }
0x16f6   :  { %v2867_v60 = vpop.xlane.xlu0 %2866 }
0x16f7   :  { %4155 = vrcp.f32 %v2867_v60 }
0x16f9   :  { %v4152_v42 = vpop.eup %4151 }
0x16fa   :  { %v2865_v27 = vpop.xlane.xlu0 %2864  ;;  %v2909_v10 = vmul.f32 %v4152_v42, %v5288_v56 }
0x16fb   :  { %4157 = vrcp.f32 %v2865_v27 }
0x16fd   :  { %v4154_v37 = vpop.eup %4153 }
0x16fe   :  { %v2871_v43 = vpop.xlane.xlu0 %2870  ;;  %v2908_v15 = vmul.f32 %v4154_v37, %v5292_v38 }
0x16ff   :  { %4159 = vrcp.f32 %v2871_v43 }
0x1700   :  { %v3833_v22 = vpack.c.bf16 %v2909_v10, %v2908_v15 }
0x1701   :  { %v4156_v3 = vpop.eup %4155 }
0x1702   :  { %3834 = vmatpush3.bf16.xpose.msra.mxu1 %v3833_v22  ;;  %v2869_v12 = vpop.xlane.xlu0 %2868  ;;  %v2911_v18 = vmul.f32 %v4156_v3, %v5296_v0 }
0x1703   :  { %4161 = vrcp.f32 %v2869_v12  ;;  %3835 = vmatprep.subr.bf16.mxu1 %v4444_v54 }
0x1705   :  { %v4158_v23 = vpop.eup %4157 }
0x1706   :  { %v2875_v61 = vpop.xlane.xlu0 %2874  ;;  %v2910_v40 = vmul.f32 %v4158_v23, %v5300_v14 }
0x1707   :  { %4163 = vrcp.f32 %v2875_v61 }
0x1708   :  { %v3836_v35 = vpack.c.bf16 %v2911_v18, %v2910_v40 }
0x1709   :  { %v4160_v30 = vpop.eup %4159 }
0x170a   :  { %3837 = vmatpush3.bf16.xpose.msra.mxu1 %v3836_v35  ;;  %v2873_v38 = vpop.xlane.xlu0 %2872  ;;  %v2913_v5 = vmul.f32 %v4160_v30, %v5304_v46 }
0x170b   :  { %4165 = vrcp.f32 %v2873_v38  ;;  %3838 = vmatprep.subr.bf16.mxu1 %v4444_v54 }
0x170d   :  { %v4162_v56 = vpop.eup %4161 }
0x170e   :  { %v2879_v13 = vpop.xlane.xlu0 %2878  ;;  %v2912_v20 = vmul.f32 %v4162_v56, %v5308_v28 }
0x170f   :  { %4167 = vrcp.f32 %v2879_v13 }
0x1710   :  { %v3839_v6 = vpack.c.bf16 %v2913_v5, %v2912_v20  ;;  %v3025_v5 = vld [vmem:[#allocation13 + $0x10] sm:$0xff] }
0x1711   :  { %v4164_v55 = vpop.eup %4163 }
0x1712   :  { %3840 = vmatpush3.bf16.xpose.msra.mxu1 %v3839_v6  ;;  %v2877_v14 = vpop.xlane.xlu0 %2876  ;;  %v2915_v8 = vmul.f32 %v4164_v55, %v5311_v47  ;;  %v3214_v6 = vld [vmem:[%s5417_s10] sm:$0xff]  ;;  %s4451_s10 = smov [#allocation16]  }
0x1713   :  { %4169 = vrcp.f32 %v2877_v14  ;;  %3841 = vmatprep.subr.bf16.mxu1 %v4444_v54  ;;  %3233 = vperm.xlu1 %3974, %v3214_v6   ;;  %s3252_s26 = sshll.u32 %s4451_s10, 4  ;;  %s3253_s26 = int_to_ptr.vmem [resolvable:$true] %s3252_s26 }
0x1714   :  { %s4382_s7 = scalar_lea.vmem %s3253_s26, 128  ;;  %p4387_p9 = scmp.lt.s32.totalorder %s3253_s26, %s3253_s26 }
0x1715   :  { %v4166_v0 = vpop.eup %4165  ;;  %p4383_p8 = scmp.ne.s32.totalorder %s3253_s26, %s4382_s7  ;;  %p4388_p10 = scmp.lt.s32.totalorder %s4382_s7, %s4382_s7 }
0x1716   :  { %v2881_v41 = vpop.xlane.xlu0 %2880  ;;  %v2914_v49 = vmul.f32 %v4166_v0, %v5316_v62 }
0x1717   :  { %4171 = vrcp.f32 %v2881_v41  ;;  %3975 = vset.pattern.permute.xlu1 %v4429_v1  ;;  %p4389_p11 = por %p4388_p10, %p4387_p9 }
0x1718   :  { %v3842_v33 = vpack.c.bf16 %v2915_v8, %v2914_v49  ;;  %3241 = vperm.xlu1 %3975, %v3214_v6   ;;  %v3105_v8 = vld [vmem:[#allocation14 + $0x10] sm:$0xff] }
0x1719   :  { %v4168_v26 = vpop.eup %4167  ;;  %p4390_p12 = pnand %p4389_p11, %p4383_p8 }
0x171a   :  { %3843 = vmatpush3.bf16.xpose.msra.mxu1 %v3842_v33  ;;  %v2883_v28 = vpop.xlane.xlu0 %2882  ;;  %v2917_v39 = vmul.f32 %v4168_v26, %v5320_v16 }
0x171b   :  { %4173 = vrcp.f32 %v2883_v28  ;;  %3844 = vmatprep.subr.bf16.mxu1 %v4444_v54 }
0x171d   :  { %v4170_v46 = vpop.eup %4169  ;;  %v2885_v9 = vpop.xlane.xlu1 %2884 }
0x171e   :  { %4175 = vrcp.f32 %v2885_v9  ;;  %v2887_v63 = vpop.xlane.xlu0 %2886  ;;  %v2916_v31 = vmul.f32 %v4170_v46, %v5324_v51 }
0x171f   :  { %4177 = vrcp.f32 %v2887_v63 }
0x1720   :  { %v3845_v62 = vpack.c.bf16 %v2917_v39, %v2916_v31 }
0x1721   :  { %v4172_v47 = vpop.eup %4171 }
0x1722   :  { %3846 = vmatpush3.bf16.xpose.msra.mxu1 %v3845_v62  ;;  %v2889_v32 = vpop.xlane.xlu1 %2888  ;;  %v2918_v57 = vmul.f32 %v4172_v47, %v5328_v53 }
0x1723   :  { %3847 = vmatprep.subr.bf16.mxu1 %v4444_v54 }
0x1725   :  { %v4174_v34 = vpop.eup %4173 }
0x1726   :  { %v2891_v4 = vpop.xlane.xlu0 %2890  ;;  %v2919_v7 = vmul.f32 %v4174_v34, %v5332_v45  ;;  %v2448_v59 = vpop.permute.xlu1 %2447 }
0x1727   :  { %4179 = vrcp.f32 %v2891_v4  ;;  %v2520_v60 = vadd.f32 %v5211_v50, %v2448_v59 }
0x1728   :  { %v4176_v2 = vpop.eup %4175  ;;  %v3848_v11 = vpack.c.bf16 %v2919_v7, %v2918_v57  ;;  %4181 = vrcp.f32 %v2889_v32 }
0x1729   :  { %v4178_v24 = vpop.eup %4177  ;;  %v2920_v16 = vmul.f32 %v4176_v2, %v5335_v36 }
0x172a   :  { %3849 = vmatpush3.bf16.xpose.msra.mxu1 %v3848_v11  ;;  %v2921_v51 = vmul.f32 %v4178_v24, %v5337_v21  ;;  %v3021_v56 = vpop.permute.xlu1 %3020 }
0x172b   :  { %3850 = vmatprep.subr.bf16.mxu1 %v4444_v54 }
0x172c   :  { %v3851_v52 = vpack.c.bf16 %v2921_v51, %v2920_v16 }
0x172f   :  { %v3028_v14 = vpop.permute.xlu1 %3027 }
0x1731   :  { %v4180_v44 = vpop.eup %4179 }
0x1732   :  { %3852 = vmatpush3.bf16.xpose.msra.mxu1 %v3851_v52  ;;  %v4182_v25 = vpop.eup %4181  ;;  %v2923_v53 = vmul.f32 %v4180_v44, %v5344_v58 }
0x1733   :  { %3853 = vmatprep.subr.bf16.mxu1 %v4444_v54  ;;  %v2922_v45 = vmul.f32 %v4182_v25, %v5341_v48 }
0x1734   :  { %v3182_v28 = vpop.permute.xlu1 %3181 }
0x1735   :  { %v3854_v19 = vpack.c.bf16 %v2923_v53, %v2922_v45 }
0x1739   :  { %v3203_v52 = vpop.permute.xlu1 %3202 }
0x173a   :  { %3855 = vmatpush3.bf16.xpose.msra.mxu1 %v3854_v19 }
0x173e   :  { %v3211_v53 = vpop.permute.xlu1 %3210 }
0x1741   :  { %3748 = vmatmul.mubr.f32.vlgmr.msra.gmra.mrb[36].mxu1 %v2520_v60 }
0x1814   :  { %v2990_v27 = vpop.f32.mrb[36].mxu1 }
0x1815   :  { %v2994_v36 = vadd.f32 %v2990_v27, %v5176_v29  ;;  %v3749_v21 = vpop.f32.mrb[37].mxu1  ;;  %v3013_v29 = vpop.permute.xlu0 %3012 }
0x1817   :  { %v2995_v42 = vrot.slane %v2994_v36, 4 }
0x1819   :  { %v2996_v37 = vadd.f32 %v2995_v42, %v2994_v36 }
0x181b   :  { %v2997_v43 = vrot.slane %v2996_v37, 2 }
0x181d   :  { %v2998_v15 = vadd.f32 %v2997_v43, %v2996_v37 }
0x181f   :  { %v2999_v10 = vrot.slane %v2998_v15, 1 }
0x1821   :  { %v3000_v54 = vadd.f32 %v2999_v10, %v2998_v15 }
0x1823   :  { %v3001_v22 = vmul.f32 0.125, %v3000_v54 }
0x1825   :  { %v3002_v58 = vsub.f32 %v2994_v36, %v3001_v22 }
0x1827   :  { %v3003_v12 = vmul.f32 %v3002_v58, %v3002_v58  ;;  %v3015_v38 = vmul.f32 %v3013_v29, %v3002_v58 }
0x1829   :  { %v3004_v48 = vrot.slane %v3003_v12, 4 }
0x182b   :  { %v3005_v3 = vadd.f32 %v3004_v48, %v3003_v12 }
0x182d   :  { %v3006_v23 = vrot.slane %v3005_v3, 2 }
0x182f   :  { %v3007_v61 = vadd.f32 %v3006_v23, %v3005_v3 }
0x1831   :  { %v3008_v40 = vrot.slane %v3007_v61, 1 }
0x1833   :  { %v3009_v50 = vadd.f32 %v3008_v40, %v3007_v61  ;;  %v3234_v61 = vpop.permute.xlu1 %3233 }
0x1835   :  { %v3010_v18 = vmul.f32 0.125, %v3009_v50 }
0x1837   :  { %v3016_v35 = vadd.f32 1e-06, %v3010_v18  ;;  %v3242_v18 = vpop.permute.xlu1 %3241 }
0x1839   :  { %4183 = vrsqrt.f32 %v3016_v35 }
0x1843   :  { %v4184_v30 = vpop.eup %4183 }
0x1844   :  { %v3018_v13 = vmul.f32 %v4184_v30, %v3015_v38 }
0x1846   :  { %v3023_v20 = vadd.f32 %v3021_v56, %v3018_v13 }
0x1848   :  { %3751 = vmatpush3.msra.mxu0 %v3023_v20 }
0x1849   :  { %3753 = vmatmul.mubr.msk.f32.vlgmr.msra.gmra.mrb[40].mxu0 %vm408_vm6, %v3025_v5  ;;  %3755 = vmatprep.subr.mxu0 %v4441_v17 }
0x184a   :  { %3757 = vmatprep.mubr.msk.f32.mxu0 %vm4442_vm7, %v4441_v17 }
0x191c   :  { %v3099_v55 = vpop.f32.mrb[40].mxu0 }
0x191d   :  { %v3100_v0 = vadd.f32 %v3099_v55, %v3028_v14  ;;  %v3754_v41 = vpop.f32.mrb[41].mxu0 }
0x191f   :  { %v3103_v49 = vmax.f32 %v3100_v0, 0.0 }
0x1921   :  { %3756 = vmatpush3.msra.mxu0 %v3103_v49 }
0x1922   :  { %3758 = vmatmul.mubr.msk.f32.vlgmr.msra.gmra.mrb[42].mxu0 %vm408_vm6, %v3105_v8 }
0x19f5   :  { %v3175_v33 = vpop.f32.mrb[42].mxu0 }
0x19f6   :  { %v3179_v17 = vadd.f32 %v3175_v33, %v2994_v36  ;;  %v3759_v26 = vpop.f32.mrb[43].mxu0 }
0x19f8   :  { %v3184_v46 = vadd.f32 %v3182_v28, %v3179_v17 }
0x19fa   :  { %v3185_v9 = vrot.slane %v3184_v46, 4 }
0x19fc   :  { %v3186_v63 = vadd.f32 %v3185_v9, %v3184_v46 }
0x19fe   :  { %v3187_v31 = vrot.slane %v3186_v63, 2 }
0x1a00   :  { %v3188_v39 = vadd.f32 %v3187_v31, %v3186_v63 }
0x1a02   :  { %v3189_v1 = vrot.slane %v3188_v39, 1 }
0x1a04   :  { %v3190_v62 = vadd.f32 %v3189_v1, %v3188_v39 }
0x1a06   :  { %v3191_v47 = vmul.f32 0.125, %v3190_v62 }
0x1a08   :  { %v3192_v34 = vsub.f32 %v3184_v46, %v3191_v47 }
0x1a0a   :  { %v3193_v32 = vmul.f32 %v3192_v34, %v3192_v34  ;;  %v3205_v44 = vmul.f32 %v3203_v52, %v3192_v34 }
0x1a0c   :  { %v3194_v4 = vrot.slane %v3193_v32, 4 }
0x1a0e   :  { %v3195_v57 = vadd.f32 %v3194_v4, %v3193_v32 }
0x1a10   :  { %v3196_v7 = vrot.slane %v3195_v57, 2 }
0x1a12   :  { %v3197_v2 = vadd.f32 %v3196_v7, %v3195_v57 }
0x1a14   :  { %v3198_v11 = vrot.slane %v3197_v2, 1 }
0x1a16   :  { %v3199_v24 = vadd.f32 %v3198_v11, %v3197_v2 }
0x1a18   :  { %v3200_v16 = vmul.f32 0.125, %v3199_v24 }
0x1a1a   :  { %v3206_v51 = vadd.f32 1e-06, %v3200_v16 }
0x1a1c   :  { %4185 = vrsqrt.f32 %v3206_v51 }
0x1a26   :  { %v4186_v25 = vpop.eup %4185 }
0x1a27   :  { %v3208_v45 = vmul.f32 %v4186_v25, %v3205_v44 }
0x1a29   :  { %v3213_v19 = vadd.f32 %v3211_v53, %v3208_v45 }
0x1a2b   :  { %v3215_v59 = vrot.slane %v3213_v19, 4 }
0x1a2d   :  { %v3216_v60 = vadd.f32 %v3215_v59, %v3213_v19 }
0x1a2f   :  { %v3217_v27 = vrot.slane %v3216_v60, 2 }
0x1a31   :  { %v3218_v36 = vadd.f32 %v3217_v27, %v3216_v60 }
0x1a33   :  { %v3219_v21 = vrot.slane %v3218_v36, 1 }
0x1a35   :  { %v3220_v42 = vadd.f32 %v3219_v21, %v3218_v36 }
0x1a37   :  { %v3221_v37 = vmul.f32 0.125, %v3220_v42 }
0x1a39   :  { %v3222_v43 = vsub.f32 %v3213_v19, %v3221_v37 }
0x1a3b   :  { %v3223_v15 = vmul.f32 %v3222_v43, %v3222_v43  ;;  %v3236_v40 = vmul.f32 %v3234_v61, %v3222_v43 }
0x1a3d   :  { %v3224_v10 = vrot.slane %v3223_v15, 4 }
0x1a3f   :  { %v3225_v54 = vadd.f32 %v3224_v10, %v3223_v15 }
0x1a41   :  { %v3226_v22 = vrot.slane %v3225_v54, 2 }
0x1a43   :  { %v3227_v58 = vadd.f32 %v3226_v22, %v3225_v54 }
0x1a45   :  { %v3228_v12 = vrot.slane %v3227_v58, 1 }
0x1a47   :  { %v3229_v48 = vadd.f32 %v3228_v12, %v3227_v58 }
0x1a49   :  { %v3230_v3 = vmul.f32 0.125, %v3229_v48 }
0x1a4b   :  { %v3237_v23 = vadd.f32 1e-06, %v3230_v3 }
0x1a4d   :  { %4187 = vrsqrt.f32 %v3237_v23 }
0x1a57   :  { %v4188_v50 = vpop.eup %4187 }
0x1a58   :  { %v3239_v35 = vmul.f32 %v4188_v50, %v3236_v40 }
0x1a5a   :  { %v3244_v29 = vadd.f32 %v3242_v18, %v3239_v35 }
0x1a5c   :  { %3245 = vst [vmem:[#allocation16] sm:$0xff] %v3244_v29 }
0x1a5d   :  { %4393 = shalt.err (!%p4390_p12)
}
0x1a5e   :  { %s4394_s12 = scalar_lea.hbm %s5418_s11, 128 }
0x1a5f   :  { %p4395_p13 = scmp.ne.s32.totalorder %s5418_s11, %s4394_s12  ;;  %p4398_p0 = scmp.lt.u32.totalorder %s4394_s12, %s5418_s11 }
0x1a61   :  { %p4400_p1 = pnand %p4398_p0, %p4395_p13 }
0x1a63   :  { %4403 = shalt.err (!%p4400_p1)
}
0x1a64   :  { %3255 = dma.vmem_to_hbm [thread:$0]  %s3253_s26, 128, %s5418_s11, [#allocation4]  }
0x1a65   :  { %4414 = dma.done.wait [#allocation4], 128  }
0x1a66   :  { %4415 = vsyncadd [#allocation4], 4294967168 }
0x1a67   :  { %3259 = vsyncpa [#allocation3], 1 }
0x1a68   :  { %3260 = vsyncpa [#allocation6], 1 }
0x1a69   :  { %3261 = vsyncpa [#allocation9], 1 }
0x1a6a   :  { %3262 = vsyncpa [#allocation12], 1 }
0x1a6b   :  { %3263 = vsyncpa [#allocation15], 1 }
0x1a6c   :  { %3264 = vsyncpa [#allocation4], 1 }

</bundles_post_ra>
